<compile_context>
chip_gen: v7x
topology: tpu7x:2x2x1
jax: 0.10.0
libtpu: 0.0.40
codegen_flags: <defaults>
</compile_context>

<pallas_src>
import math

import numpy as np
import jax
import jax.numpy as jnp
from jax.experimental import pallas as pl
from jax.experimental.pallas import tpu as pltpu


# --------------------------- in-kernel helpers ------------------------------ #

def _conv3x3_bn_relu(act_ref, col_ref, w_ref, b_ref, *, H, W, Cin, Cout):
    """3x3 / stride-1 / zero-pad-1 conv + folded-BN bias + ReLU.

    act_ref : [(H+2)*(W+2), Cin]  true zero-padded activation (row-major over
              padded (h, w); pad rows/cols are real zeros -> no masking).
    col_ref : [Q, 9*Cin] im2col scratch, Q = (H-1)*(W+2) + W.  Conv outputs
              are produced for a contiguous range of flat padded positions;
              the out-of-image positions are garbage that is never read.
    Returns the ReLU'd conv output as a value of shape [Q, Cout].
    """
    Wp = W + 2
    Q = (H - 1) * Wp + W
    for k in range(9):
        kh, kw = divmod(k, 3)
        off = kh * Wp + kw                              # static offsets
        col_ref[:, k * Cin:(k + 1) * Cin] = act_ref[off:off + Q, :]
    y = jnp.dot(col_ref[...], w_ref[...], preferred_element_type=jnp.float32)
    return jnp.maximum(y + b_ref[...], 0.0)


def _maxpool2x2_into(co_ref, hm_ref, dst_ref, *, H, W, Wp_next):
    """2x2 / stride-2 max-pool of co_ref ([Q, C]) written into the interior of
    the next block's zero-padded activation buffer (pads remain zero)."""
    Wp = W + 2
    Q = (H - 1) * Wp + W
    Wh = Wp // 2
    H2, W2 = H // 2, W // 2
    # Stage 1 (w-pairs), fully vectorized: since Wp is even, the left/right
    # members of every w-pair are exactly the even/odd flat rows of co_ref.
    even = co_ref[pl.ds(0, Q // 2, stride=2), :]
    odd = co_ref[pl.ds(1, Q // 2, stride=2), :]
    hm_ref[...] = jnp.maximum(even, odd)
    # Stage 2 (h-pairs): short static loop, one contiguous interior-row store
    # per pooled row directly into the next padded buffer.
    for h2 in range(H2):
        r0 = hm_ref[2 * h2 * Wh:2 * h2 * Wh + W2, :]
        r1 = hm_ref[(2 * h2 + 1) * Wh:(2 * h2 + 1) * Wh + W2, :]
        d = (h2 + 1) * Wp_next + 1
        dst_ref[d:d + W2, :] = jnp.maximum(r0, r1)


# ------------------------------ kernel builder ------------------------------ #

def build_forward(B, H, W, in_channels, num_filters_list, fc_dim, num_fiducial):
    n_blk = len(num_filters_list)
    assert n_blk == 4

    blocks = []
    h, w, cin = H, W, in_channels
    for i, cout in enumerate(num_filters_list):
        if i < n_blk - 1:
            assert h % 2 == 0 and w % 2 == 0, "spatial dims must stay even"
        blocks.append(dict(H=h, W=w, Cin=cin, Cout=cout,
                           Wp=w + 2, Np=(h + 2) * (w + 2),
                           Q=(h - 1) * (w + 2) + w))
        h, w, cin = h // 2, w // 2, cout

    def kernel(*args):
        x_ref = args[0]
        wrefs = args[1:1 + 2 * n_blk]                   # w0,b0,w1,b1,...
        fc1w, fc1b, fc2w, fc2b = args[1 + 2 * n_blk:5 + 2 * n_blk]
        o_ref = args[5 + 2 * n_blk]
        scratch = iter(args[6 + 2 * n_blk:])

        act = x_ref                                     # pre-padded input image
        feat = None
        for i, blk in enumerate(blocks):
            Hb, Wb, Cin, Cout = blk["H"], blk["W"], blk["Cin"], blk["Cout"]
            col = next(scratch)
            y = _conv3x3_bn_relu(act, col, wrefs[2 * i], wrefs[2 * i + 1],
                                 H=Hb, W=Wb, Cin=Cin, Cout=Cout)
            if i < n_blk - 1:
                co, hm, pad_next = next(scratch), next(scratch), next(scratch)
                co[...] = y
                pad_next[...] = jnp.zeros(pad_next.shape, jnp.float32)
                _maxpool2x2_into(co, hm, pad_next,
                                 H=Hb, W=Wb, Wp_next=Wb // 2 + 2)
                act = pad_next
            else:
                # AdaptiveAvgPool2d(1): mean over the valid pixels (VPU only).
                Wp = Wb + 2
                acc = None
                for hh in range(Hb):
                    for ww in range(Wb):
                        v = y[hh * Wp + ww:hh * Wp + ww + 1, :]
                        acc = v if acc is None else acc + v
                feat = acc * jnp.float32(1.0 / (Hb * Wb))

        hidden = jnp.maximum(
            jnp.dot(feat, fc1w[...], preferred_element_type=jnp.float32)
            + fc1b[...], 0.0)
        o_ref[...] = (jnp.dot(hidden, fc2w[...],
                              preferred_element_type=jnp.float32) + fc2b[...])

    # ---- specs ----
    Np0 = (H + 2) * (W + 2)
    full2d = lambda b: (0, 0)
    in_specs = [pl.BlockSpec((None, Np0, in_channels), lambda b: (b, 0, 0))]
    for blk in blocks:
        in_specs.append(pl.BlockSpec((9 * blk["Cin"], blk["Cout"]), full2d))
        in_specs.append(pl.BlockSpec((1, blk["Cout"]), full2d))
    in_specs += [
        pl.BlockSpec((num_filters_list[-1], fc_dim), full2d),
        pl.BlockSpec((1, fc_dim), full2d),
        pl.BlockSpec((fc_dim, 2 * num_fiducial), full2d),
        pl.BlockSpec((1, 2 * num_fiducial), full2d),
    ]
    out_specs = pl.BlockSpec((None, 1, 2 * num_fiducial), lambda b: (b, 0, 0))

    scratch_shapes = []
    for i, blk in enumerate(blocks):
        Q, Cout = blk["Q"], blk["Cout"]
        scratch_shapes.append(pltpu.VMEM((Q, 9 * blk["Cin"]), jnp.float32))  # im2col
        if i < n_blk - 1:
            H2, W2 = blk["H"] // 2, blk["W"] // 2
            scratch_shapes.append(pltpu.VMEM((Q, Cout), jnp.float32))        # conv out
            scratch_shapes.append(pltpu.VMEM((Q // 2, Cout), jnp.float32))   # w-pair max
            scratch_shapes.append(
                pltpu.VMEM(((H2 + 2) * (W2 + 2), Cout), jnp.float32))        # next padded act

    fused = pl.pallas_call(
        kernel,
        out_shape=jax.ShapeDtypeStruct((B, 1, 2 * num_fiducial), jnp.float32),
        grid=(B,),
        in_specs=in_specs,
        out_specs=out_specs,
        scratch_shapes=scratch_shapes,
        compiler_params=pltpu.CompilerParams(
            dimension_semantics=("parallel",),
            vmem_limit_bytes=32 * 1024 * 1024),
    )

    @jax.jit
    def forward(x_nchw, params):
        # One tiny XLA fusion: NCHW -> NHWC, zero-pad by 1, flatten per image.
        xn = jnp.transpose(x_nchw, (0, 2, 3, 1))
        xp = jnp.pad(xn, ((0, 0), (1, 1), (1, 1), (0, 0)))
        xf = xp.reshape(B, Np0, in_channels)
        c = params["convs"]
        flat = [xf]
        for blk_p in c:
            flat += [blk_p["w"], blk_p["bias"]]
        flat += [params["fc1_w"], params["fc1_b"],
                 params["fc2_w"], params["fc2_b"]]
        out = fused(*flat)
        return out.reshape(B, num_fiducial, 2)

    return forward


# ------------------------------ pure-jnp reference -------------------------- #

def reference_forward(x_nchw, params, num_fiducial):
    x = jnp.transpose(x_nchw, (0, 2, 3, 1))
    convs = params["convs"]
    for idx, blk in enumerate(convs):
        B, H, W, C = x.shape
        xp = jnp.pad(x, ((0, 0), (1, 1), (1, 1), (0, 0)))
        cols = [xp[:, i:i + H, j:j + W, :] for i in range(3) for j in range(3)]
        p = jnp.concatenate(cols, axis=-1)                    # [B,H,W,9C]
        cout = blk["w"].shape[-1]
        y = p.reshape(B * H * W, -1) @ blk["w"] + blk["bias"]
        y = jnp.maximum(y, 0.0).reshape(B, H, W, cout)
        if idx < len(convs) - 1:
            x = y.reshape(B, H // 2, 2, W // 2, 2, cout).max(axis=(2, 4))
        else:
            x = y.mean(axis=(1, 2))
    h = jnp.maximum(x @ params["fc1_w"] + params["fc1_b"], 0.0)
    out = h @ params["fc2_w"] + params["fc2_b"]
    return out.reshape(-1, num_fiducial, 2)


# ----------------------------- parameter construction ----------------------- #

def get_initial_fiducials(F):
    """See RARE paper Fig. 6 (a)."""
    ctrl_pts_x = np.linspace(-1.0, 1.0, int(F / 2))
    ctrl_pts_y_top = np.linspace(0.0, -1.0, num=int(F / 2))
    ctrl_pts_y_bottom = np.linspace(1.0, 0.0, num=int(F / 2))
    ctrl_pts_top = np.stack([ctrl_pts_x, ctrl_pts_y_top], axis=1)
    ctrl_pts_bottom = np.stack([ctrl_pts_x, ctrl_pts_y_bottom], axis=1)
    return np.concatenate([ctrl_pts_top, ctrl_pts_bottom], axis=0)


def init_params(key, in_channels, num_filters_list, fc_dim, num_fiducial):
    eps = 1e-5
    convs = []
    cin = in_channels
    k = key
    for cout in num_filters_list:
        k, kw, kg, kb = jax.random.split(k, 4)
        w = jax.random.normal(kw, (3, 3, cin, cout), jnp.float32) / math.sqrt(9 * cin)
        gamma = 1.0 + 0.1 * jax.random.normal(kg, (cout,), jnp.float32)
        beta = 0.1 * jax.random.normal(kb, (cout,), jnp.float32)
        running_mean = jnp.zeros((cout,), jnp.float32)
        running_var = jnp.ones((cout,), jnp.float32)
        scale = gamma / jnp.sqrt(running_var + eps)          # inference BN
        bias = beta - running_mean * scale
        # Fold BN scale into the conv weight; layout [(kh,kw,cin) major, Cout].
        w_folded = (w * scale).reshape(9 * cin, cout)
        convs.append({"w": w_folded, "bias": bias.reshape(1, cout)})
        cin = cout

    k, k1, k1b, k2 = jax.random.split(k, 4)
    stdv = 1.0 / math.sqrt(num_filters_list[-1] * 1.0)
    fc1_w = jax.random.uniform(k1, (num_filters_list[-1], fc_dim), jnp.float32, -stdv, stdv)
    fc1_b = jax.random.uniform(k1b, (1, fc_dim), jnp.float32, -stdv, stdv)
    fc2_w = 0.01 * jax.random.normal(k2, (fc_dim, num_fiducial * 2), jnp.float32)
    # fc2 bias initialized to the initial fiducial grid (matches the module).
    fc2_b = jnp.asarray(get_initial_fiducials(num_fiducial).reshape(1, -1), jnp.float32)
    return {"convs": convs, "fc1_w": fc1_w, "fc1_b": fc1_b,
            "fc2_w": fc2_w, "fc2_b": fc2_b}


# ---------------------------------- main ------------------------------------ #

if __name__ == "__main__":
    B, C, H, W = 2, 4, 16, 16              # small NCHW input, as in PyTorch
    num_fiducial = 8                       # F (even, as required by the module)
    num_filters_list = [16, 32, 64, 128]   # model_name != 'large'
    fc_dim = 64

    key = jax.random.PRNGKey(0)
    kx, kp = jax.random.split(key)
    x = jax.random.normal(kx, (B, C, H, W), jnp.float32)
    params = init_params(kp, C, num_filters_list, fc_dim, num_fiducial)

    forward = build_forward(B, H, W, C, num_filters_list, fc_dim, num_fiducial)
    out = jax.block_until_ready(forward(x, params))

    ref = reference_forward(x, params, num_fiducial)
    assert out.shape == (B, num_fiducial, 2), out.shape
    assert bool(jnp.all(jnp.isfinite(out)))
    assert bool(jnp.allclose(out, ref, rtol=1e-3, atol=1e-3)), \
        float(jnp.max(jnp.abs(out - ref)))
    print("KERNEL_OK")
</pallas_src>

<mosaic_0001>
module attributes {stable_mosaic.version = 11 : i64} {
  func.func @kernel(%arg0: i32, %arg1: memref<1x324x4xf32, #tpu.memory_space<vmem>>, %arg2: memref<36x16xf32, #tpu.memory_space<vmem>>, %arg3: memref<1x16xf32, #tpu.memory_space<vmem>>, %arg4: memref<144x32xf32, #tpu.memory_space<vmem>>, %arg5: memref<1x32xf32, #tpu.memory_space<vmem>>, %arg6: memref<288x64xf32, #tpu.memory_space<vmem>>, %arg7: memref<1x64xf32, #tpu.memory_space<vmem>>, %arg8: memref<576x128xf32, #tpu.memory_space<vmem>>, %arg9: memref<1x128xf32, #tpu.memory_space<vmem>>, %arg10: memref<128x64xf32, #tpu.memory_space<vmem>>, %arg11: memref<1x64xf32, #tpu.memory_space<vmem>>, %arg12: memref<64x16xf32, #tpu.memory_space<vmem>>, %arg13: memref<1x16xf32, #tpu.memory_space<vmem>>, %arg14: memref<1x1x16xf32, #tpu.memory_space<vmem>>, %arg15: memref<286x36xf32, #tpu.memory_space<vmem>>, %arg16: memref<286x16xf32, #tpu.memory_space<vmem>>, %arg17: memref<143x16xf32, #tpu.memory_space<vmem>>, %arg18: memref<100x16xf32, #tpu.memory_space<vmem>>, %arg19: memref<78x144xf32, #tpu.memory_space<vmem>>, %arg20: memref<78x32xf32, #tpu.memory_space<vmem>>, %arg21: memref<39x32xf32, #tpu.memory_space<vmem>>, %arg22: memref<36x32xf32, #tpu.memory_space<vmem>>, %arg23: memref<22x288xf32, #tpu.memory_space<vmem>>, %arg24: memref<22x64xf32, #tpu.memory_space<vmem>>, %arg25: memref<11x64xf32, #tpu.memory_space<vmem>>, %arg26: memref<16x64xf32, #tpu.memory_space<vmem>>, %arg27: memref<6x576xf32, #tpu.memory_space<vmem>>) attributes {dimension_semantics = [#tpu.dimension_semantics<parallel>], iteration_bounds = array<i64: 2>, scalar_prefetch = 0 : i64, scratch_operands = 13 : i64, tpu.core_type = #tpu.core_type<tc>, window_params = [{transform_indices = @transform_0, window_bounds = array<i64: 1, 324, 4>}, {pipeline_mode = #tpu.pipeline_mode<synchronous>, transform_indices = @transform_1, window_bounds = array<i64: 36, 16>}, {pipeline_mode = #tpu.pipeline_mode<synchronous>, transform_indices = @transform_2, window_bounds = array<i64: 1, 16>}, {pipeline_mode = #tpu.pipeline_mode<synchronous>, transform_indices = @transform_3, window_bounds = array<i64: 144, 32>}, {pipeline_mode = #tpu.pipeline_mode<synchronous>, transform_indices = @transform_4, window_bounds = array<i64: 1, 32>}, {pipeline_mode = #tpu.pipeline_mode<synchronous>, transform_indices = @transform_5, window_bounds = array<i64: 288, 64>}, {pipeline_mode = #tpu.pipeline_mode<synchronous>, transform_indices = @transform_6, window_bounds = array<i64: 1, 64>}, {pipeline_mode = #tpu.pipeline_mode<synchronous>, transform_indices = @transform_7, window_bounds = array<i64: 576, 128>}, {pipeline_mode = #tpu.pipeline_mode<synchronous>, transform_indices = @transform_8, window_bounds = array<i64: 1, 128>}, {pipeline_mode = #tpu.pipeline_mode<synchronous>, transform_indices = @transform_9, window_bounds = array<i64: 128, 64>}, {pipeline_mode = #tpu.pipeline_mode<synchronous>, transform_indices = @transform_10, window_bounds = array<i64: 1, 64>}, {pipeline_mode = #tpu.pipeline_mode<synchronous>, transform_indices = @transform_11, window_bounds = array<i64: 64, 16>}, {pipeline_mode = #tpu.pipeline_mode<synchronous>, transform_indices = @transform_12, window_bounds = array<i64: 1, 16>}, {transform_indices = @transform_13, window_bounds = array<i64: 1, 1, 16>}]} {
    %c0 = arith.constant 0 : index
    %c0_0 = arith.constant 0 : index
    %c0_1 = arith.constant 0 : index
    %0 = vector.load %arg1[%c0, %c0_0, %c0_1] : memref<1x324x4xf32, #tpu.memory_space<vmem>>, vector<1x286x4xf32>
    %1 = vector.shape_cast %0 : vector<1x286x4xf32> to vector<286x4xf32>
    %c0_2 = arith.constant 0 : index
    %c0_3 = arith.constant 0 : index
    %2 = vector.load %arg15[%c0_2, %c0_3] : memref<286x36xf32, #tpu.memory_space<vmem>>, vector<286x4xf32>
    tpu.vector_store %arg15[%c0_2, %c0_3], %1 {strides = array<i32>} : memref<286x36xf32, #tpu.memory_space<vmem>>, vector<286x4xf32>,
    %c0_4 = arith.constant 0 : index
    %c1 = arith.constant 1 : index
    %c0_5 = arith.constant 0 : index
    %3 = vector.load %arg1[%c0_4, %c1, %c0_5] : memref<1x324x4xf32, #tpu.memory_space<vmem>>, vector<1x286x4xf32>
    %4 = vector.shape_cast %3 : vector<1x286x4xf32> to vector<286x4xf32>
    %c0_6 = arith.constant 0 : index
    %c4 = arith.constant 4 : index
    %5 = vector.load %arg15[%c0_6, %c4] : memref<286x36xf32, #tpu.memory_space<vmem>>, vector<286x4xf32>
    tpu.vector_store %arg15[%c0_6, %c4], %4 {strides = array<i32>} : memref<286x36xf32, #tpu.memory_space<vmem>>, vector<286x4xf32>,
    %c0_7 = arith.constant 0 : index
    %c2 = arith.constant 2 : index
    %c0_8 = arith.constant 0 : index
    %6 = vector.load %arg1[%c0_7, %c2, %c0_8] : memref<1x324x4xf32, #tpu.memory_space<vmem>>, vector<1x286x4xf32>
    %7 = vector.shape_cast %6 : vector<1x286x4xf32> to vector<286x4xf32>
    %c0_9 = arith.constant 0 : index
    %c8 = arith.constant 8 : index
    %8 = vector.load %arg15[%c0_9, %c8] : memref<286x36xf32, #tpu.memory_space<vmem>>, vector<286x4xf32>
    tpu.vector_store %arg15[%c0_9, %c8], %7 {strides = array<i32>} : memref<286x36xf32, #tpu.memory_space<vmem>>, vector<286x4xf32>,
    %c0_10 = arith.constant 0 : index
    %c18 = arith.constant 18 : index
    %c0_11 = arith.constant 0 : index
    %9 = vector.load %arg1[%c0_10, %c18, %c0_11] : memref<1x324x4xf32, #tpu.memory_space<vmem>>, vector<1x286x4xf32>
    %10 = vector.shape_cast %9 : vector<1x286x4xf32> to vector<286x4xf32>
    %c0_12 = arith.constant 0 : index
    %c12 = arith.constant 12 : index
    %11 = vector.load %arg15[%c0_12, %c12] : memref<286x36xf32, #tpu.memory_space<vmem>>, vector<286x4xf32>
    tpu.vector_store %arg15[%c0_12, %c12], %10 {strides = array<i32>} : memref<286x36xf32, #tpu.memory_space<vmem>>, vector<286x4xf32>,
    %c0_13 = arith.constant 0 : index
    %c19 = arith.constant 19 : index
    %c0_14 = arith.constant 0 : index
    %12 = vector.load %arg1[%c0_13, %c19, %c0_14] : memref<1x324x4xf32, #tpu.memory_space<vmem>>, vector<1x286x4xf32>
    %13 = vector.shape_cast %12 : vector<1x286x4xf32> to vector<286x4xf32>
    %c0_15 = arith.constant 0 : index
    %c16 = arith.constant 16 : index
    %14 = vector.load %arg15[%c0_15, %c16] : memref<286x36xf32, #tpu.memory_space<vmem>>, vector<286x4xf32>
    tpu.vector_store %arg15[%c0_15, %c16], %13 {strides = array<i32>} : memref<286x36xf32, #tpu.memory_space<vmem>>, vector<286x4xf32>,
    %c0_16 = arith.constant 0 : index
    %c20 = arith.constant 20 : index
    %c0_17 = arith.constant 0 : index
    %15 = vector.load %arg1[%c0_16, %c20, %c0_17] : memref<1x324x4xf32, #tpu.memory_space<vmem>>, vector<1x286x4xf32>
    %16 = vector.shape_cast %15 : vector<1x286x4xf32> to vector<286x4xf32>
    %c0_18 = arith.constant 0 : index
    %c20_19 = arith.constant 20 : index
    %17 = vector.load %arg15[%c0_18, %c20_19] : memref<286x36xf32, #tpu.memory_space<vmem>>, vector<286x4xf32>
    tpu.vector_store %arg15[%c0_18, %c20_19], %16 {strides = array<i32>} : memref<286x36xf32, #tpu.memory_space<vmem>>, vector<286x4xf32>,
    %c0_20 = arith.constant 0 : index
    %c36 = arith.constant 36 : index
    %c0_21 = arith.constant 0 : index
    %18 = vector.load %arg1[%c0_20, %c36, %c0_21] : memref<1x324x4xf32, #tpu.memory_space<vmem>>, vector<1x286x4xf32>
    %19 = vector.shape_cast %18 : vector<1x286x4xf32> to vector<286x4xf32>
    %c0_22 = arith.constant 0 : index
    %c24 = arith.constant 24 : index
    %20 = vector.load %arg15[%c0_22, %c24] : memref<286x36xf32, #tpu.memory_space<vmem>>, vector<286x4xf32>
    tpu.vector_store %arg15[%c0_22, %c24], %19 {strides = array<i32>} : memref<286x36xf32, #tpu.memory_space<vmem>>, vector<286x4xf32>,
    %c0_23 = arith.constant 0 : index
    %c37 = arith.constant 37 : index
    %c0_24 = arith.constant 0 : index
    %21 = vector.load %arg1[%c0_23, %c37, %c0_24] : memref<1x324x4xf32, #tpu.memory_space<vmem>>, vector<1x286x4xf32>
    %22 = vector.shape_cast %21 : vector<1x286x4xf32> to vector<286x4xf32>
    %c0_25 = arith.constant 0 : index
    %c28 = arith.constant 28 : index
    %23 = vector.load %arg15[%c0_25, %c28] : memref<286x36xf32, #tpu.memory_space<vmem>>, vector<286x4xf32>
    tpu.vector_store %arg15[%c0_25, %c28], %22 {strides = array<i32>} : memref<286x36xf32, #tpu.memory_space<vmem>>, vector<286x4xf32>,
    %c0_26 = arith.constant 0 : index
    %c38 = arith.constant 38 : index
    %c0_27 = arith.constant 0 : index
    %24 = vector.load %arg1[%c0_26, %c38, %c0_27] : memref<1x324x4xf32, #tpu.memory_space<vmem>>, vector<1x286x4xf32>
    %25 = vector.shape_cast %24 : vector<1x286x4xf32> to vector<286x4xf32>
    %c0_28 = arith.constant 0 : index
    %c32 = arith.constant 32 : index
    %26 = vector.load %arg15[%c0_28, %c32] : memref<286x36xf32, #tpu.memory_space<vmem>>, vector<286x4xf32>
    tpu.vector_store %arg15[%c0_28, %c32], %25 {strides = array<i32>} : memref<286x36xf32, #tpu.memory_space<vmem>>, vector<286x4xf32>,
    %c0_29 = arith.constant 0 : index
    %c0_30 = arith.constant 0 : index
    %27 = vector.load %arg15[%c0_29, %c0_30] : memref<286x36xf32, #tpu.memory_space<vmem>>, vector<286x36xf32>
    %c0_31 = arith.constant 0 : index
    %c0_32 = arith.constant 0 : index
    %28 = vector.load %arg2[%c0_31, %c0_32] : memref<36x16xf32, #tpu.memory_space<vmem>>, vector<36x16xf32>
    %cst = arith.constant dense<0.000000e+00> : vector<286x16xf32>
    %29 = tpu.matmul %27, %28, %cst {dimension_numbers = #tpu.dot_dimension_numbers<[1], [0], [0], [1], [0, 0, 1, 1], [], []>} : vector<286x36xf32>, vector<36x16xf32>, vector<286x16xf32> -> vector<286x16xf32>
    %c0_33 = arith.constant 0 : index
    %c0_34 = arith.constant 0 : index
    %30 = vector.load %arg3[%c0_33, %c0_34] : memref<1x16xf32, #tpu.memory_space<vmem>>, vector<1x16xf32>
    %31 = vector.broadcast %30 : vector<1x16xf32> to vector<286x16xf32>
    %32 = arith.addf %29, %31 : vector<286x16xf32>
    %cst_35 = arith.constant 0.000000e+00 : f32
    %33 = vector.broadcast %cst_35 : f32 to vector<286x16xf32>
    %34 = arith.maximumf %32, %33 : vector<286x16xf32>
    %c0_36 = arith.constant 0 : index
    %c0_37 = arith.constant 0 : index
    %35 = vector.load %arg16[%c0_36, %c0_37] : memref<286x16xf32, #tpu.memory_space<vmem>>, vector<286x16xf32>
    tpu.vector_store %arg16[%c0_36, %c0_37], %34 {strides = array<i32>} : memref<286x16xf32, #tpu.memory_space<vmem>>, vector<286x16xf32>,
    %cst_38 = arith.constant 0.000000e+00 : f32
    %36 = vector.broadcast %cst_38 : f32 to vector<100x16xf32>
    %c0_39 = arith.constant 0 : index
    %c0_40 = arith.constant 0 : index
    %37 = vector.load %arg18[%c0_39, %c0_40] : memref<100x16xf32, #tpu.memory_space<vmem>>, vector<100x16xf32>
    tpu.vector_store %arg18[%c0_39, %c0_40], %36 {strides = array<i32>} : memref<100x16xf32, #tpu.memory_space<vmem>>, vector<100x16xf32>,
    %c0_41 = arith.constant 0 : index
    %c0_42 = arith.constant 0 : index
    %38 = tpu.strided_load %arg16[%c0_41, %c0_42] {strides = array<i32: 2, 1>} : memref<286x16xf32, #tpu.memory_space<vmem>>, vector<143x16xf32>
    %c1_43 = arith.constant 1 : index
    %c0_44 = arith.constant 0 : index
    %39 = tpu.strided_load %arg16[%c1_43, %c0_44] {strides = array<i32: 2, 1>} : memref<286x16xf32, #tpu.memory_space<vmem>>, vector<143x16xf32>
    %40 = arith.maximumf %38, %39 : vector<143x16xf32>
    %c0_45 = arith.constant 0 : index
    %c0_46 = arith.constant 0 : index
    %41 = vector.load %arg17[%c0_45, %c0_46] : memref<143x16xf32, #tpu.memory_space<vmem>>, vector<143x16xf32>
    tpu.vector_store %arg17[%c0_45, %c0_46], %40 {strides = array<i32>} : memref<143x16xf32, #tpu.memory_space<vmem>>, vector<143x16xf32>,
    %c0_47 = arith.constant 0 : index
    %c0_48 = arith.constant 0 : index
    %42 = vector.load %arg17[%c0_47, %c0_48] : memref<143x16xf32, #tpu.memory_space<vmem>>, vector<8x16xf32>
    %c9 = arith.constant 9 : index
    %c0_49 = arith.constant 0 : index
    %43 = vector.load %arg17[%c9, %c0_49] : memref<143x16xf32, #tpu.memory_space<vmem>>, vector<8x16xf32>
    %44 = arith.maximumf %42, %43 : vector<8x16xf32>
    %c11 = arith.constant 11 : index
    %c0_50 = arith.constant 0 : index
    %45 = vector.load %arg18[%c11, %c0_50] : memref<100x16xf32, #tpu.memory_space<vmem>>, vector<8x16xf32>
    tpu.vector_store %arg18[%c11, %c0_50], %44 {strides = array<i32>} : memref<100x16xf32, #tpu.memory_space<vmem>>, vector<8x16xf32>,
    %c18_51 = arith.constant 18 : index
    %c0_52 = arith.constant 0 : index
    %46 = vector.load %arg17[%c18_51, %c0_52] : memref<143x16xf32, #tpu.memory_space<vmem>>, vector<8x16xf32>
    %c27 = arith.constant 27 : index
    %c0_53 = arith.constant 0 : index
    %47 = vector.load %arg17[%c27, %c0_53] : memref<143x16xf32, #tpu.memory_space<vmem>>, vector<8x16xf32>
    %48 = arith.maximumf %46, %47 : vector<8x16xf32>
    %c21 = arith.constant 21 : index
    %c0_54 = arith.constant 0 : index
    %49 = vector.load %arg18[%c21, %c0_54] : memref<100x16xf32, #tpu.memory_space<vmem>>, vector<8x16xf32>
    tpu.vector_store %arg18[%c21, %c0_54], %48 {strides = array<i32>} : memref<100x16xf32, #tpu.memory_space<vmem>>, vector<8x16xf32>,
    %c36_55 = arith.constant 36 : index
    %c0_56 = arith.constant 0 : index
    %50 = vector.load %arg17[%c36_55, %c0_56] : memref<143x16xf32, #tpu.memory_space<vmem>>, vector<8x16xf32>
    %c45 = arith.constant 45 : index
    %c0_57 = arith.constant 0 : index
    %51 = vector.load %arg17[%c45, %c0_57] : memref<143x16xf32, #tpu.memory_space<vmem>>, vector<8x16xf32>
    %52 = arith.maximumf %50, %51 : vector<8x16xf32>
    %c31 = arith.constant 31 : index
    %c0_58 = arith.constant 0 : index
    %53 = vector.load %arg18[%c31, %c0_58] : memref<100x16xf32, #tpu.memory_space<vmem>>, vector<8x16xf32>
    tpu.vector_store %arg18[%c31, %c0_58], %52 {strides = array<i32>} : memref<100x16xf32, #tpu.memory_space<vmem>>, vector<8x16xf32>,
    %c54 = arith.constant 54 : index
    %c0_59 = arith.constant 0 : index
    %54 = vector.load %arg17[%c54, %c0_59] : memref<143x16xf32, #tpu.memory_space<vmem>>, vector<8x16xf32>
    %c63 = arith.constant 63 : index
    %c0_60 = arith.constant 0 : index
    %55 = vector.load %arg17[%c63, %c0_60] : memref<143x16xf32, #tpu.memory_space<vmem>>, vector<8x16xf32>
    %56 = arith.maximumf %54, %55 : vector<8x16xf32>
    %c41 = arith.constant 41 : index
    %c0_61 = arith.constant 0 : index
    %57 = vector.load %arg18[%c41, %c0_61] : memref<100x16xf32, #tpu.memory_space<vmem>>, vector<8x16xf32>
    tpu.vector_store %arg18[%c41, %c0_61], %56 {strides = array<i32>} : memref<100x16xf32, #tpu.memory_space<vmem>>, vector<8x16xf32>,
    %c72 = arith.constant 72 : index
    %c0_62 = arith.constant 0 : index
    %58 = vector.load %arg17[%c72, %c0_62] : memref<143x16xf32, #tpu.memory_space<vmem>>, vector<8x16xf32>
    %c81 = arith.constant 81 : index
    %c0_63 = arith.constant 0 : index
    %59 = vector.load %arg17[%c81, %c0_63] : memref<143x16xf32, #tpu.memory_space<vmem>>, vector<8x16xf32>
    %60 = arith.maximumf %58, %59 : vector<8x16xf32>
    %c51 = arith.constant 51 : index
    %c0_64 = arith.constant 0 : index
    %61 = vector.load %arg18[%c51, %c0_64] : memref<100x16xf32, #tpu.memory_space<vmem>>, vector<8x16xf32>
    tpu.vector_store %arg18[%c51, %c0_64], %60 {strides = array<i32>} : memref<100x16xf32, #tpu.memory_space<vmem>>, vector<8x16xf32>,
    %c90 = arith.constant 90 : index
    %c0_65 = arith.constant 0 : index
    %62 = vector.load %arg17[%c90, %c0_65] : memref<143x16xf32, #tpu.memory_space<vmem>>, vector<8x16xf32>
    %c99 = arith.constant 99 : index
    %c0_66 = arith.constant 0 : index
    %63 = vector.load %arg17[%c99, %c0_66] : memref<143x16xf32, #tpu.memory_space<vmem>>, vector<8x16xf32>
    %64 = arith.maximumf %62, %63 : vector<8x16xf32>
    %c61 = arith.constant 61 : index
    %c0_67 = arith.constant 0 : index
    %65 = vector.load %arg18[%c61, %c0_67] : memref<100x16xf32, #tpu.memory_space<vmem>>, vector<8x16xf32>
    tpu.vector_store %arg18[%c61, %c0_67], %64 {strides = array<i32>} : memref<100x16xf32, #tpu.memory_space<vmem>>, vector<8x16xf32>,
    %c108 = arith.constant 108 : index
    %c0_68 = arith.constant 0 : index
    %66 = vector.load %arg17[%c108, %c0_68] : memref<143x16xf32, #tpu.memory_space<vmem>>, vector<8x16xf32>
    %c117 = arith.constant 117 : index
    %c0_69 = arith.constant 0 : index
    %67 = vector.load %arg17[%c117, %c0_69] : memref<143x16xf32, #tpu.memory_space<vmem>>, vector<8x16xf32>
    %68 = arith.maximumf %66, %67 : vector<8x16xf32>
    %c71 = arith.constant 71 : index
    %c0_70 = arith.constant 0 : index
    %69 = vector.load %arg18[%c71, %c0_70] : memref<100x16xf32, #tpu.memory_space<vmem>>, vector<8x16xf32>
    tpu.vector_store %arg18[%c71, %c0_70], %68 {strides = array<i32>} : memref<100x16xf32, #tpu.memory_space<vmem>>, vector<8x16xf32>,
    %c126 = arith.constant 126 : index
    %c0_71 = arith.constant 0 : index
    %70 = vector.load %arg17[%c126, %c0_71] : memref<143x16xf32, #tpu.memory_space<vmem>>, vector<8x16xf32>
    %c135 = arith.constant 135 : index
    %c0_72 = arith.constant 0 : index
    %71 = vector.load %arg17[%c135, %c0_72] : memref<143x16xf32, #tpu.memory_space<vmem>>, vector<8x16xf32>
    %72 = arith.maximumf %70, %71 : vector<8x16xf32>
    %c81_73 = arith.constant 81 : index
    %c0_74 = arith.constant 0 : index
    %73 = vector.load %arg18[%c81_73, %c0_74] : memref<100x16xf32, #tpu.memory_space<vmem>>, vector<8x16xf32>
    tpu.vector_store %arg18[%c81_73, %c0_74], %72 {strides = array<i32>} : memref<100x16xf32, #tpu.memory_space<vmem>>, vector<8x16xf32>,
    %c0_75 = arith.constant 0 : index
    %c0_76 = arith.constant 0 : index
    %74 = vector.load %arg18[%c0_75, %c0_76] : memref<100x16xf32, #tpu.memory_space<vmem>>, vector<78x16xf32>
    %c0_77 = arith.constant 0 : index
    %c0_78 = arith.constant 0 : index
    %75 = vector.load %arg19[%c0_77, %c0_78] : memref<78x144xf32, #tpu.memory_space<vmem>>, vector<78x16xf32>
    tpu.vector_store %arg19[%c0_77, %c0_78], %74 {strides = array<i32>} : memref<78x144xf32, #tpu.memory_space<vmem>>, vector<78x16xf32>,
    %c1_79 = arith.constant 1 : index
    %c0_80 = arith.constant 0 : index
    %76 = vector.load %arg18[%c1_79, %c0_80] : memref<100x16xf32, #tpu.memory_space<vmem>>, vector<78x16xf32>
    %c0_81 = arith.constant 0 : index
    %c16_82 = arith.constant 16 : index
    %77 = vector.load %arg19[%c0_81, %c16_82] : memref<78x144xf32, #tpu.memory_space<vmem>>, vector<78x16xf32>
    tpu.vector_store %arg19[%c0_81, %c16_82], %76 {strides = array<i32>} : memref<78x144xf32, #tpu.memory_space<vmem>>, vector<78x16xf32>,
    %c2_83 = arith.constant 2 : index
    %c0_84 = arith.constant 0 : index
    %78 = vector.load %arg18[%c2_83, %c0_84] : memref<100x16xf32, #tpu.memory_space<vmem>>, vector<78x16xf32>
    %c0_85 = arith.constant 0 : index
    %c32_86 = arith.constant 32 : index
    %79 = vector.load %arg19[%c0_85, %c32_86] : memref<78x144xf32, #tpu.memory_space<vmem>>, vector<78x16xf32>
    tpu.vector_store %arg19[%c0_85, %c32_86], %78 {strides = array<i32>} : memref<78x144xf32, #tpu.memory_space<vmem>>, vector<78x16xf32>,
    %c10 = arith.constant 10 : index
    %c0_87 = arith.constant 0 : index
    %80 = vector.load %arg18[%c10, %c0_87] : memref<100x16xf32, #tpu.memory_space<vmem>>, vector<78x16xf32>
    %c0_88 = arith.constant 0 : index
    %c48 = arith.constant 48 : index
    %81 = vector.load %arg19[%c0_88, %c48] : memref<78x144xf32, #tpu.memory_space<vmem>>, vector<78x16xf32>
    tpu.vector_store %arg19[%c0_88, %c48], %80 {strides = array<i32>} : memref<78x144xf32, #tpu.memory_space<vmem>>, vector<78x16xf32>,
    %c11_89 = arith.constant 11 : index
    %c0_90 = arith.constant 0 : index
    %82 = vector.load %arg18[%c11_89, %c0_90] : memref<100x16xf32, #tpu.memory_space<vmem>>, vector<78x16xf32>
    %c0_91 = arith.constant 0 : index
    %c64 = arith.constant 64 : index
    %83 = vector.load %arg19[%c0_91, %c64] : memref<78x144xf32, #tpu.memory_space<vmem>>, vector<78x16xf32>
    tpu.vector_store %arg19[%c0_91, %c64], %82 {strides = array<i32>} : memref<78x144xf32, #tpu.memory_space<vmem>>, vector<78x16xf32>,
    %c12_92 = arith.constant 12 : index
    %c0_93 = arith.constant 0 : index
    %84 = vector.load %arg18[%c12_92, %c0_93] : memref<100x16xf32, #tpu.memory_space<vmem>>, vector<78x16xf32>
    %c0_94 = arith.constant 0 : index
    %c80 = arith.constant 80 : index
    %85 = vector.load %arg19[%c0_94, %c80] : memref<78x144xf32, #tpu.memory_space<vmem>>, vector<78x16xf32>
    tpu.vector_store %arg19[%c0_94, %c80], %84 {strides = array<i32>} : memref<78x144xf32, #tpu.memory_space<vmem>>, vector<78x16xf32>,
    %c20_95 = arith.constant 20 : index
    %c0_96 = arith.constant 0 : index
    %86 = vector.load %arg18[%c20_95, %c0_96] : memref<100x16xf32, #tpu.memory_space<vmem>>, vector<78x16xf32>
    %c0_97 = arith.constant 0 : index
    %c96 = arith.constant 96 : index
    %87 = vector.load %arg19[%c0_97, %c96] : memref<78x144xf32, #tpu.memory_space<vmem>>, vector<78x16xf32>
    tpu.vector_store %arg19[%c0_97, %c96], %86 {strides = array<i32>} : memref<78x144xf32, #tpu.memory_space<vmem>>, vector<78x16xf32>,
    %c21_98 = arith.constant 21 : index
    %c0_99 = arith.constant 0 : index
    %88 = vector.load %arg18[%c21_98, %c0_99] : memref<100x16xf32, #tpu.memory_space<vmem>>, vector<78x16xf32>
    %c0_100 = arith.constant 0 : index
    %c112 = arith.constant 112 : index
    %89 = vector.load %arg19[%c0_100, %c112] : memref<78x144xf32, #tpu.memory_space<vmem>>, vector<78x16xf32>
    tpu.vector_store %arg19[%c0_100, %c112], %88 {strides = array<i32>} : memref<78x144xf32, #tpu.memory_space<vmem>>, vector<78x16xf32>,
    %c22 = arith.constant 22 : index
    %c0_101 = arith.constant 0 : index
    %90 = vector.load %arg18[%c22, %c0_101] : memref<100x16xf32, #tpu.memory_space<vmem>>, vector<78x16xf32>
    %c0_102 = arith.constant 0 : index
    %c128 = arith.constant 128 : index
    %91 = vector.load %arg19[%c0_102, %c128] : memref<78x144xf32, #tpu.memory_space<vmem>>, vector<78x16xf32>
    tpu.vector_store %arg19[%c0_102, %c128], %90 {strides = array<i32>} : memref<78x144xf32, #tpu.memory_space<vmem>>, vector<78x16xf32>,
    %c0_103 = arith.constant 0 : index
    %c0_104 = arith.constant 0 : index
    %92 = vector.load %arg19[%c0_103, %c0_104] : memref<78x144xf32, #tpu.memory_space<vmem>>, vector<78x144xf32>
    %c0_105 = arith.constant 0 : index
    %c0_106 = arith.constant 0 : index
    %93 = vector.load %arg4[%c0_105, %c0_106] : memref<144x32xf32, #tpu.memory_space<vmem>>, vector<144x32xf32>
    %cst_107 = arith.constant dense<0.000000e+00> : vector<78x32xf32>
    %94 = tpu.matmul %92, %93, %cst_107 {dimension_numbers = #tpu.dot_dimension_numbers<[1], [0], [0], [1], [0, 0, 1, 1], [], []>} : vector<78x144xf32>, vector<144x32xf32>, vector<78x32xf32> -> vector<78x32xf32>
    %c0_108 = arith.constant 0 : index
    %c0_109 = arith.constant 0 : index
    %95 = vector.load %arg5[%c0_108, %c0_109] : memref<1x32xf32, #tpu.memory_space<vmem>>, vector<1x32xf32>
    %96 = vector.broadcast %95 : vector<1x32xf32> to vector<78x32xf32>
    %97 = arith.addf %94, %96 : vector<78x32xf32>
    %cst_110 = arith.constant 0.000000e+00 : f32
    %98 = vector.broadcast %cst_110 : f32 to vector<78x32xf32>
    %99 = arith.maximumf %97, %98 : vector<78x32xf32>
    %c0_111 = arith.constant 0 : index
    %c0_112 = arith.constant 0 : index
    %100 = vector.load %arg20[%c0_111, %c0_112] : memref<78x32xf32, #tpu.memory_space<vmem>>, vector<78x32xf32>
    tpu.vector_store %arg20[%c0_111, %c0_112], %99 {strides = array<i32>} : memref<78x32xf32, #tpu.memory_space<vmem>>, vector<78x32xf32>,
    %cst_113 = arith.constant 0.000000e+00 : f32
    %101 = vector.broadcast %cst_113 : f32 to vector<36x32xf32>
    %c0_114 = arith.constant 0 : index
    %c0_115 = arith.constant 0 : index
    %102 = vector.load %arg22[%c0_114, %c0_115] : memref<36x32xf32, #tpu.memory_space<vmem>>, vector<36x32xf32>
    tpu.vector_store %arg22[%c0_114, %c0_115], %101 {strides = array<i32>} : memref<36x32xf32, #tpu.memory_space<vmem>>, vector<36x32xf32>,
    %c0_116 = arith.constant 0 : index
    %c0_117 = arith.constant 0 : index
    %103 = tpu.strided_load %arg20[%c0_116, %c0_117] {strides = array<i32: 2, 1>} : memref<78x32xf32, #tpu.memory_space<vmem>>, vector<39x32xf32>
    %c1_118 = arith.constant 1 : index
    %c0_119 = arith.constant 0 : index
    %104 = tpu.strided_load %arg20[%c1_118, %c0_119] {strides = array<i32: 2, 1>} : memref<78x32xf32, #tpu.memory_space<vmem>>, vector<39x32xf32>
    %105 = arith.maximumf %103, %104 : vector<39x32xf32>
    %c0_120 = arith.constant 0 : index
    %c0_121 = arith.constant 0 : index
    %106 = vector.load %arg21[%c0_120, %c0_121] : memref<39x32xf32, #tpu.memory_space<vmem>>, vector<39x32xf32>
    tpu.vector_store %arg21[%c0_120, %c0_121], %105 {strides = array<i32>} : memref<39x32xf32, #tpu.memory_space<vmem>>, vector<39x32xf32>,
    %c0_122 = arith.constant 0 : index
    %c0_123 = arith.constant 0 : index
    %107 = vector.load %arg21[%c0_122, %c0_123] : memref<39x32xf32, #tpu.memory_space<vmem>>, vector<4x32xf32>
    %c5 = arith.constant 5 : index
    %c0_124 = arith.constant 0 : index
    %108 = vector.load %arg21[%c5, %c0_124] : memref<39x32xf32, #tpu.memory_space<vmem>>, vector<4x32xf32>
    %109 = arith.maximumf %107, %108 : vector<4x32xf32>
    %c7 = arith.constant 7 : index
    %c0_125 = arith.constant 0 : index
    %110 = vector.load %arg22[%c7, %c0_125] : memref<36x32xf32, #tpu.memory_space<vmem>>, vector<4x32xf32>
    tpu.vector_store %arg22[%c7, %c0_125], %109 {strides = array<i32>} : memref<36x32xf32, #tpu.memory_space<vmem>>, vector<4x32xf32>,
    %c10_126 = arith.constant 10 : index
    %c0_127 = arith.constant 0 : index
    %111 = vector.load %arg21[%c10_126, %c0_127] : memref<39x32xf32, #tpu.memory_space<vmem>>, vector<4x32xf32>
    %c15 = arith.constant 15 : index
    %c0_128 = arith.constant 0 : index
    %112 = vector.load %arg21[%c15, %c0_128] : memref<39x32xf32, #tpu.memory_space<vmem>>, vector<4x32xf32>
    %113 = arith.maximumf %111, %112 : vector<4x32xf32>
    %c13 = arith.constant 13 : index
    %c0_129 = arith.constant 0 : index
    %114 = vector.load %arg22[%c13, %c0_129] : memref<36x32xf32, #tpu.memory_space<vmem>>, vector<4x32xf32>
    tpu.vector_store %arg22[%c13, %c0_129], %113 {strides = array<i32>} : memref<36x32xf32, #tpu.memory_space<vmem>>, vector<4x32xf32>,
    %c20_130 = arith.constant 20 : index
    %c0_131 = arith.constant 0 : index
    %115 = vector.load %arg21[%c20_130, %c0_131] : memref<39x32xf32, #tpu.memory_space<vmem>>, vector<4x32xf32>
    %c25 = arith.constant 25 : index
    %c0_132 = arith.constant 0 : index
    %116 = vector.load %arg21[%c25, %c0_132] : memref<39x32xf32, #tpu.memory_space<vmem>>, vector<4x32xf32>
    %117 = arith.maximumf %115, %116 : vector<4x32xf32>
    %c19_133 = arith.constant 19 : index
    %c0_134 = arith.constant 0 : index
    %118 = vector.load %arg22[%c19_133, %c0_134] : memref<36x32xf32, #tpu.memory_space<vmem>>, vector<4x32xf32>
    tpu.vector_store %arg22[%c19_133, %c0_134], %117 {strides = array<i32>} : memref<36x32xf32, #tpu.memory_space<vmem>>, vector<4x32xf32>,
    %c30 = arith.constant 30 : index
    %c0_135 = arith.constant 0 : index
    %119 = vector.load %arg21[%c30, %c0_135] : memref<39x32xf32, #tpu.memory_space<vmem>>, vector<4x32xf32>
    %c35 = arith.constant 35 : index
    %c0_136 = arith.constant 0 : index
    %120 = vector.load %arg21[%c35, %c0_136] : memref<39x32xf32, #tpu.memory_space<vmem>>, vector<4x32xf32>
    %121 = arith.maximumf %119, %120 : vector<4x32xf32>
    %c25_137 = arith.constant 25 : index
    %c0_138 = arith.constant 0 : index
    %122 = vector.load %arg22[%c25_137, %c0_138] : memref<36x32xf32, #tpu.memory_space<vmem>>, vector<4x32xf32>
    tpu.vector_store %arg22[%c25_137, %c0_138], %121 {strides = array<i32>} : memref<36x32xf32, #tpu.memory_space<vmem>>, vector<4x32xf32>,
    %c0_139 = arith.constant 0 : index
    %c0_140 = arith.constant 0 : index
    %123 = vector.load %arg22[%c0_139, %c0_140] : memref<36x32xf32, #tpu.memory_space<vmem>>, vector<22x32xf32>
    %c0_141 = arith.constant 0 : index
    %c0_142 = arith.constant 0 : index
    %124 = vector.load %arg23[%c0_141, %c0_142] : memref<22x288xf32, #tpu.memory_space<vmem>>, vector<22x32xf32>
    tpu.vector_store %arg23[%c0_141, %c0_142], %123 {strides = array<i32>} : memref<22x288xf32, #tpu.memory_space<vmem>>, vector<22x32xf32>,
    %c1_143 = arith.constant 1 : index
    %c0_144 = arith.constant 0 : index
    %125 = vector.load %arg22[%c1_143, %c0_144] : memref<36x32xf32, #tpu.memory_space<vmem>>, vector<22x32xf32>
    %c0_145 = arith.constant 0 : index
    %c32_146 = arith.constant 32 : index
    %126 = vector.load %arg23[%c0_145, %c32_146] : memref<22x288xf32, #tpu.memory_space<vmem>>, vector<22x32xf32>
    tpu.vector_store %arg23[%c0_145, %c32_146], %125 {strides = array<i32>} : memref<22x288xf32, #tpu.memory_space<vmem>>, vector<22x32xf32>,
    %c2_147 = arith.constant 2 : index
    %c0_148 = arith.constant 0 : index
    %127 = vector.load %arg22[%c2_147, %c0_148] : memref<36x32xf32, #tpu.memory_space<vmem>>, vector<22x32xf32>
    %c0_149 = arith.constant 0 : index
    %c64_150 = arith.constant 64 : index
    %128 = vector.load %arg23[%c0_149, %c64_150] : memref<22x288xf32, #tpu.memory_space<vmem>>, vector<22x32xf32>
    tpu.vector_store %arg23[%c0_149, %c64_150], %127 {strides = array<i32>} : memref<22x288xf32, #tpu.memory_space<vmem>>, vector<22x32xf32>,
    %c6 = arith.constant 6 : index
    %c0_151 = arith.constant 0 : index
    %129 = vector.load %arg22[%c6, %c0_151] : memref<36x32xf32, #tpu.memory_space<vmem>>, vector<22x32xf32>
    %c0_152 = arith.constant 0 : index
    %c96_153 = arith.constant 96 : index
    %130 = vector.load %arg23[%c0_152, %c96_153] : memref<22x288xf32, #tpu.memory_space<vmem>>, vector<22x32xf32>
    tpu.vector_store %arg23[%c0_152, %c96_153], %129 {strides = array<i32>} : memref<22x288xf32, #tpu.memory_space<vmem>>, vector<22x32xf32>,
    %c7_154 = arith.constant 7 : index
    %c0_155 = arith.constant 0 : index
    %131 = vector.load %arg22[%c7_154, %c0_155] : memref<36x32xf32, #tpu.memory_space<vmem>>, vector<22x32xf32>
    %c0_156 = arith.constant 0 : index
    %c128_157 = arith.constant 128 : index
    %132 = vector.load %arg23[%c0_156, %c128_157] : memref<22x288xf32, #tpu.memory_space<vmem>>, vector<22x32xf32>
    tpu.vector_store %arg23[%c0_156, %c128_157], %131 {strides = array<i32>} : memref<22x288xf32, #tpu.memory_space<vmem>>, vector<22x32xf32>,
    %c8_158 = arith.constant 8 : index
    %c0_159 = arith.constant 0 : index
    %133 = vector.load %arg22[%c8_158, %c0_159] : memref<36x32xf32, #tpu.memory_space<vmem>>, vector<22x32xf32>
    %c0_160 = arith.constant 0 : index
    %c160 = arith.constant 160 : index
    %134 = vector.load %arg23[%c0_160, %c160] : memref<22x288xf32, #tpu.memory_space<vmem>>, vector<22x32xf32>
    tpu.vector_store %arg23[%c0_160, %c160], %133 {strides = array<i32>} : memref<22x288xf32, #tpu.memory_space<vmem>>, vector<22x32xf32>,
    %c12_161 = arith.constant 12 : index
    %c0_162 = arith.constant 0 : index
    %135 = vector.load %arg22[%c12_161, %c0_162] : memref<36x32xf32, #tpu.memory_space<vmem>>, vector<22x32xf32>
    %c0_163 = arith.constant 0 : index
    %c192 = arith.constant 192 : index
    %136 = vector.load %arg23[%c0_163, %c192] : memref<22x288xf32, #tpu.memory_space<vmem>>, vector<22x32xf32>
    tpu.vector_store %arg23[%c0_163, %c192], %135 {strides = array<i32>} : memref<22x288xf32, #tpu.memory_space<vmem>>, vector<22x32xf32>,
    %c13_164 = arith.constant 13 : index
    %c0_165 = arith.constant 0 : index
    %137 = vector.load %arg22[%c13_164, %c0_165] : memref<36x32xf32, #tpu.memory_space<vmem>>, vector<22x32xf32>
    %c0_166 = arith.constant 0 : index
    %c224 = arith.constant 224 : index
    %138 = vector.load %arg23[%c0_166, %c224] : memref<22x288xf32, #tpu.memory_space<vmem>>, vector<22x32xf32>
    tpu.vector_store %arg23[%c0_166, %c224], %137 {strides = array<i32>} : memref<22x288xf32, #tpu.memory_space<vmem>>, vector<22x32xf32>,
    %c14 = arith.constant 14 : index
    %c0_167 = arith.constant 0 : index
    %139 = vector.load %arg22[%c14, %c0_167] : memref<36x32xf32, #tpu.memory_space<vmem>>, vector<22x32xf32>
    %c0_168 = arith.constant 0 : index
    %c256 = arith.constant 256 : index
    %140 = vector.load %arg23[%c0_168, %c256] : memref<22x288xf32, #tpu.memory_space<vmem>>, vector<22x32xf32>
    tpu.vector_store %arg23[%c0_168, %c256], %139 {strides = array<i32>} : memref<22x288xf32, #tpu.memory_space<vmem>>, vector<22x32xf32>,
    %c0_169 = arith.constant 0 : index
    %c0_170 = arith.constant 0 : index
    %141 = vector.load %arg23[%c0_169, %c0_170] : memref<22x288xf32, #tpu.memory_space<vmem>>, vector<22x288xf32>
    %c0_171 = arith.constant 0 : index
    %c0_172 = arith.constant 0 : index
    %142 = vector.load %arg6[%c0_171, %c0_172] : memref<288x64xf32, #tpu.memory_space<vmem>>, vector<288x64xf32>
    %cst_173 = arith.constant dense<0.000000e+00> : vector<22x64xf32>
    %143 = tpu.matmul %141, %142, %cst_173 {dimension_numbers = #tpu.dot_dimension_numbers<[1], [0], [0], [1], [0, 0, 1, 1], [], []>} : vector<22x288xf32>, vector<288x64xf32>, vector<22x64xf32> -> vector<22x64xf32>
    %c0_174 = arith.constant 0 : index
    %c0_175 = arith.constant 0 : index
    %144 = vector.load %arg7[%c0_174, %c0_175] : memref<1x64xf32, #tpu.memory_space<vmem>>, vector<1x64xf32>
    %145 = vector.broadcast %144 : vector<1x64xf32> to vector<22x64xf32>
    %146 = arith.addf %143, %145 : vector<22x64xf32>
    %cst_176 = arith.constant 0.000000e+00 : f32
    %147 = vector.broadcast %cst_176 : f32 to vector<22x64xf32>
    %148 = arith.maximumf %146, %147 : vector<22x64xf32>
    %c0_177 = arith.constant 0 : index
    %c0_178 = arith.constant 0 : index
    %149 = vector.load %arg24[%c0_177, %c0_178] : memref<22x64xf32, #tpu.memory_space<vmem>>, vector<22x64xf32>
    tpu.vector_store %arg24[%c0_177, %c0_178], %148 {strides = array<i32>} : memref<22x64xf32, #tpu.memory_space<vmem>>, vector<22x64xf32>,
    %cst_179 = arith.constant 0.000000e+00 : f32
    %150 = vector.broadcast %cst_179 : f32 to vector<16x64xf32>
    %c0_180 = arith.constant 0 : index
    %c0_181 = arith.constant 0 : index
    %151 = vector.load %arg26[%c0_180, %c0_181] : memref<16x64xf32, #tpu.memory_space<vmem>>, vector<16x64xf32>
    tpu.vector_store %arg26[%c0_180, %c0_181], %150 {strides = array<i32>} : memref<16x64xf32, #tpu.memory_space<vmem>>, vector<16x64xf32>,
    %c0_182 = arith.constant 0 : index
    %c0_183 = arith.constant 0 : index
    %152 = tpu.strided_load %arg24[%c0_182, %c0_183] {strides = array<i32: 2, 1>} : memref<22x64xf32, #tpu.memory_space<vmem>>, vector<11x64xf32>
    %c1_184 = arith.constant 1 : index
    %c0_185 = arith.constant 0 : index
    %153 = tpu.strided_load %arg24[%c1_184, %c0_185] {strides = array<i32: 2, 1>} : memref<22x64xf32, #tpu.memory_space<vmem>>, vector<11x64xf32>
    %154 = arith.maximumf %152, %153 : vector<11x64xf32>
    %c0_186 = arith.constant 0 : index
    %c0_187 = arith.constant 0 : index
    %155 = vector.load %arg25[%c0_186, %c0_187] : memref<11x64xf32, #tpu.memory_space<vmem>>, vector<11x64xf32>
    tpu.vector_store %arg25[%c0_186, %c0_187], %154 {strides = array<i32>} : memref<11x64xf32, #tpu.memory_space<vmem>>, vector<11x64xf32>,
    %c0_188 = arith.constant 0 : index
    %c0_189 = arith.constant 0 : index
    %156 = vector.load %arg25[%c0_188, %c0_189] : memref<11x64xf32, #tpu.memory_space<vmem>>, vector<2x64xf32>
    %c3 = arith.constant 3 : index
    %c0_190 = arith.constant 0 : index
    %157 = vector.load %arg25[%c3, %c0_190] : memref<11x64xf32, #tpu.memory_space<vmem>>, vector<2x64xf32>
    %158 = arith.maximumf %156, %157 : vector<2x64xf32>
    %c5_191 = arith.constant 5 : index
    %c0_192 = arith.constant 0 : index
    %159 = vector.load %arg26[%c5_191, %c0_192] : memref<16x64xf32, #tpu.memory_space<vmem>>, vector<2x64xf32>
    tpu.vector_store %arg26[%c5_191, %c0_192], %158 {strides = array<i32>} : memref<16x64xf32, #tpu.memory_space<vmem>>, vector<2x64xf32>,
    %c6_193 = arith.constant 6 : index
    %c0_194 = arith.constant 0 : index
    %160 = vector.load %arg25[%c6_193, %c0_194] : memref<11x64xf32, #tpu.memory_space<vmem>>, vector<2x64xf32>
    %c9_195 = arith.constant 9 : index
    %c0_196 = arith.constant 0 : index
    %161 = vector.load %arg25[%c9_195, %c0_196] : memref<11x64xf32, #tpu.memory_space<vmem>>, vector<2x64xf32>
    %162 = arith.maximumf %160, %161 : vector<2x64xf32>
    %c9_197 = arith.constant 9 : index
    %c0_198 = arith.constant 0 : index
    %163 = vector.load %arg26[%c9_197, %c0_198] : memref<16x64xf32, #tpu.memory_space<vmem>>, vector<2x64xf32>
    tpu.vector_store %arg26[%c9_197, %c0_198], %162 {strides = array<i32>} : memref<16x64xf32, #tpu.memory_space<vmem>>, vector<2x64xf32>,
    %c0_199 = arith.constant 0 : index
    %c0_200 = arith.constant 0 : index
    %164 = vector.load %arg26[%c0_199, %c0_200] : memref<16x64xf32, #tpu.memory_space<vmem>>, vector<6x64xf32>
    %c0_201 = arith.constant 0 : index
    %c0_202 = arith.constant 0 : index
    %165 = vector.load %arg27[%c0_201, %c0_202] : memref<6x576xf32, #tpu.memory_space<vmem>>, vector<6x64xf32>
    tpu.vector_store %arg27[%c0_201, %c0_202], %164 {strides = array<i32>} : memref<6x576xf32, #tpu.memory_space<vmem>>, vector<6x64xf32>,
    %c1_203 = arith.constant 1 : index
    %c0_204 = arith.constant 0 : index
    %166 = vector.load %arg26[%c1_203, %c0_204] : memref<16x64xf32, #tpu.memory_space<vmem>>, vector<6x64xf32>
    %c0_205 = arith.constant 0 : index
    %c64_206 = arith.constant 64 : index
    %167 = vector.load %arg27[%c0_205, %c64_206] : memref<6x576xf32, #tpu.memory_space<vmem>>, vector<6x64xf32>
    tpu.vector_store %arg27[%c0_205, %c64_206], %166 {strides = array<i32>} : memref<6x576xf32, #tpu.memory_space<vmem>>, vector<6x64xf32>,
    %c2_207 = arith.constant 2 : index
    %c0_208 = arith.constant 0 : index
    %168 = vector.load %arg26[%c2_207, %c0_208] : memref<16x64xf32, #tpu.memory_space<vmem>>, vector<6x64xf32>
    %c0_209 = arith.constant 0 : index
    %c128_210 = arith.constant 128 : index
    %169 = vector.load %arg27[%c0_209, %c128_210] : memref<6x576xf32, #tpu.memory_space<vmem>>, vector<6x64xf32>
    tpu.vector_store %arg27[%c0_209, %c128_210], %168 {strides = array<i32>} : memref<6x576xf32, #tpu.memory_space<vmem>>, vector<6x64xf32>,
    %c4_211 = arith.constant 4 : index
    %c0_212 = arith.constant 0 : index
    %170 = vector.load %arg26[%c4_211, %c0_212] : memref<16x64xf32, #tpu.memory_space<vmem>>, vector<6x64xf32>
    %c0_213 = arith.constant 0 : index
    %c192_214 = arith.constant 192 : index
    %171 = vector.load %arg27[%c0_213, %c192_214] : memref<6x576xf32, #tpu.memory_space<vmem>>, vector<6x64xf32>
    tpu.vector_store %arg27[%c0_213, %c192_214], %170 {strides = array<i32>} : memref<6x576xf32, #tpu.memory_space<vmem>>, vector<6x64xf32>,
    %c5_215 = arith.constant 5 : index
    %c0_216 = arith.constant 0 : index
    %172 = vector.load %arg26[%c5_215, %c0_216] : memref<16x64xf32, #tpu.memory_space<vmem>>, vector<6x64xf32>
    %c0_217 = arith.constant 0 : index
    %c256_218 = arith.constant 256 : index
    %173 = vector.load %arg27[%c0_217, %c256_218] : memref<6x576xf32, #tpu.memory_space<vmem>>, vector<6x64xf32>
    tpu.vector_store %arg27[%c0_217, %c256_218], %172 {strides = array<i32>} : memref<6x576xf32, #tpu.memory_space<vmem>>, vector<6x64xf32>,
    %c6_219 = arith.constant 6 : index
    %c0_220 = arith.constant 0 : index
    %174 = vector.load %arg26[%c6_219, %c0_220] : memref<16x64xf32, #tpu.memory_space<vmem>>, vector<6x64xf32>
    %c0_221 = arith.constant 0 : index
    %c320 = arith.constant 320 : index
    %175 = vector.load %arg27[%c0_221, %c320] : memref<6x576xf32, #tpu.memory_space<vmem>>, vector<6x64xf32>
    tpu.vector_store %arg27[%c0_221, %c320], %174 {strides = array<i32>} : memref<6x576xf32, #tpu.memory_space<vmem>>, vector<6x64xf32>,
    %c8_222 = arith.constant 8 : index
    %c0_223 = arith.constant 0 : index
    %176 = vector.load %arg26[%c8_222, %c0_223] : memref<16x64xf32, #tpu.memory_space<vmem>>, vector<6x64xf32>
    %c0_224 = arith.constant 0 : index
    %c384 = arith.constant 384 : index
    %177 = vector.load %arg27[%c0_224, %c384] : memref<6x576xf32, #tpu.memory_space<vmem>>, vector<6x64xf32>
    tpu.vector_store %arg27[%c0_224, %c384], %176 {strides = array<i32>} : memref<6x576xf32, #tpu.memory_space<vmem>>, vector<6x64xf32>,
    %c9_225 = arith.constant 9 : index
    %c0_226 = arith.constant 0 : index
    %178 = vector.load %arg26[%c9_225, %c0_226] : memref<16x64xf32, #tpu.memory_space<vmem>>, vector<6x64xf32>
    %c0_227 = arith.constant 0 : index
    %c448 = arith.constant 448 : index
    %179 = vector.load %arg27[%c0_227, %c448] : memref<6x576xf32, #tpu.memory_space<vmem>>, vector<6x64xf32>
    tpu.vector_store %arg27[%c0_227, %c448], %178 {strides = array<i32>} : memref<6x576xf32, #tpu.memory_space<vmem>>, vector<6x64xf32>,
    %c10_228 = arith.constant 10 : index
    %c0_229 = arith.constant 0 : index
    %180 = vector.load %arg26[%c10_228, %c0_229] : memref<16x64xf32, #tpu.memory_space<vmem>>, vector<6x64xf32>
    %c0_230 = arith.constant 0 : index
    %c512 = arith.constant 512 : index
    %181 = vector.load %arg27[%c0_230, %c512] : memref<6x576xf32, #tpu.memory_space<vmem>>, vector<6x64xf32>
    tpu.vector_store %arg27[%c0_230, %c512], %180 {strides = array<i32>} : memref<6x576xf32, #tpu.memory_space<vmem>>, vector<6x64xf32>,
    %c0_231 = arith.constant 0 : index
    %c0_232 = arith.constant 0 : index
    %182 = vector.load %arg27[%c0_231, %c0_232] : memref<6x576xf32, #tpu.memory_space<vmem>>, vector<6x576xf32>
    %c0_233 = arith.constant 0 : index
    %c0_234 = arith.constant 0 : index
    %183 = vector.load %arg8[%c0_233, %c0_234] : memref<576x128xf32, #tpu.memory_space<vmem>>, vector<576x128xf32>
    %cst_235 = arith.constant dense<0.000000e+00> : vector<6x128xf32>
    %184 = tpu.matmul %182, %183, %cst_235 {dimension_numbers = #tpu.dot_dimension_numbers<[1], [0], [0], [1], [0, 0, 1, 1], [], []>} : vector<6x576xf32>, vector<576x128xf32>, vector<6x128xf32> -> vector<6x128xf32>
    %c0_236 = arith.constant 0 : index
    %c0_237 = arith.constant 0 : index
    %185 = vector.load %arg9[%c0_236, %c0_237] : memref<1x128xf32, #tpu.memory_space<vmem>>, vector<1x128xf32>
    %186 = vector.broadcast %185 : vector<1x128xf32> to vector<6x128xf32>
    %187 = arith.addf %184, %186 : vector<6x128xf32>
    %cst_238 = arith.constant 0.000000e+00 : f32
    %188 = vector.broadcast %cst_238 : f32 to vector<6x128xf32>
    %189 = arith.maximumf %187, %188 : vector<6x128xf32>
    %190 = vector.extract_strided_slice %189 {offsets = [0, 0], sizes = [1, 128], strides = [1, 1]} : vector<6x128xf32> to vector<1x128xf32>
    %191 = vector.extract_strided_slice %189 {offsets = [1, 0], sizes = [1, 128], strides = [1, 1]} : vector<6x128xf32> to vector<1x128xf32>
    %192 = arith.addf %190, %191 : vector<1x128xf32>
    %193 = vector.extract_strided_slice %189 {offsets = [4, 0], sizes = [1, 128], strides = [1, 1]} : vector<6x128xf32> to vector<1x128xf32>
    %194 = arith.addf %192, %193 : vector<1x128xf32>
    %195 = vector.extract_strided_slice %189 {offsets = [5, 0], sizes = [1, 128], strides = [1, 1]} : vector<6x128xf32> to vector<1x128xf32>
    %196 = arith.addf %194, %195 : vector<1x128xf32>
    %cst_239 = arith.constant 2.500000e-01 : f32
    %197 = vector.broadcast %cst_239 : f32 to vector<1x128xf32>
    %198 = arith.mulf %196, %197 : vector<1x128xf32>
    %c0_240 = arith.constant 0 : index
    %c0_241 = arith.constant 0 : index
    %199 = vector.load %arg10[%c0_240, %c0_241] : memref<128x64xf32, #tpu.memory_space<vmem>>, vector<128x64xf32>
    %cst_242 = arith.constant dense<0.000000e+00> : vector<1x64xf32>
    %200 = tpu.matmul %198, %199, %cst_242 {dimension_numbers = #tpu.dot_dimension_numbers<[1], [0], [0], [1], [0, 0, 1, 1], [], []>} : vector<1x128xf32>, vector<128x64xf32>, vector<1x64xf32> -> vector<1x64xf32>
    %c0_243 = arith.constant 0 : index
    %c0_244 = arith.constant 0 : index
    %201 = vector.load %arg11[%c0_243, %c0_244] : memref<1x64xf32, #tpu.memory_space<vmem>>, vector<1x64xf32>
    %202 = arith.addf %200, %201 : vector<1x64xf32>
    %cst_245 = arith.constant 0.000000e+00 : f32
    %203 = vector.broadcast %cst_245 : f32 to vector<1x64xf32>
    %204 = arith.maximumf %202, %203 : vector<1x64xf32>
    %c0_246 = arith.constant 0 : index
    %c0_247 = arith.constant 0 : index
    %205 = vector.load %arg12[%c0_246, %c0_247] : memref<64x16xf32, #tpu.memory_space<vmem>>, vector<64x16xf32>
    %cst_248 = arith.constant dense<0.000000e+00> : vector<1x16xf32>
    %206 = tpu.matmul %204, %205, %cst_248 {dimension_numbers = #tpu.dot_dimension_numbers<[1], [0], [0], [1], [0, 0, 1, 1], [], []>} : vector<1x64xf32>, vector<64x16xf32>, vector<1x16xf32> -> vector<1x16xf32>
    %c0_249 = arith.constant 0 : index
    %c0_250 = arith.constant 0 : index
    %207 = vector.load %arg13[%c0_249, %c0_250] : memref<1x16xf32, #tpu.memory_space<vmem>>, vector<1x16xf32>
    %208 = arith.addf %206, %207 : vector<1x16xf32>
    %c0_251 = arith.constant 0 : index
    %c0_252 = arith.constant 0 : index
    %c0_253 = arith.constant 0 : index
    %209 = vector.load %arg14[%c0_251, %c0_252, %c0_253] : memref<1x1x16xf32, #tpu.memory_space<vmem>>, vector<1x1x16xf32>
    %210 = vector.shape_cast %209 : vector<1x1x16xf32> to vector<1x16xf32>
    %211 = vector.shape_cast %208 : vector<1x16xf32> to vector<1x1x16xf32>
    tpu.vector_store %arg14[%c0_251, %c0_252, %c0_253], %211 {strides = array<i32>} : memref<1x1x16xf32, #tpu.memory_space<vmem>>, vector<1x1x16xf32>,
    return
  }
  func.func @transform_0(%arg0: i32) -> (i32, i32, i32) {
    %c0_i32 = arith.constant 0 : i32
    %c0_i32_0 = arith.constant 0 : i32
    %c0_i32_1 = arith.constant 0 : i32
    return %arg0, %c0_i32, %c0_i32_0 : i32, i32, i32
  }
  func.func @transform_1(%arg0: i32) -> (i32, i32) {
    %c0_i32 = arith.constant 0 : i32
    %c0_i32_0 = arith.constant 0 : i32
    %c0_i32_1 = arith.constant 0 : i32
    return %c0_i32, %c0_i32_0 : i32, i32
  }
  func.func @transform_2(%arg0: i32) -> (i32, i32) {
    %c0_i32 = arith.constant 0 : i32
    %c0_i32_0 = arith.constant 0 : i32
    %c0_i32_1 = arith.constant 0 : i32
    return %c0_i32, %c0_i32_0 : i32, i32
  }
  func.func @transform_3(%arg0: i32) -> (i32, i32) {
    %c0_i32 = arith.constant 0 : i32
    %c0_i32_0 = arith.constant 0 : i32
    %c0_i32_1 = arith.constant 0 : i32
    return %c0_i32, %c0_i32_0 : i32, i32
  }
  func.func @transform_4(%arg0: i32) -> (i32, i32) {
    %c0_i32 = arith.constant 0 : i32
    %c0_i32_0 = arith.constant 0 : i32
    %c0_i32_1 = arith.constant 0 : i32
    return %c0_i32, %c0_i32_0 : i32, i32
  }
  func.func @transform_5(%arg0: i32) -> (i32, i32) {
    %c0_i32 = arith.constant 0 : i32
    %c0_i32_0 = arith.constant 0 : i32
    %c0_i32_1 = arith.constant 0 : i32
    return %c0_i32, %c0_i32_0 : i32, i32
  }
  func.func @transform_6(%arg0: i32) -> (i32, i32) {
    %c0_i32 = arith.constant 0 : i32
    %c0_i32_0 = arith.constant 0 : i32
    %c0_i32_1 = arith.constant 0 : i32
    return %c0_i32, %c0_i32_0 : i32, i32
  }
  func.func @transform_7(%arg0: i32) -> (i32, i32) {
    %c0_i32 = arith.constant 0 : i32
    %c0_i32_0 = arith.constant 0 : i32
    %c0_i32_1 = arith.constant 0 : i32
    return %c0_i32, %c0_i32_0 : i32, i32
  }
  func.func @transform_8(%arg0: i32) -> (i32, i32) {
    %c0_i32 = arith.constant 0 : i32
    %c0_i32_0 = arith.constant 0 : i32
    %c0_i32_1 = arith.constant 0 : i32
    return %c0_i32, %c0_i32_0 : i32, i32
  }
  func.func @transform_9(%arg0: i32) -> (i32, i32) {
    %c0_i32 = arith.constant 0 : i32
    %c0_i32_0 = arith.constant 0 : i32
    %c0_i32_1 = arith.constant 0 : i32
    return %c0_i32, %c0_i32_0 : i32, i32
  }
  func.func @transform_10(%arg0: i32) -> (i32, i32) {
    %c0_i32 = arith.constant 0 : i32
    %c0_i32_0 = arith.constant 0 : i32
    %c0_i32_1 = arith.constant 0 : i32
    return %c0_i32, %c0_i32_0 : i32, i32
  }
  func.func @transform_11(%arg0: i32) -> (i32, i32) {
    %c0_i32 = arith.constant 0 : i32
    %c0_i32_0 = arith.constant 0 : i32
    %c0_i32_1 = arith.constant 0 : i32
    return %c0_i32, %c0_i32_0 : i32, i32
  }
  func.func @transform_12(%arg0: i32) -> (i32, i32) {
    %c0_i32 = arith.constant 0 : i32
    %c0_i32_0 = arith.constant 0 : i32
    %c0_i32_1 = arith.constant 0 : i32
    return %c0_i32, %c0_i32_0 : i32, i32
  }
  func.func @transform_13(%arg0: i32) -> (i32, i32, i32) {
    %c0_i32 = arith.constant 0 : i32
    %c0_i32_0 = arith.constant 0 : i32
    %c0_i32_1 = arith.constant 0 : i32
    return %arg0, %c0_i32, %c0_i32_0 : i32, i32, i32
  }
}

</mosaic_0001>

<bundles_post_ra>
// kernel: forward.1
= control target key start
LH: loop header
LB: loop body
LE: loop exit
PB: predicated region body
PF: predicated region fallthrough
CT: control target
= control target key end

     0   :  { %s5292_s25 = smov 0   ;;  %s7232_s0 = inlined_call_operand.vmem [shape: f32[2,324,4], index: 0, kind: input, shape index: {}]   ;;  %s7233_s1 = inlined_call_operand.vmem [shape: f32[36,16], index: 1, kind: input, shape index: {}]   ;;  %s7234_s2 = inlined_call_operand.vmem [shape: f32[1,16], index: 2, kind: input, shape index: {}]   ;;  %s7235_s3 = inlined_call_operand.vmem [shape: f32[144,32], index: 3, kind: input, shape index: {}]   ;;  %s7236_s4 = inlined_call_operand.vmem [shape: f32[1,32], index: 4, kind: input, shape index: {}]   ;;  %s7237_s5 = inlined_call_operand.vmem [shape: f32[288,64], index: 5, kind: input, shape index: {}]   ;;  %s7238_s6 = inlined_call_operand.vmem [shape: f32[1,64], index: 6, kind: input, shape index: {}]   ;;  %s7239_s7 = inlined_call_operand.vmem [shape: f32[576,128], index: 7, kind: input, shape index: {}]   ;;  %s7240_s8 = inlined_call_operand.vmem [shape: f32[1,128], index: 8, kind: input, shape index: {}]   ;;  %s7241_s9 = inlined_call_operand.vmem [shape: f32[128,64], index: 9, kind: input, shape index: {}]   ;;  %s7242_s10 = inlined_call_operand.vmem [shape: f32[1,64], index: 10, kind: input, shape index: {}]   ;;  %s7243_s11 = inlined_call_operand.vmem [shape: f32[64,16], index: 11, kind: input, shape index: {}]   ;;  %s7244_s12 = inlined_call_operand.vmem [shape: f32[1,16], index: 12, kind: input, shape index: {}]   ;;  %s7245_s13 = inlined_call_operand.vmem [shape: f32[2,1,16], index: 13, kind: output, shape index: {}]  }
   0x1 LB: > { %s4574_s26 = sadd.s32 4294967295, %s5204_s25   ;;  %p4578_p0 = scmp.ge.s32.totalorder %s5204_s25, 1  ;;  %s5204_s25 = sphi %s5292_s25, %s23_s25  }
   0x2   : > { %p387_p1 = scmp.lt.s32.totalorder %s5204_s25, 3 }
   0x4   : > { %p388_p2 = pnand %p4578_p0, %p387_p1 }
   0x5   : > { %p429_p3 = scmp.lt.s32.totalorder (!%p388_p2), %s4574_s26, 1  ;;  %s5206_s14 = smov (!%p388_p2), 8   ;;  %vm473_vm0 = vcmask (!%p388_p2), 31744   ;;  %v2291_v21 = vld [vmem:[%s7233_s1] sm:$0xff] (!%p388_p2)  ;;  %v2292_v22 = vld [vmem:[%s7233_s1 + $0x8] sm:$0xff] (!%p388_p2)  ;;  %v2293_v26 = vld [vmem:[%s7233_s1 + $0x10] sm:$0xff] (!%p388_p2) }
   0x6   : > { %391 = sbr.rel (%p388_p2) target bundleno = 2541 (0x9ed), region = 72  ;;  %s5207_s15 = smov (!%p388_p2), 4   ;;  %v4986_v23 = vpack.c.bf16 (!%p388_p2), %v2292_v22, %v2291_v21  ;;  %v2294_v27 = vld [vmem:[%s7233_s1 + $0x18] sm:$0xff] (!%p388_p2)  ;;  %v2295_v32 = vld [vmem:[%s7233_s1 + $0x20] sm:$0xf] (!%p388_p2)  ;;  %vm2412_vm1 = vcmask (!%p388_p2), 1043456  }
   0x7   : > { %s5208_s16 = smov (!%p388_p2), 12   ;;  %s5209_s17 = smov (!%p388_p2), 16   ;;  %v4990_v28 = vpack.c.bf16 (!%p388_p2), %v2294_v27, %v2293_v26  ;;  %vm691_vm2 = vcmask (!%p388_p2), 64544   ;;  %vm909_vm3 = vcmask (!%p388_p2), 97344   ;;  %vm1127_vm4 = vcmask (!%p388_p2), 130144  }
   0x8   : > { %s5210_s18 = smov (!%p388_p2), 20   ;;  %s5211_s19 = smov (!%p388_p2), 24   ;;  %4987 = vmatprep.subr.bf16.mxu0 (!%p388_p2), %v4986_v23  ;;  %vm1345_vm5 = vcmask (!%p388_p2), 162944   ;;  %vm1563_vm6 = vcmask (!%p388_p2), 195744   ;;  %vm1781_vm7 = vcmask (!%p388_p2), 228544   ;;  %vm1999_vm8 = vcmask (!%p388_p2), 261344  }
   0x9   : > { %s5212_s24 = smov (!%p388_p2), 28   ;;  %4989 = vmatpush3.bf16.msra.mxu0 (!%p388_p2), %v4986_v23  ;;  %s5213_s21 = smov (!%p388_p2), 32   ;;  %vm2217_vm9 = vcmask (!%p388_p2), 294144   ;;  %vm2303_vm10 = vcmask (!%p388_p2), 293888   ;;  %vm2697_vm11 = vcmask (!%p388_p2), 130048   ;;  %vm509_vm12 = vcmask (!%p388_p2), 29696  }
   0xa   : > { %4991 = vmatprep.subr.bf16.mxu0 (!%p388_p2), %v4990_v28  ;;  %s5217_s29 = smov (!%p388_p2), 48   ;;  %s5219_s22 = smov (!%p388_p2), 96   ;;  %vm727_vm13 = vcmask (!%p388_p2), 62496   ;;  %vm945_vm14 = vcmask (!%p388_p2), 95296   ;;  %vm1163_vm15 = vcmask (!%p388_p2), 128096  }
   0xb   : > { %s5220_s23 = smov (!%p388_p2), 112  }
   0xd   : > { %s7247_s26 = smov (!%p429_p3, %s4574_s26), 1  ;;  %4993 = vmatpush3.bf16.msra.mxu0 %v4990_v28 }
   0xe   : > { %s5171_s27 = smul.u32 328, %s7247_s26  ;;  %4840 = vmatprep.subr.msk.mxu0 %vm2412_vm1, %v2295_v32 }
  0x10   : > { %s5306_s30 = scalar_lea.vmem %s7232_s0, %s5171_s27 }
  0x11   : > { %v729_v0 = vld [vmem:[%s5306_s30 + $0x2] sm:$0xff]  ;;  %v730_v2 = vld [vmem:[%s5306_s30 + $0xa] sm:$0xff]  ;;  %v948_v4 = vld [vmem:[%s5306_s30 + $0x1a] sm:$0xff]  ;;  %4841 = vmatpush3.msk.msra.mxu0 %vm2412_vm1, %v2295_v32  ;;  %vm1599_vm1 = vcmask 193696  }
  0x12   : > { %v511_v1 = vld [vmem:[%s5306_s30 + $0x1] sm:$0xff]  ;;  %801 = vrot.lane.b32.xlu1 %v729_v0, %s5206_s14  ;;  %v512_v3 = vld [vmem:[%s5306_s30 + $0x9] sm:$0xff]  ;;  %v947_v5 = vld [vmem:[%s5306_s30 + $0x12] sm:$0xff] }
  0x13   : > { %583 = vrot.lane.b32.xlu0 %v511_v1, %s5207_s15  ;;  %v513_v6 = vld [vmem:[%s5306_s30 + $0x11] sm:$0xff]  ;;  %v1166_v9 = vld [vmem:[%s5306_s30 + $0x1b] sm:$0xff]  ;;  %v438_v12 = vld [vmem:[%s5306_s30 + $0x8] sm:$0xff] }
  0x14   : > { %v1165_v7 = vld [vmem:[%s5306_s30 + $0x13] sm:$0xff]  ;;  %v437_v10 = vld [vmem:[%s5306_s30] sm:$0xff]  ;;  %475 = vst.msk [vmem:[#allocation2 + $0x8] sm:$0xff] %vm473_vm0, %v438_v12  ;;  %v950_v25 = vld [vmem:[%s5306_s30 + $0x2a] sm:$0xff] }
  0x15   : > { %v1383_v8 = vld [vmem:[%s5306_s30 + $0x14] sm:$0xff]  ;;  %474 = vst.msk [vmem:[#allocation2] sm:$0xff] %vm473_vm0, %v437_v10  ;;  %v1601_v15 = vld [vmem:[%s5306_s30 + $0x24] sm:$0xff]  ;;  %v1384_v16 = vld [vmem:[%s5306_s30 + $0x1c] sm:$0xff] }
  0x16   : > { %803 = vrot.lane.b32.xlu1 %v730_v2, %s5206_s14  ;;  %v514_v11 = vld [vmem:[%s5306_s30 + $0x19] sm:$0xff]  ;;  %v439_v13 = vld [vmem:[%s5306_s30 + $0x10] sm:$0xff]  ;;  %v949_v17 = vld [vmem:[%s5306_s30 + $0x22] sm:$0xff] }
  0x17   : > { %585 = vrot.lane.b32.xlu0 %v512_v3, %s5207_s15  ;;  %476 = vst.msk [vmem:[#allocation2 + $0x10] sm:$0xff] %vm473_vm0, %v439_v13  ;;  %v440_v14 = vld [vmem:[%s5306_s30 + $0x18] sm:$0xff]  ;;  %v1819_v18 = vld [vmem:[%s5306_s30 + $0x25] sm:$0xff]  ;;  %v1820_v30 = vld [vmem:[%s5306_s30 + $0x2d] sm:$0xff] }
  0x18   : > { %477 = vst.msk [vmem:[#allocation2 + $0x18] sm:$0xff] %vm473_vm0, %v440_v14  ;;  %v1602_v19 = vld [vmem:[%s5306_s30 + $0x2c] sm:$0xff]  ;;  %v441_v20 = vld [vmem:[%s5306_s30 + $0x20] sm:$0xff]  ;;  %v1603_v37 = vld [vmem:[%s5306_s30 + $0x34] sm:$0xff] }
  0x19   : > { %478 = vst.msk [vmem:[#allocation2 + $0x20] sm:$0xff] %vm473_vm0, %v441_v20  ;;  %v1167_v24 = vld [vmem:[%s5306_s30 + $0x23] sm:$0xff]  ;;  %v1168_v33 = vld [vmem:[%s5306_s30 + $0x2b] sm:$0xff]  ;;  %v1821_v39 = vld [vmem:[%s5306_s30 + $0x35] sm:$0xff] }
  0x1a   : > { %1021 = vrot.lane.b32.xlu1 %v948_v4, %s5208_s16  ;;  %v2037_v29 = vld [vmem:[%s5306_s30 + $0x26] sm:$0xff]  ;;  %v2038_v35 = vld [vmem:[%s5306_s30 + $0x2e] sm:$0xff]  ;;  %v1604_v40 = vld [vmem:[%s5306_s30 + $0x3c] sm:$0xff] }
  0x1b   : > { %1019 = vrot.lane.b32.xlu0 %v947_v5, %s5208_s16  ;;  %v442_v31 = vld [vmem:[%s5306_s30 + $0x28] sm:$0xff]  ;;  %v951_v38 = vld [vmem:[%s5306_s30 + $0x32] sm:$0xff]  ;;  %v952_v43 = vld [vmem:[%s5306_s30 + $0x3a] sm:$0xff] }
  0x1c   : > { %479 = vst.msk [vmem:[#allocation2 + $0x28] sm:$0xff] %vm473_vm0, %v442_v31  ;;  %v515_v34 = vld [vmem:[%s5306_s30 + $0x21] sm:$0xff]  ;;  %v516_v36 = vld [vmem:[%s5306_s30 + $0x29] sm:$0xff]  ;;  %v1169_v42 = vld [vmem:[%s5306_s30 + $0x33] sm:$0xff] }
  0x1d   : > { %v443_v41 = vld [vmem:[%s5306_s30 + $0x30] sm:$0xff]  ;;  %v1822_v45 = vld [vmem:[%s5306_s30 + $0x3d] sm:$0xff]  ;;  %v1823_v53 = vld [vmem:[%s5306_s30 + $0x45] sm:$0xff] }
  0x1e   : > { %587 = vrot.lane.b32.xlu1 %v513_v6, %s5207_s15  ;;  %480 = vst.msk [vmem:[#allocation2 + $0x30] sm:$0xff] %vm473_vm0, %v443_v41  ;;  %v2039_v44 = vld [vmem:[%s5306_s30 + $0x36] sm:$0xff]  ;;  %v2040_v49 = vld [vmem:[%s5306_s30 + $0x3e] sm:$0xff]  ;;  %v1606_v54 = vld [vmem:[%s5306_s30 + $0x4c] sm:$0xff] }
  0x1f   : > { %1237 = vrot.lane.b32.xlu0 %v1165_v7, %s5209_s17  ;;  %v444_v46 = vld [vmem:[%s5306_s30 + $0x38] sm:$0xff]  ;;  %v1605_v51 = vld [vmem:[%s5306_s30 + $0x44] sm:$0xff]  ;;  %v1824_v59 = vld [vmem:[%s5306_s30 + $0x4d] sm:$0xff] }
  0x20   : > { %481 = vst.msk [vmem:[#allocation2 + $0x38] sm:$0xff] %vm473_vm0, %v444_v46  ;;  %v1170_v47 = vld [vmem:[%s5306_s30 + $0x3b] sm:$0xff]  ;;  %v517_v48 = vld [vmem:[%s5306_s30 + $0x31] sm:$0xff]  ;;  %v1171_v56 = vld [vmem:[%s5306_s30 + $0x43] sm:$0xff] }
  0x21   : > { %v518_v50 = vld [vmem:[%s5306_s30 + $0x39] sm:$0xff]  ;;  %v953_v52 = vld [vmem:[%s5306_s30 + $0x42] sm:$0xff]  ;;  %v954_v57 = vld [vmem:[%s5306_s30 + $0x4a] sm:$0xff] }
  0x22   : > { %1455 = vrot.lane.b32.xlu1 %v1383_v8, %s5210_s18  ;;  %v445_v55 = vld [vmem:[%s5306_s30 + $0x40] sm:$0xff]  ;;  %v446_v60 = vld [vmem:[%s5306_s30 + $0x48] sm:$0xff]  ;;  %v1607_v3 = vld [vmem:[%s5306_s30 + $0x54] sm:$0xff] }
  0x23   : > { %1239 = vrot.lane.b32.xlu0 %v1166_v9, %s5209_s17  ;;  %482 = vst.msk [vmem:[#allocation2 + $0x40] sm:$0xff] %vm473_vm0, %v445_v55  ;;  %v2041_v58 = vld [vmem:[%s5306_s30 + $0x46] sm:$0xff]  ;;  %483 = vst.msk [vmem:[#allocation2 + $0x48] sm:$0xff] %vm473_vm0, %v446_v60  ;;  %v2042_v63 = vld [vmem:[%s5306_s30 + $0x4e] sm:$0xff] }
  0x24   : > { %v1172_v61 = vld [vmem:[%s5306_s30 + $0x4b] sm:$0xff]  ;;  %v519_v62 = vld [vmem:[%s5306_s30 + $0x41] sm:$0xff]  ;;  %v1825_v9 = vld [vmem:[%s5306_s30 + $0x55] sm:$0xff] }
  0x25   : > { %v520_v0 = vld [vmem:[%s5306_s30 + $0x49] sm:$0xff]  ;;  %v955_v6 = vld [vmem:[%s5306_s30 + $0x52] sm:$0xff]  ;;  %v1608_v10 = vld [vmem:[%s5306_s30 + $0x5c] sm:$0xff] }
  0x26   : > { %805 = vrot.lane.b32.xlu1 %v947_v5, %s5206_s14  ;;  %v1173_v14 = vld [vmem:[%s5306_s30 + $0x53] sm:$0xff]  ;;  %v1174_v23 = vld [vmem:[%s5306_s30 + $0x5b] sm:$0xff] }
  0x27   : > { %589 = vrot.lane.b32.xlu0 %v514_v11, %s5207_s15  ;;  %v447_v11 = vld [vmem:[%s5306_s30 + $0x50] sm:$0xff]  ;;  %v448_v20 = vld [vmem:[%s5306_s30 + $0x58] sm:$0xff]  ;;  %v449_v41 = vld [vmem:[%s5306_s30 + $0x60] sm:$0xff] }
  0x28   : > { %484 = vst.msk [vmem:[#allocation2 + $0x50] sm:$0xff] %vm473_vm0, %v447_v11  ;;  %485 = vst.msk [vmem:[#allocation2 + $0x58] sm:$0xff] %vm473_vm0, %v448_v20  ;;  %v2044_v27 = vld [vmem:[%s5306_s30 + $0x5e] sm:$0xff] }
  0x29   : > { %486 = vst.msk [vmem:[#allocation2 + $0x60] sm:$0xff] %vm473_vm0, %v449_v41  ;;  %v523_v55 = vld [vmem:[%s5306_s30 + $0x61] sm:$0xff] }
  0x2a   : > { %1673 = vrot.lane.b32.xlu1 %v1601_v15, %s5211_s19  ;;  %v453_v41 = vld [vmem:[%s5306_s30 + $0x80] sm:$0xff] }
  0x2b   : > { %1457 = vrot.lane.b32.xlu0 %v1384_v16, %s5210_s18  ;;  %490 = vst.msk [vmem:[#allocation2 + $0x80] sm:$0xff] %vm473_vm0, %v453_v41 }
  0x2e   : > { %1023 = vrot.lane.b32.xlu1 %v949_v17, %s5208_s16 }
  0x2f   : > { %807 = vrot.lane.b32.xlu0 %v948_v4, %s5206_s14 }
  0x32   : > { %1891 = vrot.lane.b32.xlu1 %v1819_v18, %s5212_s24  ;;  %v2043_v18 = vld [vmem:[%s5306_s30 + $0x56] sm:$0xff] }
  0x33   : > { %1675 = vrot.lane.b32.xlu0 %v1602_v19, %s5211_s19 }
  0x36   : > { %1241 = vrot.lane.b32.xlu1 %v1167_v24, %s5209_s17  ;;  %v521_v24 = vld [vmem:[%s5306_s30 + $0x51] sm:$0xff] }
  0x37   : > { %1025 = vrot.lane.b32.xlu0 %v950_v25, %s5208_s16 }
  0x3a   : > { %2109 = vrot.lane.b32.xlu1 %v2037_v29, %s5213_s21 }
  0x3b   : > { %1893 = vrot.lane.b32.xlu0 %v1820_v30, %s5212_s24  ;;  %v522_v30 = vld [vmem:[%s5306_s30 + $0x59] sm:$0xff] }
  0x3e   : > { %1243 = vrot.lane.b32.xlu1 %v1168_v33, %s5209_s17  ;;  %v1609_v33 = vld [vmem:[%s5306_s30 + $0x64] sm:$0xff] }
  0x3f   : > { %591 = vrot.lane.b32.xlu0 %v515_v34, %s5207_s15 }
  0x42   : > { %2111 = vrot.lane.b32.xlu1 %v2038_v35, %s5213_s21 }
  0x43   : > { %1459 = vrot.lane.b32.xlu0 %v1601_v15, %s5210_s18  ;;  %v956_v15 = vld [vmem:[%s5306_s30 + $0x5a] sm:$0xff] }
  0x46   : > { %809 = vrot.lane.b32.xlu1 %v949_v17, %s5206_s14 }
  0x47   : > { %593 = vrot.lane.b32.xlu0 %v516_v36, %s5207_s15  ;;  %v957_v36 = vld [vmem:[%s5306_s30 + $0x62] sm:$0xff] }
  0x4a   : > { %1677 = vrot.lane.b32.xlu1 %v1603_v37, %s5211_s19 }
  0x4b   : > { %1461 = vrot.lane.b32.xlu0 %v1602_v19, %s5210_s18  ;;  %v1826_v19 = vld [vmem:[%s5306_s30 + $0x5d] sm:$0xff] }
  0x4e   : > { %1027 = vrot.lane.b32.xlu1 %v951_v38, %s5208_s16 }
  0x4f   : > { %811 = vrot.lane.b32.xlu0 %v950_v25, %s5206_s14 }
  0x52   : > { %1895 = vrot.lane.b32.xlu1 %v1821_v39, %s5212_s24  ;;  %v1827_v39 = vld [vmem:[%s5306_s30 + $0x65] sm:$0xff] }
  0x53   : > { %1679 = vrot.lane.b32.xlu0 %v1604_v40, %s5211_s19 }
  0x56   : > { %1245 = vrot.lane.b32.xlu1 %v1169_v42, %s5209_s17 }
  0x57   : > { %1029 = vrot.lane.b32.xlu0 %v952_v43, %s5208_s16 }
  0x5a   : > { %2113 = vrot.lane.b32.xlu1 %v2039_v44, %s5213_s21  ;;  %v1175_v44 = vld [vmem:[%s5306_s30 + $0x63] sm:$0xff] }
  0x5b   : > { %1897 = vrot.lane.b32.xlu0 %v1822_v45, %s5212_s24  ;;  %v958_v45 = vld [vmem:[%s5306_s30 + $0x6a] sm:$0xff] }
  0x5e   : > { %1247 = vrot.lane.b32.xlu1 %v1170_v47, %s5209_s17 }
  0x5f   : > { %595 = vrot.lane.b32.xlu0 %v517_v48, %s5207_s15 }
  0x62   : > { %2115 = vrot.lane.b32.xlu1 %v2040_v49, %s5213_s21  ;;  %v2045_v49 = vld [vmem:[%s5306_s30 + $0x66] sm:$0xff] }
  0x63   : > { %1463 = vrot.lane.b32.xlu0 %v1603_v37, %s5210_s18 }
  0x66   : > { %813 = vrot.lane.b32.xlu1 %v951_v38, %s5206_s14 }
  0x67   : > { %597 = vrot.lane.b32.xlu0 %v518_v50, %s5207_s15  ;;  %v1828_v50 = vld [vmem:[%s5306_s30 + $0x6d] sm:$0xff] }
  0x6a   : > { %1681 = vrot.lane.b32.xlu1 %v1605_v51, %s5211_s19 }
  0x6b   : > { %1465 = vrot.lane.b32.xlu0 %v1604_v40, %s5210_s18  ;;  %v1610_v40 = vld [vmem:[%s5306_s30 + $0x6c] sm:$0xff] }
  0x6e   : > { %1031 = vrot.lane.b32.xlu1 %v953_v52, %s5208_s16 }
  0x6f   : > { %815 = vrot.lane.b32.xlu0 %v952_v43, %s5206_s14 }
  0x72   : > { %1899 = vrot.lane.b32.xlu1 %v1823_v53, %s5212_s24 }
  0x73   : > { %1683 = vrot.lane.b32.xlu0 %v1606_v54, %s5211_s19 }
  0x76   : > { %1249 = vrot.lane.b32.xlu1 %v1171_v56, %s5209_s17 }
  0x77   : > { %1033 = vrot.lane.b32.xlu0 %v954_v57, %s5208_s16 }
  0x7a   : > { %2117 = vrot.lane.b32.xlu1 %v2041_v58, %s5213_s21 }
  0x7b   : > { %1901 = vrot.lane.b32.xlu0 %v1824_v59, %s5212_s24  ;;  %v2046_v59 = vld [vmem:[%s5306_s30 + $0x6e] sm:$0xff] }
  0x7e   : > { %1251 = vrot.lane.b32.xlu1 %v1172_v61, %s5209_s17 }
  0x7f   : > { %599 = vrot.lane.b32.xlu0 %v519_v62, %s5207_s15  ;;  %v524_v62 = vld [vmem:[%s5306_s30 + $0x69] sm:$0xff] }
  0x82   : > { %2119 = vrot.lane.b32.xlu1 %v2042_v63, %s5213_s21 }
  0x83   : > { %1467 = vrot.lane.b32.xlu0 %v1605_v51, %s5210_s18  ;;  %v450_v51 = vld [vmem:[%s5306_s30 + $0x68] sm:$0xff] }
  0x84   : > { %v802_v1 = vpop.permute.xlu1 %801  ;;  %487 = vst.msk [vmem:[#allocation2 + $0x68] sm:$0xff] %vm473_vm0, %v450_v51  ;;  %v454_v51 = vld [vmem:[%s5306_s30 + $0x88] sm:$0xff] }
  0x85   : > { %v584_v2 = vpop.permute.xlu0 %583  ;;  %491 = vst.msk [vmem:[#allocation2 + $0x88] sm:$0xff] %vm473_vm0, %v454_v51 }
  0x86   : > { %692 = vst.msk [vmem:[#allocation2] sm:$0xff] %vm691_vm2, %v584_v2  ;;  %817 = vrot.lane.b32.xlu1 %v953_v52, %s5206_s14 }
  0x87   : > { %601 = vrot.lane.b32.xlu0 %v520_v0, %s5207_s15  ;;  %910 = vst.msk [vmem:[#allocation2] sm:$0xff] %vm909_vm3, %v802_v1  ;;  %v1611_v1 = vld [vmem:[%s5306_s30 + $0x74] sm:$0xff] }
  0x88   : > { %v804_v4 = vpop.permute.xlu1 %803 }
  0x89   : > { %v586_v5 = vpop.permute.xlu0 %585 }
  0x8a   : > { %693 = vst.msk [vmem:[#allocation2 + $0x8] sm:$0xff] %vm691_vm2, %v586_v5  ;;  %1685 = vrot.lane.b32.xlu1 %v1607_v3, %s5211_s19 }
  0x8b   : > { %1469 = vrot.lane.b32.xlu0 %v1606_v54, %s5210_s18  ;;  %911 = vst.msk [vmem:[#allocation2 + $0x8] sm:$0xff] %vm909_vm3, %v804_v4  ;;  %v1176_v54 = vld [vmem:[%s5306_s30 + $0x6b] sm:$0xff] }
  0x8c   : > { %v1022_v7 = vpop.permute.xlu1 %1021  ;;  %v959_v4 = vld [vmem:[%s5306_s30 + $0x72] sm:$0xff] }
  0x8d   : > { %v1020_v8 = vpop.permute.xlu0 %1019  ;;  %1129 = vst.msk [vmem:[#allocation2 + $0x8] sm:$0xff] %vm1127_vm4, %v1022_v7  ;;  %v1829_v7 = vld [vmem:[%s5306_s30 + $0x75] sm:$0xff] }
  0x8e   : > { %1128 = vst.msk [vmem:[#allocation2] sm:$0xff] %vm1127_vm4, %v1020_v8  ;;  %1035 = vrot.lane.b32.xlu1 %v955_v6, %s5208_s16  ;;  %v1612_v8 = vld [vmem:[%s5306_s30 + $0x7c] sm:$0xff] }
  0x8f   : > { %819 = vrot.lane.b32.xlu0 %v954_v57, %s5206_s14 }
  0x90   : > { %v588_v12 = vpop.permute.xlu1 %587 }
  0x91   : > { %v1238_v13 = vpop.permute.xlu0 %1237  ;;  %694 = vst.msk [vmem:[#allocation2 + $0x10] sm:$0xff] %vm691_vm2, %v588_v12  ;;  %v1177_v12 = vld [vmem:[%s5306_s30 + $0x73] sm:$0xff] }
  0x92   : > { %1346 = vst.msk [vmem:[#allocation2] sm:$0xff] %vm1345_vm5, %v1238_v13  ;;  %1903 = vrot.lane.b32.xlu1 %v1825_v9, %s5212_s24  ;;  %v451_v9 = vld [vmem:[%s5306_s30 + $0x70] sm:$0xff]  ;;  %v960_v13 = vld [vmem:[%s5306_s30 + $0x7a] sm:$0xff] }
  0x93   : > { %1687 = vrot.lane.b32.xlu0 %v1608_v10, %s5211_s19  ;;  %488 = vst.msk [vmem:[#allocation2 + $0x70] sm:$0xff] %vm473_vm0, %v451_v9  ;;  %v455_v9 = vld [vmem:[%s5306_s30 + $0x90] sm:$0xff] }
  0x94   : > { %v1456_v16 = vpop.permute.xlu1 %1455  ;;  %492 = vst.msk [vmem:[#allocation2 + $0x90] sm:$0xff] %vm473_vm0, %v455_v9 }
  0x95   : > { %v1240_v17 = vpop.permute.xlu0 %1239  ;;  %1564 = vst.msk [vmem:[#allocation2] sm:$0xff] %vm1563_vm6, %v1456_v16 }
  0x96   : > { %1347 = vst.msk [vmem:[#allocation2 + $0x8] sm:$0xff] %vm1345_vm5, %v1240_v17  ;;  %1253 = vrot.lane.b32.xlu1 %v1173_v14, %s5209_s17  ;;  %v2047_v17 = vld [vmem:[%s5306_s30 + $0x76] sm:$0xff] }
  0x97   : > { %1037 = vrot.lane.b32.xlu0 %v956_v15, %s5208_s16 }
  0x98   : > { %v806_v21 = vpop.permute.xlu1 %805 }
  0x99   : > { %v590_v22 = vpop.permute.xlu0 %589  ;;  %912 = vst.msk [vmem:[#allocation2 + $0x10] sm:$0xff] %vm909_vm3, %v806_v21 }
  0x9a   : > { %695 = vst.msk [vmem:[#allocation2 + $0x18] sm:$0xff] %vm691_vm2, %v590_v22  ;;  %2121 = vrot.lane.b32.xlu1 %v2043_v18, %s5213_s21  ;;  %v1830_v18 = vld [vmem:[%s5306_s30 + $0x7d] sm:$0xff] }
  0x9b   : > { %1905 = vrot.lane.b32.xlu0 %v1826_v19, %s5212_s24  ;;  %v452_v19 = vld [vmem:[%s5306_s30 + $0x78] sm:$0xff] }
  0x9c   : > { %v1674_v25 = vpop.permute.xlu1 %1673  ;;  %489 = vst.msk [vmem:[#allocation2 + $0x78] sm:$0xff] %vm473_vm0, %v452_v19  ;;  %v1178_v22 = vld [vmem:[%s5306_s30 + $0x7b] sm:$0xff] }
  0x9d   : > { %v1458_v26 = vpop.permute.xlu0 %1457  ;;  %1782 = vst.msk [vmem:[#allocation2] sm:$0xff] %vm1781_vm7, %v1674_v25 }
  0x9e   : > { %1565 = vst.msk [vmem:[#allocation2 + $0x8] sm:$0xff] %vm1563_vm6, %v1458_v26  ;;  %1255 = vrot.lane.b32.xlu1 %v1174_v23, %s5209_s17  ;;  %v525_v23 = vld [vmem:[%s5306_s30 + $0x71] sm:$0xff] }
  0x9f   : > { %603 = vrot.lane.b32.xlu0 %v521_v24, %s5207_s15 }
  0xa0   : > { %v1024_v28 = vpop.permute.xlu1 %1023 }
  0xa1   : > { %v808_v29 = vpop.permute.xlu0 %807  ;;  %1130 = vst.msk [vmem:[#allocation2 + $0x10] sm:$0xff] %vm1127_vm4, %v1024_v28 }
  0xa2   : > { %913 = vst.msk [vmem:[#allocation2 + $0x18] sm:$0xff] %vm909_vm3, %v808_v29  ;;  %2123 = vrot.lane.b32.xlu1 %v2044_v27, %s5213_s21  ;;  %v2048_v27 = vld [vmem:[%s5306_s30 + $0x7e] sm:$0xff] }
  0xa3   : > { %1471 = vrot.lane.b32.xlu0 %v1607_v3, %s5210_s18 }
  0xa4   : > { %v1892_v31 = vpop.permute.xlu1 %1891 }
  0xa5   : > { %v1676_v32 = vpop.permute.xlu0 %1675  ;;  %2000 = vst.msk [vmem:[#allocation2] sm:$0xff] %vm1999_vm8, %v1892_v31 }
  0xa6   : > { %1783 = vst.msk [vmem:[#allocation2 + $0x8] sm:$0xff] %vm1781_vm7, %v1676_v32  ;;  %821 = vrot.lane.b32.xlu1 %v955_v6, %s5206_s14 }
  0xa7   : > { %605 = vrot.lane.b32.xlu0 %v522_v30, %s5207_s15  ;;  %v526_v30 = vld [vmem:[%s5306_s30 + $0x79] sm:$0xff] }
  0xa8   : > { %v1242_v34 = vpop.permute.xlu1 %1241 }
  0xa9   : > { %v1026_v35 = vpop.permute.xlu0 %1025  ;;  %1348 = vst.msk [vmem:[#allocation2 + $0x10] sm:$0xff] %vm1345_vm5, %v1242_v34 }
  0xaa   : > { %1131 = vst.msk [vmem:[#allocation2 + $0x18] sm:$0xff] %vm1127_vm4, %v1026_v35  ;;  %1689 = vrot.lane.b32.xlu1 %v1609_v33, %s5211_s19 }
  0xab   : > { %1473 = vrot.lane.b32.xlu0 %v1608_v10, %s5210_s18 }
  0xac   : > { %v2110_v37 = vpop.permute.xlu1 %2109 }
  0xad   : > { %v1894_v38 = vpop.permute.xlu0 %1893  ;;  %2218 = vst.msk [vmem:[#allocation2] sm:$0xff] %vm2217_vm9, %v2110_v37 }
  0xae   : > { %2001 = vst.msk [vmem:[#allocation2 + $0x8] sm:$0xff] %vm1999_vm8, %v1894_v38  ;;  %1039 = vrot.lane.b32.xlu1 %v957_v36, %s5208_s16 }
  0xaf   : > { %823 = vrot.lane.b32.xlu0 %v956_v15, %s5206_s14 }
  0xb0   : > { %v1244_v42 = vpop.permute.xlu1 %1243 }
  0xb1   : > { %v592_v43 = vpop.permute.xlu0 %591  ;;  %1349 = vst.msk [vmem:[#allocation2 + $0x18] sm:$0xff] %vm1345_vm5, %v1244_v42 }
  0xb2   : > { %696 = vst.msk [vmem:[#allocation2 + $0x20] sm:$0xff] %vm691_vm2, %v592_v43  ;;  %1907 = vrot.lane.b32.xlu1 %v1827_v39, %s5212_s24  ;;  %v1831_v39 = vld [vmem:[%s5306_s30 + $0x85] sm:$0xff] }
  0xb3   : > { %1691 = vrot.lane.b32.xlu0 %v1610_v40, %s5211_s19 }
  0xb4   : > { %v2112_v46 = vpop.permute.xlu1 %2111  ;;  %v2255_v48 = vld [vmem:[#allocation2] sm:$0xff] }
  0xb5   : > { %v1460_v47 = vpop.permute.xlu0 %1459  ;;  %2219 = vst.msk [vmem:[#allocation2 + $0x8] sm:$0xff] %vm2217_vm9, %v2112_v46  ;;  %4842 = vmatprep.mubr.msk.f32.mxu0 %vm2303_vm10, %v2255_v48 }
  0xb6   : > { %1566 = vst.msk [vmem:[#allocation2 + $0x10] sm:$0xff] %vm1563_vm6, %v1460_v47  ;;  %1257 = vrot.lane.b32.xlu1 %v1175_v44, %s5209_s17  ;;  %v1179_v44 = vld [vmem:[%s5306_s30 + $0x83] sm:$0xff] }
  0xb7   : > { %1041 = vrot.lane.b32.xlu0 %v958_v45, %s5208_s16 }
  0xb8   : > { %v810_v52 = vpop.permute.xlu1 %809 }
  0xb9   : > { %v594_v53 = vpop.permute.xlu0 %593  ;;  %914 = vst.msk [vmem:[#allocation2 + $0x20] sm:$0xff] %vm909_vm3, %v810_v52 }
  0xba   : > { %697 = vst.msk [vmem:[#allocation2 + $0x28] sm:$0xff] %vm691_vm2, %v594_v53  ;;  %2125 = vrot.lane.b32.xlu1 %v2045_v49, %s5213_s21  ;;  %v2049_v49 = vld [vmem:[%s5306_s30 + $0x86] sm:$0xff] }
  0xbb   : > { %1909 = vrot.lane.b32.xlu0 %v1828_v50, %s5212_s24  ;;  %v1832_v50 = vld [vmem:[%s5306_s30 + $0x8d] sm:$0xff] }
  0xbc   : > { %v1678_v56 = vpop.permute.xlu1 %1677  ;;  %v2256_v58 = vld [vmem:[#allocation2 + $0x8] sm:$0xff] }
  0xbd   : > { %v1462_v57 = vpop.permute.xlu0 %1461  ;;  %1784 = vst.msk [vmem:[#allocation2 + $0x10] sm:$0xff] %vm1781_vm7, %v1678_v56  ;;  %4843 = vmatmul.mubr.msk.f32.vlgmr.msra.gmra.mrb[0].mxu0 %vm2303_vm10, %v2256_v58 }
  0xbe   : > { %1567 = vst.msk [vmem:[#allocation2 + $0x18] sm:$0xff] %vm1563_vm6, %v1462_v57  ;;  %1259 = vrot.lane.b32.xlu1 %v1176_v54, %s5209_s17  ;;  %v1180_v54 = vld [vmem:[%s5306_s30 + $0x8b] sm:$0xff] }
  0xbf   : > { %607 = vrot.lane.b32.xlu0 %v523_v55, %s5207_s15  ;;  %v527_v55 = vld [vmem:[%s5306_s30 + $0x81] sm:$0xff] }
  0xc0   : > { %v1028_v60 = vpop.permute.xlu1 %1027 }
  0xc1   : > { %v812_v61 = vpop.permute.xlu0 %811  ;;  %1132 = vst.msk [vmem:[#allocation2 + $0x20] sm:$0xff] %vm1127_vm4, %v1028_v60 }
  0xc2   : > { %915 = vst.msk [vmem:[#allocation2 + $0x28] sm:$0xff] %vm909_vm3, %v812_v61  ;;  %2127 = vrot.lane.b32.xlu1 %v2046_v59, %s5213_s21  ;;  %v2050_v59 = vld [vmem:[%s5306_s30 + $0x8e] sm:$0xff] }
  0xc3   : > { %1475 = vrot.lane.b32.xlu0 %v1609_v33, %s5210_s18  ;;  %v1613_v33 = vld [vmem:[%s5306_s30 + $0x84] sm:$0xff] }
  0xc4   : > { %v1896_v63 = vpop.permute.xlu1 %1895 }
  0xc5   : > { %v1680_v0 = vpop.permute.xlu0 %1679  ;;  %2002 = vst.msk [vmem:[#allocation2 + $0x10] sm:$0xff] %vm1999_vm8, %v1896_v63 }
  0xc6   : > { %1785 = vst.msk [vmem:[#allocation2 + $0x18] sm:$0xff] %vm1781_vm7, %v1680_v0  ;;  %825 = vrot.lane.b32.xlu1 %v957_v36, %s5206_s14  ;;  %v961_v36 = vld [vmem:[%s5306_s30 + $0x82] sm:$0xff] }
  0xc7   : > { %609 = vrot.lane.b32.xlu0 %v524_v62, %s5207_s15  ;;  %v528_v62 = vld [vmem:[%s5306_s30 + $0x89] sm:$0xff] }
  0xc8   : > { %v1246_v2 = vpop.permute.xlu1 %1245 }
  0xc9   : > { %v1030_v3 = vpop.permute.xlu0 %1029  ;;  %1350 = vst.msk [vmem:[#allocation2 + $0x20] sm:$0xff] %vm1345_vm5, %v1246_v2 }
  0xca   : > { %1133 = vst.msk [vmem:[#allocation2 + $0x28] sm:$0xff] %vm1127_vm4, %v1030_v3  ;;  %1693 = vrot.lane.b32.xlu1 %v1611_v1, %s5211_s19 }
  0xcb   : > { %1477 = vrot.lane.b32.xlu0 %v1610_v40, %s5210_s18  ;;  %v1614_v40 = vld [vmem:[%s5306_s30 + $0x8c] sm:$0xff] }
  0xcc   : > { %v2114_v5 = vpop.permute.xlu1 %2113 }
  0xcd   : > { %v1898_v6 = vpop.permute.xlu0 %1897  ;;  %2220 = vst.msk [vmem:[#allocation2 + $0x10] sm:$0xff] %vm2217_vm9, %v2114_v5 }
  0xce   : > { %2003 = vst.msk [vmem:[#allocation2 + $0x18] sm:$0xff] %vm1999_vm8, %v1898_v6  ;;  %1043 = vrot.lane.b32.xlu1 %v959_v4, %s5208_s16 }
  0xcf   : > { %827 = vrot.lane.b32.xlu0 %v958_v45, %s5206_s14  ;;  %v962_v45 = vld [vmem:[%s5306_s30 + $0x8a] sm:$0xff] }
  0xd0   : > { %v1248_v10 = vpop.permute.xlu1 %1247 }
  0xd1   : > { %v596_v11 = vpop.permute.xlu0 %595  ;;  %1351 = vst.msk [vmem:[#allocation2 + $0x28] sm:$0xff] %vm1345_vm5, %v1248_v10 }
  0xd2   : > { %698 = vst.msk [vmem:[#allocation2 + $0x30] sm:$0xff] %vm691_vm2, %v596_v11  ;;  %1911 = vrot.lane.b32.xlu1 %v1829_v7, %s5212_s24  ;;  %v1833_v7 = vld [vmem:[%s5306_s30 + $0x95] sm:$0xff] }
  0xd3   : > { %1695 = vrot.lane.b32.xlu0 %v1612_v8, %s5211_s19 }
  0xd4   : > { %v2116_v14 = vpop.permute.xlu1 %2115  ;;  %v2257_v16 = vld [vmem:[#allocation2 + $0x10] sm:$0xff] }
  0xd5   : > { %v1464_v15 = vpop.permute.xlu0 %1463  ;;  %2221 = vst.msk [vmem:[#allocation2 + $0x18] sm:$0xff] %vm2217_vm9, %v2116_v14  ;;  %4845 = vmatprep.mubr.msk.f32.mxu0 %vm2303_vm10, %v2257_v16 }
  0xd6   : > { %1568 = vst.msk [vmem:[#allocation2 + $0x20] sm:$0xff] %vm1563_vm6, %v1464_v15  ;;  %1261 = vrot.lane.b32.xlu1 %v1177_v12, %s5209_s17  ;;  %v1181_v12 = vld [vmem:[%s5306_s30 + $0x93] sm:$0xff] }
  0xd7   : > { %1045 = vrot.lane.b32.xlu0 %v960_v13, %s5208_s16 }
  0xd8   : > { %v814_v20 = vpop.permute.xlu1 %813 }
  0xd9   : > { %v598_v21 = vpop.permute.xlu0 %597  ;;  %916 = vst.msk [vmem:[#allocation2 + $0x30] sm:$0xff] %vm909_vm3, %v814_v20 }
  0xda   : > { %699 = vst.msk [vmem:[#allocation2 + $0x38] sm:$0xff] %vm691_vm2, %v598_v21  ;;  %2129 = vrot.lane.b32.xlu1 %v2047_v17, %s5213_s21  ;;  %v2051_v17 = vld [vmem:[%s5306_s30 + $0x96] sm:$0xff] }
  0xdb   : > { %1913 = vrot.lane.b32.xlu0 %v1830_v18, %s5212_s24  ;;  %v1834_v18 = vld [vmem:[%s5306_s30 + $0x9d] sm:$0xff] }
  0xdc   : > { %v1682_v24 = vpop.permute.xlu1 %1681  ;;  %v2258_v26 = vld [vmem:[#allocation2 + $0x18] sm:$0xff] }
  0xdd   : > { %v1466_v25 = vpop.permute.xlu0 %1465  ;;  %1786 = vst.msk [vmem:[#allocation2 + $0x20] sm:$0xff] %vm1781_vm7, %v1682_v24  ;;  %4846 = vmatmul.mubr.msk.f32.gmra.mrb[2].mxu0 %vm2303_vm10, %v2258_v26  ;;  %v456_v21 = vld [vmem:[%s5306_s30 + $0x98] sm:$0xff] }
  0xde   : > { %1569 = vst.msk [vmem:[#allocation2 + $0x28] sm:$0xff] %vm1563_vm6, %v1466_v25  ;;  %1263 = vrot.lane.b32.xlu1 %v1178_v22, %s5209_s17  ;;  %v1182_v22 = vld [vmem:[%s5306_s30 + $0x9b] sm:$0xff] }
  0xdf   : > { %611 = vrot.lane.b32.xlu0 %v525_v23, %s5207_s15  ;;  %493 = vst.msk [vmem:[#allocation2 + $0x98] sm:$0xff] %vm473_vm0, %v456_v21  ;;  %v529_v23 = vld [vmem:[%s5306_s30 + $0x91] sm:$0xff] }
  0xe0   : > { %v1032_v28 = vpop.permute.xlu1 %1031  ;;  %v460_v21 = vld [vmem:[%s5306_s30 + $0xb8] sm:$0xff] }
  0xe1   : > { %v816_v29 = vpop.permute.xlu0 %815  ;;  %1134 = vst.msk [vmem:[#allocation2 + $0x30] sm:$0xff] %vm1127_vm4, %v1032_v28 }
  0xe2   : > { %917 = vst.msk [vmem:[#allocation2 + $0x38] sm:$0xff] %vm909_vm3, %v816_v29  ;;  %2131 = vrot.lane.b32.xlu1 %v2048_v27, %s5213_s21  ;;  %v2052_v27 = vld [vmem:[%s5306_s30 + $0x9e] sm:$0xff] }
  0xe3   : > { %1479 = vrot.lane.b32.xlu0 %v1611_v1, %s5210_s18  ;;  %v1615_v1 = vld [vmem:[%s5306_s30 + $0x94] sm:$0xff]  ;;  %497 = vst.msk [vmem:[#allocation2 + $0xb8] sm:$0xff] %vm473_vm0, %v460_v21 }
  0xe4   : > { %v1900_v31 = vpop.permute.xlu1 %1899 }
  0xe5   : > { %v1684_v32 = vpop.permute.xlu0 %1683  ;;  %2004 = vst.msk [vmem:[#allocation2 + $0x20] sm:$0xff] %vm1999_vm8, %v1900_v31 }
  0xe6   : > { %1787 = vst.msk [vmem:[#allocation2 + $0x28] sm:$0xff] %vm1781_vm7, %v1684_v32  ;;  %829 = vrot.lane.b32.xlu1 %v959_v4, %s5206_s14  ;;  %v963_v4 = vld [vmem:[%s5306_s30 + $0x92] sm:$0xff] }
  0xe7   : > { %613 = vrot.lane.b32.xlu0 %v526_v30, %s5207_s15  ;;  %v530_v30 = vld [vmem:[%s5306_s30 + $0x99] sm:$0xff] }
  0xe8   : > { %v1250_v34 = vpop.permute.xlu1 %1249 }
  0xe9   : > { %v1034_v35 = vpop.permute.xlu0 %1033  ;;  %1352 = vst.msk [vmem:[#allocation2 + $0x30] sm:$0xff] %vm1345_vm5, %v1250_v34 }
  0xea   : > { %1135 = vst.msk [vmem:[#allocation2 + $0x38] sm:$0xff] %vm1127_vm4, %v1034_v35  ;;  %1697 = vrot.lane.b32.xlu1 %v1613_v33, %s5211_s19 }
  0xeb   : > { %1481 = vrot.lane.b32.xlu0 %v1612_v8, %s5210_s18  ;;  %v1616_v8 = vld [vmem:[%s5306_s30 + $0x9c] sm:$0xff] }
  0xec   : > { %v2118_v37 = vpop.permute.xlu1 %2117 }
  0xed   : > { %v1902_v38 = vpop.permute.xlu0 %1901  ;;  %2222 = vst.msk [vmem:[#allocation2 + $0x20] sm:$0xff] %vm2217_vm9, %v2118_v37 }
  0xee   : > { %2005 = vst.msk [vmem:[#allocation2 + $0x28] sm:$0xff] %vm1999_vm8, %v1902_v38  ;;  %1047 = vrot.lane.b32.xlu1 %v961_v36, %s5208_s16 }
  0xef   : > { %831 = vrot.lane.b32.xlu0 %v960_v13, %s5206_s14  ;;  %v964_v13 = vld [vmem:[%s5306_s30 + $0x9a] sm:$0xff] }
  0xf0   : > { %v1252_v42 = vpop.permute.xlu1 %1251 }
  0xf1   : > { %v600_v43 = vpop.permute.xlu0 %599  ;;  %1353 = vst.msk [vmem:[#allocation2 + $0x38] sm:$0xff] %vm1345_vm5, %v1252_v42 }
  0xf2   : > { %700 = vst.msk [vmem:[#allocation2 + $0x40] sm:$0xff] %vm691_vm2, %v600_v43  ;;  %1915 = vrot.lane.b32.xlu1 %v1831_v39, %s5212_s24  ;;  %v1835_v39 = vld [vmem:[%s5306_s30 + $0xa5] sm:$0xff] }
  0xf3   : > { %1699 = vrot.lane.b32.xlu0 %v1614_v40, %s5211_s19  ;;  %v457_v43 = vld [vmem:[%s5306_s30 + $0xa0] sm:$0xff] }
  0xf4   : > { %v2120_v46 = vpop.permute.xlu1 %2119  ;;  %v2259_v48 = vld [vmem:[#allocation2 + $0x20] sm:$0xff]  ;;  %494 = vst.msk [vmem:[#allocation2 + $0xa0] sm:$0xff] %vm473_vm0, %v457_v43 }
  0xf5   : > { %v1468_v47 = vpop.permute.xlu0 %1467  ;;  %2223 = vst.msk [vmem:[#allocation2 + $0x28] sm:$0xff] %vm2217_vm9, %v2120_v46  ;;  %4848 = vmatprep.mubr.msk.f32.mxu0 %vm2303_vm10, %v2259_v48 }
  0xf6   : > { %1570 = vst.msk [vmem:[#allocation2 + $0x30] sm:$0xff] %vm1563_vm6, %v1468_v47  ;;  %1265 = vrot.lane.b32.xlu1 %v1179_v44, %s5209_s17  ;;  %v1183_v44 = vld [vmem:[%s5306_s30 + $0xa3] sm:$0xff] }
  0xf7   : > { %1049 = vrot.lane.b32.xlu0 %v962_v45, %s5208_s16 }
  0xf8   : > { %v818_v52 = vpop.permute.xlu1 %817 }
  0xf9   : > { %v602_v53 = vpop.permute.xlu0 %601  ;;  %918 = vst.msk [vmem:[#allocation2 + $0x40] sm:$0xff] %vm909_vm3, %v818_v52 }
  0xfa   : > { %701 = vst.msk [vmem:[#allocation2 + $0x48] sm:$0xff] %vm691_vm2, %v602_v53  ;;  %2133 = vrot.lane.b32.xlu1 %v2049_v49, %s5213_s21  ;;  %v2053_v49 = vld [vmem:[%s5306_s30 + $0xa6] sm:$0xff] }
  0xfb   : > { %1917 = vrot.lane.b32.xlu0 %v1832_v50, %s5212_s24  ;;  %v1836_v50 = vld [vmem:[%s5306_s30 + $0xad] sm:$0xff] }
  0xfc   : > { %v1686_v56 = vpop.permute.xlu1 %1685  ;;  %v2260_v58 = vld [vmem:[#allocation2 + $0x28] sm:$0xff] }
  0xfd   : > { %v1470_v57 = vpop.permute.xlu0 %1469  ;;  %1788 = vst.msk [vmem:[#allocation2 + $0x30] sm:$0xff] %vm1781_vm7, %v1686_v56  ;;  %4849 = vmatmul.mubr.msk.f32.gmra.mrb[4].mxu0 %vm2303_vm10, %v2260_v58  ;;  %v458_v53 = vld [vmem:[%s5306_s30 + $0xa8] sm:$0xff] }
  0xfe   : > { %1571 = vst.msk [vmem:[#allocation2 + $0x38] sm:$0xff] %vm1563_vm6, %v1470_v57  ;;  %1267 = vrot.lane.b32.xlu1 %v1180_v54, %s5209_s17  ;;  %v1184_v54 = vld [vmem:[%s5306_s30 + $0xab] sm:$0xff] }
  0xff   : > { %615 = vrot.lane.b32.xlu0 %v527_v55, %s5207_s15  ;;  %495 = vst.msk [vmem:[#allocation2 + $0xa8] sm:$0xff] %vm473_vm0, %v458_v53  ;;  %v531_v55 = vld [vmem:[%s5306_s30 + $0xa1] sm:$0xff] }
 0x100   : > { %v1036_v60 = vpop.permute.xlu1 %1035 }
 0x101   : > { %v820_v61 = vpop.permute.xlu0 %819  ;;  %1136 = vst.msk [vmem:[#allocation2 + $0x40] sm:$0xff] %vm1127_vm4, %v1036_v60 }
 0x102   : > { %919 = vst.msk [vmem:[#allocation2 + $0x48] sm:$0xff] %vm909_vm3, %v820_v61  ;;  %2135 = vrot.lane.b32.xlu1 %v2050_v59, %s5213_s21  ;;  %v2054_v59 = vld [vmem:[%s5306_s30 + $0xae] sm:$0xff] }
 0x103   : > { %1483 = vrot.lane.b32.xlu0 %v1613_v33, %s5210_s18  ;;  %v1617_v33 = vld [vmem:[%s5306_s30 + $0xa4] sm:$0xff] }
 0x104   : > { %v1904_v63 = vpop.permute.xlu1 %1903 }
 0x105   : > { %v1688_v0 = vpop.permute.xlu0 %1687  ;;  %2006 = vst.msk [vmem:[#allocation2 + $0x30] sm:$0xff] %vm1999_vm8, %v1904_v63 }
 0x106   : > { %1789 = vst.msk [vmem:[#allocation2 + $0x38] sm:$0xff] %vm1781_vm7, %v1688_v0  ;;  %833 = vrot.lane.b32.xlu1 %v961_v36, %s5206_s14  ;;  %v965_v36 = vld [vmem:[%s5306_s30 + $0xa2] sm:$0xff] }
 0x107   : > { %617 = vrot.lane.b32.xlu0 %v528_v62, %s5207_s15  ;;  %v532_v62 = vld [vmem:[%s5306_s30 + $0xa9] sm:$0xff] }
 0x108   : > { %v1254_v2 = vpop.permute.xlu1 %1253 }
 0x109   : > { %v1038_v3 = vpop.permute.xlu0 %1037  ;;  %1354 = vst.msk [vmem:[#allocation2 + $0x40] sm:$0xff] %vm1345_vm5, %v1254_v2 }
 0x10a   : > { %1137 = vst.msk [vmem:[#allocation2 + $0x48] sm:$0xff] %vm1127_vm4, %v1038_v3  ;;  %1701 = vrot.lane.b32.xlu1 %v1615_v1, %s5211_s19 }
 0x10b   : > { %1485 = vrot.lane.b32.xlu0 %v1614_v40, %s5210_s18  ;;  %v1618_v40 = vld [vmem:[%s5306_s30 + $0xac] sm:$0xff] }
 0x10c   : > { %v2122_v5 = vpop.permute.xlu1 %2121 }
 0x10d   : > { %v1906_v6 = vpop.permute.xlu0 %1905  ;;  %2224 = vst.msk [vmem:[#allocation2 + $0x30] sm:$0xff] %vm2217_vm9, %v2122_v5 }
 0x10e   : > { %2007 = vst.msk [vmem:[#allocation2 + $0x38] sm:$0xff] %vm1999_vm8, %v1906_v6  ;;  %1051 = vrot.lane.b32.xlu1 %v963_v4, %s5208_s16 }
 0x10f   : > { %835 = vrot.lane.b32.xlu0 %v962_v45, %s5206_s14  ;;  %v966_v45 = vld [vmem:[%s5306_s30 + $0xaa] sm:$0xff] }
 0x110   : > { %v1256_v10 = vpop.permute.xlu1 %1255 }
 0x111   : > { %v604_v11 = vpop.permute.xlu0 %603  ;;  %1355 = vst.msk [vmem:[#allocation2 + $0x48] sm:$0xff] %vm1345_vm5, %v1256_v10 }
 0x112   : > { %702 = vst.msk [vmem:[#allocation2 + $0x50] sm:$0xff] %vm691_vm2, %v604_v11  ;;  %1919 = vrot.lane.b32.xlu1 %v1833_v7, %s5212_s24  ;;  %v1837_v7 = vld [vmem:[%s5306_s30 + $0xb5] sm:$0xff] }
 0x113   : > { %1703 = vrot.lane.b32.xlu0 %v1616_v8, %s5211_s19  ;;  %v459_v11 = vld [vmem:[%s5306_s30 + $0xb0] sm:$0xff] }
 0x114   : > { %v2124_v14 = vpop.permute.xlu1 %2123  ;;  %v2261_v16 = vld [vmem:[#allocation2 + $0x30] sm:$0xff]  ;;  %496 = vst.msk [vmem:[#allocation2 + $0xb0] sm:$0xff] %vm473_vm0, %v459_v11 }
 0x115   : > { %v1472_v15 = vpop.permute.xlu0 %1471  ;;  %2225 = vst.msk [vmem:[#allocation2 + $0x38] sm:$0xff] %vm2217_vm9, %v2124_v14  ;;  %4851 = vmatprep.mubr.msk.f32.mxu0 %vm2303_vm10, %v2261_v16 }
 0x116   : > { %1572 = vst.msk [vmem:[#allocation2 + $0x40] sm:$0xff] %vm1563_vm6, %v1472_v15  ;;  %1269 = vrot.lane.b32.xlu1 %v1181_v12, %s5209_s17  ;;  %v1185_v12 = vld [vmem:[%s5306_s30 + $0xb3] sm:$0xff] }
 0x117   : > { %1053 = vrot.lane.b32.xlu0 %v964_v13, %s5208_s16 }
 0x118   : > { %v822_v19 = vpop.permute.xlu1 %821 }
 0x119   : > { %v606_v20 = vpop.permute.xlu0 %605  ;;  %920 = vst.msk [vmem:[#allocation2 + $0x50] sm:$0xff] %vm909_vm3, %v822_v19 }
 0x11a   : > { %703 = vst.msk [vmem:[#allocation2 + $0x58] sm:$0xff] %vm691_vm2, %v606_v20  ;;  %2137 = vrot.lane.b32.xlu1 %v2051_v17, %s5213_s21  ;;  %v2055_v17 = vld [vmem:[%s5306_s30 + $0xb6] sm:$0xff] }
 0x11b   : > { %1921 = vrot.lane.b32.xlu0 %v1834_v18, %s5212_s24  ;;  %v1838_v18 = vld [vmem:[%s5306_s30 + $0xbd] sm:$0xff] }
 0x11c   : > { %v1690_v24 = vpop.permute.xlu1 %1689  ;;  %v2262_v26 = vld [vmem:[#allocation2 + $0x38] sm:$0xff] }
 0x11d   : > { %v1474_v25 = vpop.permute.xlu0 %1473  ;;  %1790 = vst.msk [vmem:[#allocation2 + $0x40] sm:$0xff] %vm1781_vm7, %v1690_v24  ;;  %4852 = vmatmul.mubr.msk.f32.gmra.mrb[6].mxu0 %vm2303_vm10, %v2262_v26 }
 0x11e   : > { %1573 = vst.msk [vmem:[#allocation2 + $0x48] sm:$0xff] %vm1563_vm6, %v1474_v25  ;;  %1271 = vrot.lane.b32.xlu1 %v1182_v22, %s5209_s17  ;;  %v1186_v22 = vld [vmem:[%s5306_s30 + $0xbb] sm:$0xff] }
 0x11f   : > { %619 = vrot.lane.b32.xlu0 %v529_v23, %s5207_s15  ;;  %v533_v23 = vld [vmem:[%s5306_s30 + $0xb1] sm:$0xff] }
 0x120   : > { %v1040_v28 = vpop.permute.xlu1 %1039 }
 0x121   : > { %v824_v29 = vpop.permute.xlu0 %823  ;;  %1138 = vst.msk [vmem:[#allocation2 + $0x50] sm:$0xff] %vm1127_vm4, %v1040_v28 }
 0x122   : > { %921 = vst.msk [vmem:[#allocation2 + $0x58] sm:$0xff] %vm909_vm3, %v824_v29  ;;  %2139 = vrot.lane.b32.xlu1 %v2052_v27, %s5213_s21  ;;  %v2056_v27 = vld [vmem:[%s5306_s30 + $0xbe] sm:$0xff] }
 0x123   : > { %1487 = vrot.lane.b32.xlu0 %v1615_v1, %s5210_s18  ;;  %v1619_v1 = vld [vmem:[%s5306_s30 + $0xb4] sm:$0xff] }
 0x124   : > { %v1908_v31 = vpop.permute.xlu1 %1907 }
 0x125   : > { %v1692_v32 = vpop.permute.xlu0 %1691  ;;  %2008 = vst.msk [vmem:[#allocation2 + $0x40] sm:$0xff] %vm1999_vm8, %v1908_v31 }
 0x126   : > { %1791 = vst.msk [vmem:[#allocation2 + $0x48] sm:$0xff] %vm1781_vm7, %v1692_v32  ;;  %837 = vrot.lane.b32.xlu1 %v963_v4, %s5206_s14  ;;  %v967_v4 = vld [vmem:[%s5306_s30 + $0xb2] sm:$0xff] }
 0x127   : > { %621 = vrot.lane.b32.xlu0 %v530_v30, %s5207_s15  ;;  %v534_v30 = vld [vmem:[%s5306_s30 + $0xb9] sm:$0xff] }
 0x128   : > { %v1258_v34 = vpop.permute.xlu1 %1257 }
 0x129   : > { %v1042_v35 = vpop.permute.xlu0 %1041  ;;  %1356 = vst.msk [vmem:[#allocation2 + $0x50] sm:$0xff] %vm1345_vm5, %v1258_v34 }
 0x12a   : > { %1139 = vst.msk [vmem:[#allocation2 + $0x58] sm:$0xff] %vm1127_vm4, %v1042_v35  ;;  %1705 = vrot.lane.b32.xlu1 %v1617_v33, %s5211_s19 }
 0x12b   : > { %1489 = vrot.lane.b32.xlu0 %v1616_v8, %s5210_s18  ;;  %v1620_v8 = vld [vmem:[%s5306_s30 + $0xbc] sm:$0xff] }
 0x12c   : > { %v2126_v37 = vpop.permute.xlu1 %2125 }
 0x12d   : > { %v1910_v38 = vpop.permute.xlu0 %1909  ;;  %2226 = vst.msk [vmem:[#allocation2 + $0x40] sm:$0xff] %vm2217_vm9, %v2126_v37  ;;  %v969_v37 = vld [vmem:[%s5306_s30 + $0xc2] sm:$0xff] }
 0x12e   : > { %2009 = vst.msk [vmem:[#allocation2 + $0x48] sm:$0xff] %vm1999_vm8, %v1910_v38  ;;  %1055 = vrot.lane.b32.xlu1 %v965_v36, %s5208_s16 }
 0x12f   : > { %839 = vrot.lane.b32.xlu0 %v964_v13, %s5206_s14  ;;  %v5771_v13 = vld [vmem:[%s5306_s30 + $0xba] sm:$0xff] }
 0x130   : > { %v1260_v41 = vpop.permute.xlu1 %1259 }
 0x131   : > { %v608_v42 = vpop.permute.xlu0 %607  ;;  %1357 = vst.msk [vmem:[#allocation2 + $0x58] sm:$0xff] %vm1345_vm5, %v1260_v41  ;;  %v1622_v41 = vld [vmem:[%s5306_s30 + $0xcc] sm:$0xff] }
 0x132   : > { %704 = vst.msk [vmem:[#allocation2 + $0x60] sm:$0xff] %vm691_vm2, %v608_v42  ;;  %1923 = vrot.lane.b32.xlu1 %v1835_v39, %s5212_s24 }
 0x133   : > { %1707 = vrot.lane.b32.xlu0 %v1618_v40, %s5211_s19 }
 0x134   : > { %v2128_v46 = vpop.permute.xlu1 %2127  ;;  %v2263_v48 = vld [vmem:[#allocation2 + $0x40] sm:$0xff] }
 0x135   : > { %v1476_v47 = vpop.permute.xlu0 %1475  ;;  %2227 = vst.msk [vmem:[#allocation2 + $0x48] sm:$0xff] %vm2217_vm9, %v2128_v46  ;;  %4854 = vmatprep.mubr.msk.f32.mxu0 %vm2303_vm10, %v2263_v48  ;;  %v970_v46 = vld [vmem:[%s5306_s30 + $0xca] sm:$0xff] }
 0x136   : > { %1574 = vst.msk [vmem:[#allocation2 + $0x50] sm:$0xff] %vm1563_vm6, %v1476_v47  ;;  %1273 = vrot.lane.b32.xlu1 %v1183_v44, %s5209_s17  ;;  %v461_v44 = vld [vmem:[%s5306_s30 + $0xc0] sm:$0xff] }
 0x137   : > { %1057 = vrot.lane.b32.xlu0 %v966_v45, %s5208_s16  ;;  %498 = vst.msk [vmem:[#allocation2 + $0xc0] sm:$0xff] %vm473_vm0, %v461_v44 }
 0x138   : > { %v826_v51 = vpop.permute.xlu1 %825 }
 0x139   : > { %v610_v52 = vpop.permute.xlu0 %609  ;;  %922 = vst.msk [vmem:[#allocation2 + $0x60] sm:$0xff] %vm909_vm3, %v826_v51  ;;  %v1840_v51 = vld [vmem:[%s5306_s30 + $0xcd] sm:$0xff] }
 0x13a   : > { %705 = vst.msk [vmem:[#allocation2 + $0x68] sm:$0xff] %vm691_vm2, %v610_v52  ;;  %2141 = vrot.lane.b32.xlu1 %v2053_v49, %s5213_s21 }
 0x13b   : > { %1925 = vrot.lane.b32.xlu0 %v1836_v50, %s5212_s24  ;;  %v2057_v50 = vld [vmem:[%s5306_s30 + $0xc6] sm:$0xff] }
 0x13c   : > { %v1694_v56 = vpop.permute.xlu1 %1693  ;;  %v2264_v58 = vld [vmem:[#allocation2 + $0x48] sm:$0xff] }
 0x13d   : > { %v1478_v57 = vpop.permute.xlu0 %1477  ;;  %1792 = vst.msk [vmem:[#allocation2 + $0x50] sm:$0xff] %vm1781_vm7, %v1694_v56  ;;  %4855 = vmatmul.mubr.msk.f32.gmra.mrb[8].mxu0 %vm2303_vm10, %v2264_v58  ;;  %v535_v56 = vld [vmem:[%s5306_s30 + $0xc1] sm:$0xff] }
 0x13e   : > { %1575 = vst.msk [vmem:[#allocation2 + $0x58] sm:$0xff] %vm1563_vm6, %v1478_v57  ;;  %1275 = vrot.lane.b32.xlu1 %v1184_v54, %s5209_s17  ;;  %v462_v54 = vld [vmem:[%s5306_s30 + $0xc8] sm:$0xff] }
 0x13f   : > { %623 = vrot.lane.b32.xlu0 %v531_v55, %s5207_s15  ;;  %499 = vst.msk [vmem:[#allocation2 + $0xc8] sm:$0xff] %vm473_vm0, %v462_v54  ;;  %v1188_v55 = vld [vmem:[%s5306_s30 + $0xcb] sm:$0xff] }
 0x140   : > { %v1044_v60 = vpop.permute.xlu1 %1043 }
 0x141   : > { %v828_v61 = vpop.permute.xlu0 %827  ;;  %1140 = vst.msk [vmem:[#allocation2 + $0x60] sm:$0xff] %vm1127_vm4, %v1044_v60  ;;  %v2058_v60 = vld [vmem:[%s5306_s30 + $0xce] sm:$0xff] }
 0x142   : > { %923 = vst.msk [vmem:[#allocation2 + $0x68] sm:$0xff] %vm909_vm3, %v828_v61  ;;  %2143 = vrot.lane.b32.xlu1 %v2054_v59, %s5213_s21 }
 0x143   : > { %1491 = vrot.lane.b32.xlu0 %v1617_v33, %s5210_s18  ;;  %v5805_v33 = vld [vmem:[%s5306_s30 + $0xc4] sm:$0xff] }
 0x144   : > { %v1912_v63 = vpop.permute.xlu1 %1911 }
 0x145   : > { %v1696_v0 = vpop.permute.xlu0 %1695  ;;  %2010 = vst.msk [vmem:[#allocation2 + $0x50] sm:$0xff] %vm1999_vm8, %v1912_v63  ;;  %v536_v63 = vld [vmem:[%s5306_s30 + $0xc9] sm:$0xff] }
 0x146   : > { %1793 = vst.msk [vmem:[#allocation2 + $0x58] sm:$0xff] %vm1781_vm7, %v1696_v0  ;;  %841 = vrot.lane.b32.xlu1 %v965_v36, %s5206_s14  ;;  %v5214_v36 = vmov 0.0  }
 0x147   : > { %625 = vrot.lane.b32.xlu0 %v532_v62, %s5207_s15  ;;  %2737 = vst.msk [vmem:[#allocation5 + $0x10] sm:$0xff] %vm2697_vm11, %v5214_v36  ;;  %2738 = vst.msk [vmem:[#allocation5 + $0x18] sm:$0xff] %vm2697_vm11, %v5214_v36 }
 0x148   : > { %v1262_v2 = vpop.permute.xlu1 %1261  ;;  %2735 = vst.msk [vmem:[#allocation5] sm:$0xff] %vm2697_vm11, %v5214_v36  ;;  %2736 = vst.msk [vmem:[#allocation5 + $0x8] sm:$0xff] %vm2697_vm11, %v5214_v36 }
 0x149   : > { %v1046_v3 = vpop.permute.xlu0 %1045  ;;  %1358 = vst.msk [vmem:[#allocation2 + $0x60] sm:$0xff] %vm1345_vm5, %v1262_v2  ;;  %v5884_v2 = vld [vmem:[%s5306_s30 + $0xd4] sm:$0xff] }
 0x14a   : > { %1141 = vst.msk [vmem:[#allocation2 + $0x68] sm:$0xff] %vm1127_vm4, %v1046_v3  ;;  %1709 = vrot.lane.b32.xlu1 %v1619_v1, %s5211_s19 }
 0x14b   : > { %1493 = vrot.lane.b32.xlu0 %v1618_v40, %s5210_s18  ;;  %2739 = vst.msk [vmem:[#allocation5 + $0x20] sm:$0xff] %vm2697_vm11, %v5214_v36  ;;  %2740 = vst.msk [vmem:[#allocation5 + $0x28] sm:$0xff] %vm2697_vm11, %v5214_v36  ;;  %v1839_v40 = vld [vmem:[%s5306_s30 + $0xc5] sm:$0xff] }
 0x14c   : > { %v2130_v5 = vpop.permute.xlu1 %2129  ;;  %2741 = vst.msk [vmem:[#allocation5 + $0x30] sm:$0xff] %vm2697_vm11, %v5214_v36  ;;  %2742 = vst.msk [vmem:[#allocation5 + $0x38] sm:$0xff] %vm2697_vm11, %v5214_v36 }
 0x14d   : > { %v1914_v6 = vpop.permute.xlu0 %1913  ;;  %2228 = vst.msk [vmem:[#allocation2 + $0x50] sm:$0xff] %vm2217_vm9, %v2130_v5  ;;  %v5892_v5 = vld [vmem:[%s5306_s30 + $0xd2] sm:$0xff] }
 0x14e   : > { %2011 = vst.msk [vmem:[#allocation2 + $0x58] sm:$0xff] %vm1999_vm8, %v1914_v6  ;;  %1059 = vrot.lane.b32.xlu1 %v967_v4, %s5208_s16 }
 0x14f   : > { %843 = vrot.lane.b32.xlu0 %v966_v45, %s5206_s14  ;;  %2743 = vst.msk [vmem:[#allocation5 + $0x40] sm:$0xff] %vm2697_vm11, %v5214_v36  ;;  %2744 = vst.msk [vmem:[#allocation5 + $0x48] sm:$0xff] %vm2697_vm11, %v5214_v36  ;;  %v1187_v45 = vld [vmem:[%s5306_s30 + $0xc3] sm:$0xff] }
 0x150   : > { %v1264_v9 = vpop.permute.xlu1 %1263  ;;  %2745 = vst.msk [vmem:[#allocation5 + $0x50] sm:$0xff] %vm2697_vm11, %v5214_v36  ;;  %2746 = vst.msk [vmem:[#allocation5 + $0x58] sm:$0xff] %vm2697_vm11, %v5214_v36 }
 0x151   : > { %v612_v10 = vpop.permute.xlu0 %611  ;;  %1359 = vst.msk [vmem:[#allocation2 + $0x68] sm:$0xff] %vm1345_vm5, %v1264_v9  ;;  %v1841_v9 = vld [vmem:[%s5306_s30 + $0xd5] sm:$0xff] }
 0x152   : > { %706 = vst.msk [vmem:[#allocation2 + $0x70] sm:$0xff] %vm691_vm2, %v612_v10  ;;  %1927 = vrot.lane.b32.xlu1 %v1837_v7, %s5212_s24  ;;  %v5906_v10 = vld [vmem:[%s5306_s30 + $0xdc] sm:$0xff] }
 0x153   : > { %1711 = vrot.lane.b32.xlu0 %v1620_v8, %s5211_s19 }
 0x154   : > { %v2132_v14 = vpop.permute.xlu1 %2131  ;;  %v2265_v16 = vld [vmem:[#allocation2 + $0x50] sm:$0xff] }
 0x155   : > { %v1480_v15 = vpop.permute.xlu0 %1479  ;;  %2229 = vst.msk [vmem:[#allocation2 + $0x58] sm:$0xff] %vm2217_vm9, %v2132_v14  ;;  %4857 = vmatprep.mubr.msk.f32.mxu0 %vm2303_vm10, %v2265_v16 }
 0x156   : > { %1576 = vst.msk [vmem:[#allocation2 + $0x60] sm:$0xff] %vm1563_vm6, %v1480_v15  ;;  %1277 = vrot.lane.b32.xlu1 %v1185_v12, %s5209_s17 }
 0x157   : > { %1061 = vrot.lane.b32.xlu0 %v5771_v13, %s5208_s16 }
 0x158   : > { %v830_v19 = vpop.permute.xlu1 %829 }
 0x159   : > { %v614_v20 = vpop.permute.xlu0 %613  ;;  %924 = vst.msk [vmem:[#allocation2 + $0x70] sm:$0xff] %vm909_vm3, %v830_v19  ;;  %v5919_v19 = vld [vmem:[%s5306_s30 + $0xda] sm:$0xff] }
 0x15a   : > { %707 = vst.msk [vmem:[#allocation2 + $0x78] sm:$0xff] %vm691_vm2, %v614_v20  ;;  %2145 = vrot.lane.b32.xlu1 %v2055_v17, %s5213_s21 }
 0x15b   : > { %1929 = vrot.lane.b32.xlu0 %v1838_v18, %s5212_s24  ;;  %v1189_v18 = vld [vmem:[%s5306_s30 + $0xd3] sm:$0xff] }
 0x15c   : > { %v1698_v24 = vpop.permute.xlu1 %1697  ;;  %v2266_v26 = vld [vmem:[#allocation2 + $0x58] sm:$0xff] }
 0x15d   : > { %v1482_v25 = vpop.permute.xlu0 %1481  ;;  %1794 = vst.msk [vmem:[#allocation2 + $0x60] sm:$0xff] %vm1781_vm7, %v1698_v24  ;;  %4858 = vmatmul.mubr.msk.f32.gmra.mrb[10].mxu0 %vm2303_vm10, %v2266_v26  ;;  %v1842_v26 = vld [vmem:[%s5306_s30 + $0xdd] sm:$0xff] }
 0x15e   : > { %1577 = vst.msk [vmem:[#allocation2 + $0x68] sm:$0xff] %vm1563_vm6, %v1482_v25  ;;  %1279 = vrot.lane.b32.xlu1 %v1186_v22, %s5209_s17  ;;  %v2059_v25 = vld [vmem:[%s5306_s30 + $0xd6] sm:$0xff] }
 0x15f   : > { %627 = vrot.lane.b32.xlu0 %v533_v23, %s5207_s15 }
 0x160   : > { %v1048_v28 = vpop.permute.xlu1 %1047 }
 0x161   : > { %v832_v29 = vpop.permute.xlu0 %831  ;;  %1142 = vst.msk [vmem:[#allocation2 + $0x70] sm:$0xff] %vm1127_vm4, %v1048_v28 }
 0x162   : > { %925 = vst.msk [vmem:[#allocation2 + $0x78] sm:$0xff] %vm909_vm3, %v832_v29  ;;  %2147 = vrot.lane.b32.xlu1 %v2056_v27, %s5213_s21  ;;  %v464_v29 = vld [vmem:[%s5306_s30 + $0xd8] sm:$0xff] }
 0x163   : > { %1495 = vrot.lane.b32.xlu0 %v1619_v1, %s5210_s18  ;;  %501 = vst.msk [vmem:[#allocation2 + $0xd8] sm:$0xff] %vm473_vm0, %v464_v29  ;;  %v1845_v29 = vld [vmem:[%s5306_s30 + $0xf5] sm:$0xff] }
 0x164   : > { %v1916_v31 = vpop.permute.xlu1 %1915 }
 0x165   : > { %v1700_v32 = vpop.permute.xlu0 %1699  ;;  %2012 = vst.msk [vmem:[#allocation2 + $0x60] sm:$0xff] %vm1999_vm8, %v1916_v31  ;;  %v537_v31 = vld [vmem:[%s5306_s30 + $0xd1] sm:$0xff] }
 0x166   : > { %1795 = vst.msk [vmem:[#allocation2 + $0x68] sm:$0xff] %vm1781_vm7, %v1700_v32  ;;  %845 = vrot.lane.b32.xlu1 %v967_v4, %s5206_s14 }
 0x167   : > { %629 = vrot.lane.b32.xlu0 %v534_v30, %s5207_s15  ;;  %v1190_v30 = vld [vmem:[%s5306_s30 + $0xdb] sm:$0xff] }
 0x168   : > { %v1266_v34 = vpop.permute.xlu1 %1265 }
 0x169   : > { %v1050_v35 = vpop.permute.xlu0 %1049  ;;  %1360 = vst.msk [vmem:[#allocation2 + $0x70] sm:$0xff] %vm1345_vm5, %v1266_v34 }
 0x16a   : > { %1143 = vst.msk [vmem:[#allocation2 + $0x78] sm:$0xff] %vm1127_vm4, %v1050_v35  ;;  %1713 = vrot.lane.b32.xlu1 %v5805_v33, %s5211_s19 }
 0x16b   : > { %1497 = vrot.lane.b32.xlu0 %v1620_v8, %s5210_s18  ;;  %v5902_v8 = vld [vmem:[%s7234_s2] ss:$0 sm:$0xff] }
 0x16c   : > { %v2134_v38 = vpop.permute.xlu1 %2133 }
 0x16d   : > { %v1918_v39 = vpop.permute.xlu0 %1917  ;;  %2230 = vst.msk [vmem:[#allocation2 + $0x60] sm:$0xff] %vm2217_vm9, %v2134_v38 }
 0x16e   : > { %2013 = vst.msk [vmem:[#allocation2 + $0x68] sm:$0xff] %vm1999_vm8, %v1918_v39  ;;  %1063 = vrot.lane.b32.xlu1 %v969_v37, %s5208_s16  ;;  %v2060_v39 = vld [vmem:[%s5306_s30 + $0xde] sm:$0xff] }
 0x16f   : > { %847 = vrot.lane.b32.xlu0 %v5771_v13, %s5206_s14  ;;  %v463_v13 = vld [vmem:[%s5306_s30 + $0xd0] sm:$0xff] }
 0x170   : > { %v1268_v42 = vpop.permute.xlu1 %1267  ;;  %500 = vst.msk [vmem:[#allocation2 + $0xd0] sm:$0xff] %vm473_vm0, %v463_v13 }
 0x171   : > { %v616_v43 = vpop.permute.xlu0 %615  ;;  %1361 = vst.msk [vmem:[#allocation2 + $0x78] sm:$0xff] %vm1345_vm5, %v1268_v42  ;;  %v538_v42 = vld [vmem:[%s5306_s30 + $0xd9] sm:$0xff] }
 0x172   : > { %708 = vst.msk [vmem:[#allocation2 + $0x80] sm:$0xff] %vm691_vm2, %v616_v43  ;;  %1931 = vrot.lane.b32.xlu1 %v1839_v40, %s5212_s24 }
 0x173   : > { %1715 = vrot.lane.b32.xlu0 %v1622_v41, %s5211_s19 }
 0x174   : > { %v2136_v47 = vpop.permute.xlu1 %2135  ;;  %v2267_v49 = vld [vmem:[#allocation2 + $0x60] sm:$0xff] }
 0x175   : > { %v1484_v48 = vpop.permute.xlu0 %1483  ;;  %2231 = vst.msk [vmem:[#allocation2 + $0x68] sm:$0xff] %vm2217_vm9, %v2136_v47  ;;  %4860 = vmatprep.mubr.msk.f32.mxu0 %vm2303_vm10, %v2267_v49 }
 0x176   : > { %1578 = vst.msk [vmem:[#allocation2 + $0x70] sm:$0xff] %vm1563_vm6, %v1484_v48  ;;  %1281 = vrot.lane.b32.xlu1 %v1187_v45, %s5209_s17  ;;  %v5958_v45 = vld [vmem:[%s5306_s30 + $0xe4] sm:$0xff] }
 0x177   : > { %1065 = vrot.lane.b32.xlu0 %v970_v46, %s5208_s16  ;;  %v5967_v48 = vld [vmem:[%s5306_s30 + $0xe2] sm:$0xff] }
 0x178   : > { %v834_v52 = vpop.permute.xlu1 %833 }
 0x179   : > { %v618_v53 = vpop.permute.xlu0 %617  ;;  %926 = vst.msk [vmem:[#allocation2 + $0x80] sm:$0xff] %vm909_vm3, %v834_v52  ;;  %v5977_v52 = vld [vmem:[%s5306_s30 + $0xec] sm:$0xff] }
 0x17a   : > { %709 = vst.msk [vmem:[#allocation2 + $0x88] sm:$0xff] %vm691_vm2, %v618_v53  ;;  %2149 = vrot.lane.b32.xlu1 %v2057_v50, %s5213_s21 }
 0x17b   : > { %1933 = vrot.lane.b32.xlu0 %v1840_v51, %s5212_s24  ;;  %v1843_v51 = vld [vmem:[%s5306_s30 + $0xe5] sm:$0xff] }
 0x17c   : > { %v1702_v57 = vpop.permute.xlu1 %1701  ;;  %v2268_v59 = vld [vmem:[#allocation2 + $0x68] sm:$0xff] }
 0x17d   : > { %v1486_v58 = vpop.permute.xlu0 %1485  ;;  %1796 = vst.msk [vmem:[#allocation2 + $0x70] sm:$0xff] %vm1781_vm7, %v1702_v57  ;;  %4861 = vmatmul.mubr.msk.f32.gmra.mrb[12].mxu0 %vm2303_vm10, %v2268_v59 }
 0x17e   : > { %1579 = vst.msk [vmem:[#allocation2 + $0x78] sm:$0xff] %vm1563_vm6, %v1486_v58  ;;  %1283 = vrot.lane.b32.xlu1 %v1188_v55, %s5209_s17  ;;  %v465_v55 = vld [vmem:[%s5306_s30 + $0xe0] sm:$0xff] }
 0x17f   : > { %631 = vrot.lane.b32.xlu0 %v535_v56, %s5207_s15  ;;  %502 = vst.msk [vmem:[#allocation2 + $0xe0] sm:$0xff] %vm473_vm0, %v465_v55 }
 0x180   : > { %v1052_v61 = vpop.permute.xlu1 %1051 }
 0x181   : > { %v836_v62 = vpop.permute.xlu0 %835  ;;  %1144 = vst.msk [vmem:[#allocation2 + $0x80] sm:$0xff] %vm1127_vm4, %v1052_v61  ;;  %v5990_v61 = vld [vmem:[%s5306_s30 + $0xea] sm:$0xff] }
 0x182   : > { %927 = vst.msk [vmem:[#allocation2 + $0x88] sm:$0xff] %vm909_vm3, %v836_v62  ;;  %2151 = vrot.lane.b32.xlu1 %v2058_v60, %s5213_s21  ;;  %v1191_v60 = vld [vmem:[%s5306_s30 + $0xe3] sm:$0xff] }
 0x183   : > { %1499 = vrot.lane.b32.xlu0 %v5805_v33, %s5210_s18 }
 0x184   : > { %v1920_v0 = vpop.permute.xlu1 %1919 }
 0x185   : > { %v1704_v1 = vpop.permute.xlu0 %1703  ;;  %2014 = vst.msk [vmem:[#allocation2 + $0x70] sm:$0xff] %vm1999_vm8, %v1920_v0 }
 0x186   : > { %1797 = vst.msk [vmem:[#allocation2 + $0x78] sm:$0xff] %vm1781_vm7, %v1704_v1  ;;  %849 = vrot.lane.b32.xlu1 %v969_v37, %s5206_s14 }
 0x187   : > { %633 = vrot.lane.b32.xlu0 %v536_v63, %s5207_s15 }
 0x188   : > { %v1270_v3 = vpop.permute.xlu1 %1269 }
 0x189   : > { %v1054_v4 = vpop.permute.xlu0 %1053  ;;  %1362 = vst.msk [vmem:[#allocation2 + $0x80] sm:$0xff] %vm1345_vm5, %v1270_v3  ;;  %v2061_v3 = vld [vmem:[%s5306_s30 + $0xe6] sm:$0xff] }
 0x18a   : > { %1145 = vst.msk [vmem:[#allocation2 + $0x88] sm:$0xff] %vm1127_vm4, %v1054_v4  ;;  %1717 = vrot.lane.b32.xlu1 %v5884_v2, %s5211_s19  ;;  %v1844_v4 = vld [vmem:[%s5306_s30 + $0xed] sm:$0xff] }
 0x18b   : > { %1501 = vrot.lane.b32.xlu0 %v1622_v41, %s5210_s18 }
 0x18c   : > { %v2138_v6 = vpop.permute.xlu1 %2137 }
 0x18d   : > { %v1922_v7 = vpop.permute.xlu0 %1921  ;;  %2232 = vst.msk [vmem:[#allocation2 + $0x70] sm:$0xff] %vm2217_vm9, %v2138_v6 }
 0x18e   : > { %2015 = vst.msk [vmem:[#allocation2 + $0x78] sm:$0xff] %vm1999_vm8, %v1922_v7  ;;  %1067 = vrot.lane.b32.xlu1 %v5892_v5, %s5208_s16  ;;  %v466_v7 = vld [vmem:[%s5306_s30 + $0xe8] sm:$0xff] }
 0x18f   : > { %851 = vrot.lane.b32.xlu0 %v970_v46, %s5206_s14  ;;  %503 = vst.msk [vmem:[#allocation2 + $0xe8] sm:$0xff] %vm473_vm0, %v466_v7  ;;  %v6109_v7 = vld [vmem:[%s5306_s30 + $0x102] sm:$0xff] }
 0x190   : > { %v1272_v11 = vpop.permute.xlu1 %1271  ;;  %v4844_v14 = vpop.f32.mrb[0].mxu0 }
 0x191   : > { %v620_v12 = vpop.permute.xlu0 %619  ;;  %1363 = vst.msk [vmem:[#allocation2 + $0x88] sm:$0xff] %vm1345_vm5, %v1272_v11  ;;  %v2488_v15 = vadd.f32 %v4844_v14, %v5902_v8  ;;  %v2482_v16 = vpop.f32.mrb[1].mxu0 }
 0x192   : > { %710 = vst.msk [vmem:[#allocation2 + $0x90] sm:$0xff] %vm691_vm2, %v620_v12  ;;  %1935 = vrot.lane.b32.xlu1 %v1841_v9, %s5212_s24  ;;  %v2483_v17 = vadd.f32 %v5902_v8, %v2482_v16  ;;  %v1192_v9 = vld [vmem:[%s5306_s30 + $0xeb] sm:$0xff] }
 0x193   : > { %1719 = vrot.lane.b32.xlu0 %v5906_v10, %s5211_s19  ;;  %v2662_v20 = vmax.f32 %v2488_v15, 0.0 }
 0x194   : > { %v2140_v21 = vpop.permute.xlu1 %2139  ;;  %v2269_v23 = vld [vmem:[#allocation2 + $0x70] sm:$0xff]  ;;  %v2661_v24 = vmax.f32 %v2483_v17, 0.0 }
 0x195   : > { %v1488_v22 = vpop.permute.xlu0 %1487  ;;  %2233 = vst.msk [vmem:[#allocation2 + $0x78] sm:$0xff] %vm2217_vm9, %v2140_v21  ;;  %4863 = vmatprep.mubr.msk.f32.mxu0 %vm2303_vm10, %v2269_v23  ;;  %v2062_v17 = vld [vmem:[%s5306_s30 + $0xee] sm:$0xff] }
 0x196   : > { %1580 = vst.msk [vmem:[#allocation2 + $0x80] sm:$0xff] %vm1563_vm6, %v1488_v22  ;;  %1285 = vrot.lane.b32.xlu1 %v1189_v18, %s5209_s17  ;;  %v6029_v23 = vld [vmem:[%s5306_s30 + $0xf4] sm:$0xff] }
 0x197   : > { %2699 = vst.msk [vmem:[#allocation3 + $0x8] sm:$0xff] %vm2697_vm11, %v2662_v20  ;;  %1069 = vrot.lane.b32.xlu0 %v5919_v19, %s5208_s16  ;;  %2698 = vst.msk [vmem:[#allocation3] sm:$0xff] %vm2697_vm11, %v2661_v24  ;;  %v540_v20 = vld [vmem:[%s5306_s30 + $0xe9] sm:$0xff] }
 0x198   : > { %v838_v27 = vpop.permute.xlu1 %837 }
 0x199   : > { %v622_v28 = vpop.permute.xlu0 %621  ;;  %928 = vst.msk [vmem:[#allocation2 + $0x90] sm:$0xff] %vm909_vm3, %v838_v27 }
 0x19a   : > { %711 = vst.msk [vmem:[#allocation2 + $0x98] sm:$0xff] %vm691_vm2, %v622_v28  ;;  %2153 = vrot.lane.b32.xlu1 %v2059_v25, %s5213_s21 }
 0x19b   : > { %1937 = vrot.lane.b32.xlu0 %v1842_v26, %s5212_s24  ;;  %v6038_v26 = vld [vmem:[%s5306_s30 + $0xf2] sm:$0xff] }
 0x19c   : > { %v1706_v32 = vpop.permute.xlu1 %1705  ;;  %v2270_v34 = vld [vmem:[#allocation2 + $0x78] sm:$0xff] }
 0x19d   : > { %v1490_v33 = vpop.permute.xlu0 %1489  ;;  %1798 = vst.msk [vmem:[#allocation2 + $0x80] sm:$0xff] %vm1781_vm7, %v1706_v32  ;;  %4864 = vmatmul.mubr.msk.f32.gmra.mrb[14].mxu0 %vm2303_vm10, %v2270_v34 }
 0x19e   : > { %1581 = vst.msk [vmem:[#allocation2 + $0x88] sm:$0xff] %vm1563_vm6, %v1490_v33  ;;  %v2749_v35 = vld [vmem:[#allocation3] ss:$2 sm:$0xff]  ;;  %v2785_v37 = vld [vmem:[#allocation3 + $0x1] ss:$2 sm:$0xff]  ;;  %1287 = vrot.lane.b32.xlu1 %v1190_v30, %s5209_s17  ;;  %v467_v33 = vld [vmem:[%s5306_s30 + $0xf0] sm:$0xff] }
 0x19f   : > { %635 = vrot.lane.b32.xlu0 %v537_v31, %s5207_s15  ;;  %v2820_v38 = vmax.f32 %v2749_v35, %v2785_v37  ;;  %v6048_v30 = vld [vmem:[%s5306_s30 + $0xfc] sm:$0xff]  ;;  %504 = vst.msk [vmem:[#allocation2 + $0xf0] sm:$0xff] %vm473_vm0, %v467_v33  ;;  %v1196_v33 = vld [vmem:[%s5306_s30 + $0x10b] sm:$0xff] }
 0x1a0   : > { %v1056_v40 = vpop.permute.xlu1 %1055 }
 0x1a1   : > { %v840_v41 = vpop.permute.xlu0 %839  ;;  %2838 = vst.msk [vmem:[#allocation4] sm:$0xff] %vm2697_vm11, %v2820_v38 }
 0x1a2   : > { %1146 = vst.msk [vmem:[#allocation2 + $0x90] sm:$0xff] %vm1127_vm4, %v1056_v40  ;;  %2155 = vrot.lane.b32.xlu1 %v2060_v39, %s5213_s21  ;;  %v1193_v39 = vld [vmem:[%s5306_s30 + $0xf3] sm:$0xff] }
 0x1a3   : > { %929 = vst.msk [vmem:[#allocation2 + $0x98] sm:$0xff] %vm909_vm3, %v840_v41  ;;  %1503 = vrot.lane.b32.xlu0 %v5884_v2, %s5210_s18  ;;  %v6061_v40 = vld [vmem:[%s5306_s30 + $0xfa] sm:$0xff] }
 0x1a4   : > { %v1924_v43 = vpop.permute.xlu1 %1923 }
 0x1a5   : > { %v1708_v44 = vpop.permute.xlu0 %1707  ;;  %2016 = vst.msk [vmem:[#allocation2 + $0x80] sm:$0xff] %vm1999_vm8, %v1924_v43 }
 0x1a6   : > { %1799 = vst.msk [vmem:[#allocation2 + $0x88] sm:$0xff] %vm1781_vm7, %v1708_v44  ;;  %853 = vrot.lane.b32.xlu1 %v5892_v5, %s5206_s14 }
 0x1a7   : > { %637 = vrot.lane.b32.xlu0 %v538_v42, %s5207_s15 }
 0x1a8   : > { %v1274_v46 = vpop.permute.xlu1 %1273 }
 0x1a9   : > { %v1058_v47 = vpop.permute.xlu0 %1057  ;;  %1364 = vst.msk [vmem:[#allocation2 + $0x90] sm:$0xff] %vm1345_vm5, %v1274_v46  ;;  %v2063_v46 = vld [vmem:[%s5306_s30 + $0xf6] sm:$0xff] }
 0x1aa   : > { %1147 = vst.msk [vmem:[#allocation2 + $0x98] sm:$0xff] %vm1127_vm4, %v1058_v47  ;;  %1721 = vrot.lane.b32.xlu1 %v5958_v45, %s5211_s19  ;;  %v1846_v47 = vld [vmem:[%s5306_s30 + $0xfd] sm:$0xff] }
 0x1ab   : > { %1505 = vrot.lane.b32.xlu0 %v5906_v10, %s5210_s18  ;;  %v539_v10 = vld [vmem:[%s5306_s30 + $0xe1] sm:$0xff] }
 0x1ac   : > { %v2142_v49 = vpop.permute.xlu1 %2141 }
 0x1ad   : > { %v1926_v50 = vpop.permute.xlu0 %1925  ;;  %2234 = vst.msk [vmem:[#allocation2 + $0x80] sm:$0xff] %vm2217_vm9, %v2142_v49 }
 0x1ae   : > { %2017 = vst.msk [vmem:[#allocation2 + $0x88] sm:$0xff] %vm1999_vm8, %v1926_v50  ;;  %1071 = vrot.lane.b32.xlu1 %v5967_v48, %s5208_s16  ;;  %v468_v50 = vld [vmem:[%s5306_s30 + $0xf8] sm:$0xff] }
 0x1af   : > { %855 = vrot.lane.b32.xlu0 %v5919_v19, %s5206_s14  ;;  %505 = vst.msk [vmem:[#allocation2 + $0xf8] sm:$0xff] %vm473_vm0, %v468_v50 }
 0x1b0   : > { %v1276_v53 = vpop.permute.xlu1 %1275  ;;  %v4847_v56 = vpop.f32.mrb[2].mxu0 }
 0x1b1   : > { %v624_v54 = vpop.permute.xlu0 %623  ;;  %1365 = vst.msk [vmem:[#allocation2 + $0x98] sm:$0xff] %vm1345_vm5, %v1276_v53  ;;  %v2498_v57 = vadd.f32 %v4847_v56, %v5902_v8  ;;  %v2492_v58 = vpop.f32.mrb[3].mxu0 }
 0x1b2   : > { %712 = vst.msk [vmem:[#allocation2 + $0xa0] sm:$0xff] %vm691_vm2, %v624_v54  ;;  %1939 = vrot.lane.b32.xlu1 %v1843_v51, %s5212_s24  ;;  %v2493_v59 = vadd.f32 %v5902_v8, %v2492_v58  ;;  %v1194_v51 = vld [vmem:[%s5306_s30 + $0xfb] sm:$0xff] }
 0x1b3   : > { %1723 = vrot.lane.b32.xlu0 %v5977_v52, %s5211_s19  ;;  %v2664_v62 = vmax.f32 %v2498_v57, 0.0 }
 0x1b4   : > { %v2144_v63 = vpop.permute.xlu1 %2143  ;;  %v2271_v1 = vld [vmem:[#allocation2 + $0x80] sm:$0xff]  ;;  %v2663_v2 = vmax.f32 %v2493_v59, 0.0 }
 0x1b5   : > { %v1492_v0 = vpop.permute.xlu0 %1491  ;;  %2235 = vst.msk [vmem:[#allocation2 + $0x88] sm:$0xff] %vm2217_vm9, %v2144_v63  ;;  %4866 = vmatprep.mubr.msk.f32.mxu0 %vm2303_vm10, %v2271_v1  ;;  %v2064_v59 = vld [vmem:[%s5306_s30 + $0xfe] sm:$0xff] }
 0x1b6   : > { %1582 = vst.msk [vmem:[#allocation2 + $0x90] sm:$0xff] %vm1563_vm6, %v1492_v0  ;;  %1289 = vrot.lane.b32.xlu1 %v1191_v60, %s5209_s17  ;;  %v6100_v1 = vld [vmem:[%s5306_s30 + $0x104] sm:$0xff] }
 0x1b7   : > { %2701 = vst.msk [vmem:[#allocation3 + $0x18] sm:$0xff] %vm2697_vm11, %v2664_v62  ;;  %1073 = vrot.lane.b32.xlu0 %v5990_v61, %s5208_s16  ;;  %2700 = vst.msk [vmem:[#allocation3 + $0x10] sm:$0xff] %vm2697_vm11, %v2663_v2  ;;  %v542_v62 = vld [vmem:[%s5306_s30 + $0xf9] sm:$0xff] }
 0x1b8   : > { %v842_v5 = vpop.permute.xlu1 %841 }
 0x1b9   : > { %v626_v6 = vpop.permute.xlu0 %625  ;;  %930 = vst.msk [vmem:[#allocation2 + $0xa0] sm:$0xff] %vm909_vm3, %v842_v5 }
 0x1ba   : > { %713 = vst.msk [vmem:[#allocation2 + $0xa8] sm:$0xff] %vm691_vm2, %v626_v6  ;;  %2157 = vrot.lane.b32.xlu1 %v2061_v3, %s5213_s21 }
 0x1bb   : > { %1941 = vrot.lane.b32.xlu0 %v1844_v4, %s5212_s24  ;;  %v2857_v4 = vld [vmem:[#allocation4] sm:$0xff] }
 0x1bc   : > { %v1710_v11 = vpop.permute.xlu1 %1709  ;;  %v2272_v13 = vld [vmem:[#allocation2 + $0x88] sm:$0xff] }
 0x1bd   : > { %v1494_v12 = vpop.permute.xlu0 %1493  ;;  %1800 = vst.msk [vmem:[#allocation2 + $0x90] sm:$0xff] %vm1781_vm7, %v1710_v11  ;;  %4867 = vmatmul.mubr.msk.f32.gmra.mrb[16].mxu0 %vm2303_vm10, %v2272_v13  ;;  %v1847_v11 = vld [vmem:[%s5306_s30 + $0x105] sm:$0xff] }
 0x1be   : > { %1583 = vst.msk [vmem:[#allocation2 + $0x98] sm:$0xff] %vm1563_vm6, %v1494_v12  ;;  %v2751_v14 = vld [vmem:[#allocation3 + $0x10] ss:$2 sm:$0xff]  ;;  %v2787_v15 = vld [vmem:[#allocation3 + $0x11] ss:$2 sm:$0xff]  ;;  %1291 = vrot.lane.b32.xlu1 %v1192_v9, %s5209_s17 }
 0x1bf   : > { %639 = vrot.lane.b32.xlu0 %v539_v10, %s5207_s15  ;;  %v2821_v16 = vmax.f32 %v2751_v14, %v2787_v15  ;;  %v6120_v12 = vld [vmem:[%s5306_s30 + $0x10c] sm:$0xff] }
 0x1c0   : > { %v1060_v18 = vpop.permute.xlu1 %1059 }
 0x1c1   : > { %v844_v19 = vpop.permute.xlu0 %843  ;;  %2839 = vst.msk [vmem:[#allocation4 + $0x8] sm:$0xff] %vm2697_vm11, %v2821_v16  ;;  %v469_v16 = vld [vmem:[%s5306_s30 + $0x100] sm:$0xff] }
 0x1c2   : > { %1148 = vst.msk [vmem:[#allocation2 + $0xa0] sm:$0xff] %vm1127_vm4, %v1060_v18  ;;  %2159 = vrot.lane.b32.xlu1 %v2062_v17, %s5213_s21 }
 0x1c3   : > { %931 = vst.msk [vmem:[#allocation2 + $0xa8] sm:$0xff] %vm909_vm3, %v844_v19  ;;  %1507 = vrot.lane.b32.xlu0 %v5958_v45, %s5210_s18 }
 0x1c4   : > { %v1928_v21 = vpop.permute.xlu1 %1927  ;;  %506 = vst.msk [vmem:[#allocation2 + $0x100] sm:$0xff] %vm473_vm0, %v469_v16 }
 0x1c5   : > { %v1712_v22 = vpop.permute.xlu0 %1711  ;;  %2018 = vst.msk [vmem:[#allocation2 + $0x90] sm:$0xff] %vm1999_vm8, %v1928_v21  ;;  %v6133_v21 = vld [vmem:[%s5306_s30 + $0x10a] sm:$0xff] }
 0x1c6   : > { %1801 = vst.msk [vmem:[#allocation2 + $0x98] sm:$0xff] %vm1781_vm7, %v1712_v22  ;;  %857 = vrot.lane.b32.xlu1 %v5967_v48, %s5206_s14 }
 0x1c7   : > { %641 = vrot.lane.b32.xlu0 %v540_v20, %s5207_s15  ;;  %v1195_v20 = vld [vmem:[%s5306_s30 + $0x103] sm:$0xff] }
 0x1c8   : > { %v1278_v24 = vpop.permute.xlu1 %1277 }
 0x1c9   : > { %v1062_v25 = vpop.permute.xlu0 %1061  ;;  %1366 = vst.msk [vmem:[#allocation2 + $0xa0] sm:$0xff] %vm1345_vm5, %v1278_v24 }
 0x1ca   : > { %1149 = vst.msk [vmem:[#allocation2 + $0xa8] sm:$0xff] %vm1127_vm4, %v1062_v25  ;;  %1725 = vrot.lane.b32.xlu1 %v6029_v23, %s5211_s19 }
 0x1cb   : > { %1509 = vrot.lane.b32.xlu0 %v5977_v52, %s5210_s18  ;;  %v541_v52 = vld [vmem:[%s5306_s30 + $0xf1] sm:$0xff] }
 0x1cc   : > { %v2146_v27 = vpop.permute.xlu1 %2145 }
 0x1cd   : > { %v1930_v28 = vpop.permute.xlu0 %1929  ;;  %2236 = vst.msk [vmem:[#allocation2 + $0x90] sm:$0xff] %vm2217_vm9, %v2146_v27 }
 0x1ce   : > { %2019 = vst.msk [vmem:[#allocation2 + $0x98] sm:$0xff] %vm1999_vm8, %v1930_v28  ;;  %1075 = vrot.lane.b32.xlu1 %v6038_v26, %s5208_s16  ;;  %v2065_v28 = vld [vmem:[%s5306_s30 + $0x106] sm:$0xff] }
 0x1cf   : > { %859 = vrot.lane.b32.xlu0 %v5990_v61, %s5206_s14 }
 0x1d0   : > { %v1280_v31 = vpop.permute.xlu1 %1279  ;;  %v4850_v34 = vpop.f32.mrb[4].mxu0 }
 0x1d1   : > { %v628_v32 = vpop.permute.xlu0 %627  ;;  %1367 = vst.msk [vmem:[#allocation2 + $0xa8] sm:$0xff] %vm1345_vm5, %v1280_v31  ;;  %v2508_v35 = vadd.f32 %v4850_v34, %v5902_v8  ;;  %v2502_v37 = vpop.f32.mrb[5].mxu0  ;;  %v543_v34 = vld [vmem:[%s5306_s30 + $0x101] sm:$0xff] }
 0x1d2   : > { %714 = vst.msk [vmem:[#allocation2 + $0xb0] sm:$0xff] %vm691_vm2, %v628_v32  ;;  %1943 = vrot.lane.b32.xlu1 %v1845_v29, %s5212_s24  ;;  %v2503_v38 = vadd.f32 %v5902_v8, %v2502_v37  ;;  %v1848_v29 = vld [vmem:[%s5306_s30 + $0x10d] sm:$0xff] }
 0x1d3   : > { %1727 = vrot.lane.b32.xlu0 %v6048_v30, %s5211_s19  ;;  %v2666_v41 = vmax.f32 %v2508_v35, 0.0  ;;  %v470_v32 = vld [vmem:[%s5306_s30 + $0x108] sm:$0xff] }
 0x1d4   : > { %v2148_v42 = vpop.permute.xlu1 %2147  ;;  %v2273_v44 = vld [vmem:[#allocation2 + $0x90] sm:$0xff]  ;;  %v2665_v45 = vmax.f32 %v2503_v38, 0.0  ;;  %507 = vst.msk [vmem:[#allocation2 + $0x108] sm:$0xff] %vm473_vm0, %v470_v32  ;;  %v981_v32 = vld [vmem:[%s5306_s30 + $0x122] sm:$0xff] }
 0x1d5   : > { %v1496_v43 = vpop.permute.xlu0 %1495  ;;  %2237 = vst.msk [vmem:[#allocation2 + $0x98] sm:$0xff] %vm2217_vm9, %v2148_v42  ;;  %4869 = vmatprep.mubr.msk.f32.mxu0 %vm2303_vm10, %v2273_v44  ;;  %v2066_v42 = vld [vmem:[%s5306_s30 + $0x10e] sm:$0xff] }
 0x1d6   : > { %1584 = vst.msk [vmem:[#allocation2 + $0xa0] sm:$0xff] %vm1563_vm6, %v1496_v43  ;;  %1293 = vrot.lane.b32.xlu1 %v1193_v39, %s5209_s17 }
 0x1d7   : > { %2703 = vst.msk [vmem:[#allocation3 + $0x28] sm:$0xff] %vm2697_vm11, %v2666_v41  ;;  %1077 = vrot.lane.b32.xlu0 %v6061_v40, %s5208_s16  ;;  %2702 = vst.msk [vmem:[#allocation3 + $0x20] sm:$0xff] %vm2697_vm11, %v2665_v45  ;;  %v544_v45 = vld [vmem:[%s5306_s30 + $0x109] sm:$0xff] }
 0x1d8   : > { %v846_v48 = vpop.permute.xlu1 %845 }
 0x1d9   : > { %v630_v49 = vpop.permute.xlu0 %629  ;;  %932 = vst.msk [vmem:[#allocation2 + $0xb0] sm:$0xff] %vm909_vm3, %v846_v48  ;;  %v6173_v48 = vld [vmem:[%s5306_s30 + $0x114] sm:$0xff] }
 0x1da   : > { %715 = vst.msk [vmem:[#allocation2 + $0xb8] sm:$0xff] %vm691_vm2, %v630_v49  ;;  %2161 = vrot.lane.b32.xlu1 %v2063_v46, %s5213_s21 }
 0x1db   : > { %1945 = vrot.lane.b32.xlu0 %v1846_v47, %s5212_s24 }
 0x1dc   : > { %v1714_v53 = vpop.permute.xlu1 %1713  ;;  %v2274_v55 = vld [vmem:[#allocation2 + $0x98] sm:$0xff] }
 0x1dd   : > { %v1498_v54 = vpop.permute.xlu0 %1497  ;;  %1802 = vst.msk [vmem:[#allocation2 + $0xa0] sm:$0xff] %vm1781_vm7, %v1714_v53  ;;  %4870 = vmatmul.mubr.msk.f32.gmra.mrb[18].mxu0 %vm2303_vm10, %v2274_v55  ;;  %v6192_v55 = vld [vmem:[%s5306_s30 + $0x11c] sm:$0xff] }
 0x1de   : > { %1585 = vst.msk [vmem:[#allocation2 + $0xa8] sm:$0xff] %vm1563_vm6, %v1498_v54  ;;  %v2753_v56 = vld [vmem:[#allocation3 + $0x20] ss:$2 sm:$0xff]  ;;  %v2789_v57 = vld [vmem:[#allocation3 + $0x21] ss:$2 sm:$0xff]  ;;  %1295 = vrot.lane.b32.xlu1 %v1194_v51, %s5209_s17  ;;  %v6182_v51 = vld [vmem:[%s5306_s30 + $0x112] sm:$0xff] }
 0x1df   : > { %643 = vrot.lane.b32.xlu0 %v541_v52, %s5207_s15  ;;  %v2822_v58 = vmax.f32 %v2753_v56, %v2789_v57  ;;  %v1849_v54 = vld [vmem:[%s5306_s30 + $0x115] sm:$0xff] }
 0x1e0   : > { %v1064_v60 = vpop.permute.xlu1 %1063 }
 0x1e1   : > { %v848_v61 = vpop.permute.xlu0 %847  ;;  %2840 = vst.msk [vmem:[#allocation4 + $0x10] sm:$0xff] %vm2697_vm11, %v2822_v58 }
 0x1e2   : > { %1150 = vst.msk [vmem:[#allocation2 + $0xb0] sm:$0xff] %vm1127_vm4, %v1064_v60  ;;  %2163 = vrot.lane.b32.xlu1 %v2064_v59, %s5213_s21  ;;  %v471_v59 = vld [vmem:[%s5306_s30 + $0x110] sm:$0xff] }
 0x1e3   : > { %933 = vst.msk [vmem:[#allocation2 + $0xb8] sm:$0xff] %vm909_vm3, %v848_v61  ;;  %1511 = vrot.lane.b32.xlu0 %v6029_v23, %s5210_s18 }
 0x1e4   : > { %v1932_v63 = vpop.permute.xlu1 %1931  ;;  %508 = vst.msk [vmem:[#allocation2 + $0x110] sm:$0xff] %vm473_vm0, %v471_v59  ;;  %vm1381_vm0 = vcmask 160896  }
 0x1e5   : > { %v1716_v0 = vpop.permute.xlu0 %1715  ;;  %2020 = vst.msk [vmem:[#allocation2 + $0xa0] sm:$0xff] %vm1999_vm8, %v1932_v63  ;;  %v1197_v63 = vld [vmem:[%s5306_s30 + $0x113] sm:$0xff] }
 0x1e6   : > { %1803 = vst.msk [vmem:[#allocation2 + $0xa8] sm:$0xff] %vm1781_vm7, %v1716_v0  ;;  %861 = vrot.lane.b32.xlu1 %v6038_v26, %s5206_s14  ;;  %v980_v0 = vld [vmem:[%s5306_s30 + $0x11a] sm:$0xff] }
 0x1e7   : > { %645 = vrot.lane.b32.xlu0 %v542_v62, %s5207_s15 }
 0x1e8   : > { %v1282_v2 = vpop.permute.xlu1 %1281  ;;  %v2858_v5 = vld [vmem:[#allocation4 + $0x9] sm:$0xff] }
 0x1e9   : > { %v1066_v3 = vpop.permute.xlu0 %1065  ;;  %1368 = vst.msk [vmem:[#allocation2 + $0xb0] sm:$0xff] %vm1345_vm5, %v1282_v2  ;;  %v2859_v6 = vmax.f32 %v2857_v4, %v2858_v5 }
 0x1ea   : > { %1151 = vst.msk [vmem:[#allocation2 + $0xb8] sm:$0xff] %vm1127_vm4, %v1066_v3  ;;  %1729 = vrot.lane.b32.xlu1 %v6100_v1, %s5211_s19 }
 0x1eb   : > { %1513 = vrot.lane.b32.xlu0 %v6048_v30, %s5210_s18  ;;  %2860 = vst.msk [vmem:[#allocation5 + $0xb] sm:$0xff] %vm2697_vm11, %v2859_v6  ;;  %v2067_v6 = vld [vmem:[%s5306_s30 + $0x116] sm:$0xff] }
 0x1ec   : > { %v2150_v9 = vpop.permute.xlu1 %2149 }
 0x1ed   : > { %v1934_v10 = vpop.permute.xlu0 %1933  ;;  %2238 = vst.msk [vmem:[#allocation2 + $0xa0] sm:$0xff] %vm2217_vm9, %v2150_v9 }
 0x1ee   : > { %2021 = vst.msk [vmem:[#allocation2 + $0xa8] sm:$0xff] %vm1999_vm8, %v1934_v10  ;;  %1079 = vrot.lane.b32.xlu1 %v6109_v7, %s5208_s16 }
 0x1ef   : > { %863 = vrot.lane.b32.xlu0 %v6061_v40, %s5206_s14 }
 0x1f0   : > { %v1284_v13 = vpop.permute.xlu1 %1283  ;;  %v4853_v15 = vpop.f32.mrb[6].mxu0 }
 0x1f1   : > { %v632_v14 = vpop.permute.xlu0 %631  ;;  %1369 = vst.msk [vmem:[#allocation2 + $0xb8] sm:$0xff] %vm1345_vm5, %v1284_v13  ;;  %v2518_v17 = vadd.f32 %v4853_v15, %v5902_v8  ;;  %v2512_v18 = vpop.f32.mrb[7].mxu0  ;;  %v545_v13 = vld [vmem:[%s5306_s30 + $0x111] sm:$0xff] }
 0x1f2   : > { %716 = vst.msk [vmem:[#allocation2 + $0xc0] sm:$0xff] %vm691_vm2, %v632_v14  ;;  %1947 = vrot.lane.b32.xlu1 %v1847_v11, %s5212_s24  ;;  %v2513_v19 = vadd.f32 %v5902_v8, %v2512_v18  ;;  %v2890_v22 = vld [vmem:[#allocation5 + $0x8] sm:$0xff] }
 0x1f3   : > { %1731 = vrot.lane.b32.xlu0 %v6120_v12, %s5211_s19  ;;  %v2668_v23 = vmax.f32 %v2518_v17, 0.0  ;;  %2900 = vst.msk [vmem:[#allocation6 + $0x10] sm:$0xff] %vm2697_vm11, %v2890_v22  ;;  %v472_v11 = vld [vmem:[%s5306_s30 + $0x118] sm:$0x3f] }
 0x1f4   : > { %v2152_v24 = vpop.permute.xlu1 %2151  ;;  %v2275_v26 = vld [vmem:[#allocation2 + $0xa0] sm:$0xff]  ;;  %v2667_v27 = vmax.f32 %v2513_v19, 0.0  ;;  %510 = vst.msk [vmem:[#allocation2 + $0x118] sm:$0x3f] %vm509_vm12, %v472_v11  ;;  %vm3269_vm12 = vcmask 917248  }
 0x1f5   : > { %v1500_v25 = vpop.permute.xlu0 %1499  ;;  %2239 = vst.msk [vmem:[#allocation2 + $0xa8] sm:$0xff] %vm2217_vm9, %v2152_v24  ;;  %4872 = vmatprep.mubr.msk.f32.mxu0 %vm2303_vm10, %v2275_v26  ;;  %v6240_v26 = vld [vmem:[%s5306_s30 + $0x124] sm:$0xff] }
 0x1f6   : > { %1586 = vst.msk [vmem:[#allocation2 + $0xb0] sm:$0xff] %vm1563_vm6, %v1500_v25  ;;  %1297 = vrot.lane.b32.xlu1 %v1195_v20, %s5209_s17  ;;  %v2068_v20 = vld [vmem:[%s5306_s30 + $0x11e] sm:$0xff] }
 0x1f7   : > { %2705 = vst.msk [vmem:[#allocation3 + $0x38] sm:$0xff] %vm2697_vm11, %v2668_v23  ;;  %1081 = vrot.lane.b32.xlu0 %v6133_v21, %s5208_s16  ;;  %2704 = vst.msk [vmem:[#allocation3 + $0x30] sm:$0xff] %vm2697_vm11, %v2667_v27  ;;  %v546_v23 = vld [vmem:[%s5306_s30 + $0x119] sm:$0x3f] }
 0x1f8   : > { %v850_v30 = vpop.permute.xlu1 %849 }
 0x1f9   : > { %v634_v31 = vpop.permute.xlu0 %633  ;;  %934 = vst.msk [vmem:[#allocation2 + $0xc0] sm:$0xff] %vm909_vm3, %v850_v30 }
 0x1fa   : > { %717 = vst.msk [vmem:[#allocation2 + $0xc8] sm:$0xff] %vm691_vm2, %v634_v31  ;;  %2165 = vrot.lane.b32.xlu1 %v2065_v28, %s5213_s21 }
 0x1fb   : > { %1949 = vrot.lane.b32.xlu0 %v1848_v29, %s5212_s24 }
 0x1fc   : > { %v1718_v35 = vpop.permute.xlu1 %1717  ;;  %v2276_v38 = vld [vmem:[#allocation2 + $0xa8] sm:$0xff] }
 0x1fd   : > { %v1502_v37 = vpop.permute.xlu0 %1501  ;;  %1804 = vst.msk [vmem:[#allocation2 + $0xb0] sm:$0xff] %vm1781_vm7, %v1718_v35  ;;  %4873 = vmatmul.mubr.msk.f32.gmra.mrb[20].mxu0 %vm2303_vm10, %v2276_v38  ;;  %v1634_v38 = vld [vmem:[%s5306_s30 + $0x12c] sm:$0xff] }
 0x1fe   : > { %1587 = vst.msk [vmem:[#allocation2 + $0xb8] sm:$0xff] %vm1563_vm6, %v1502_v37  ;;  %v2755_v39 = vld [vmem:[#allocation3 + $0x30] ss:$2 sm:$0xff]  ;;  %v2791_v40 = vld [vmem:[#allocation3 + $0x31] ss:$2 sm:$0xff]  ;;  %1299 = vrot.lane.b32.xlu1 %v1196_v33, %s5209_s17  ;;  %v1851_v37 = vld [vmem:[%s5306_s30 + $0x125] sm:$0xff] }
 0x1ff   : > { %647 = vrot.lane.b32.xlu0 %v543_v34, %s5207_s15  ;;  %v2823_v41 = vmax.f32 %v2755_v39, %v2791_v40  ;;  %v764_v33 = vld [vmem:[%s5306_s30 + $0x11a] sm:$0x3f] }
 0x200   : > { %v1068_v43 = vpop.permute.xlu1 %1067 }
 0x201   : > { %v852_v44 = vpop.permute.xlu0 %851  ;;  %2841 = vst.msk [vmem:[#allocation4 + $0x18] sm:$0xff] %vm2697_vm11, %v2823_v41 }
 0x202   : > { %1152 = vst.msk [vmem:[#allocation2 + $0xc0] sm:$0xff] %vm1127_vm4, %v1068_v43  ;;  %2167 = vrot.lane.b32.xlu1 %v2066_v42, %s5213_s21 }
 0x203   : > { %935 = vst.msk [vmem:[#allocation2 + $0xc8] sm:$0xff] %vm909_vm3, %v852_v44  ;;  %1515 = vrot.lane.b32.xlu0 %v6100_v1, %s5210_s18 }
 0x204   : > { %v1936_v46 = vpop.permute.xlu1 %1935 }
 0x205   : > { %v1720_v47 = vpop.permute.xlu0 %1719  ;;  %2022 = vst.msk [vmem:[#allocation2 + $0xb0] sm:$0xff] %vm1999_vm8, %v1936_v46  ;;  %v1199_v46 = vld [vmem:[%s5306_s30 + $0x123] sm:$0xff] }
 0x206   : > { %1805 = vst.msk [vmem:[#allocation2 + $0xb8] sm:$0xff] %vm1781_vm7, %v1720_v47  ;;  %865 = vrot.lane.b32.xlu1 %v6109_v7, %s5206_s14  ;;  %v1850_v7 = vld [vmem:[%s5306_s30 + $0x11d] sm:$0xff]  ;;  %v982_v47 = vld [vmem:[%s5306_s30 + $0x12a] sm:$0x3f] }
 0x207   : > { %649 = vrot.lane.b32.xlu0 %v544_v45, %s5207_s15 }
 0x208   : > { %v1286_v49 = vpop.permute.xlu1 %1285  ;;  %v2861_v27 = vld [vmem:[#allocation4 + $0x12] sm:$0xff] }
 0x209   : > { %v1070_v50 = vpop.permute.xlu0 %1069  ;;  %1370 = vst.msk [vmem:[#allocation2 + $0xc0] sm:$0xff] %vm1345_vm5, %v1286_v49 }
 0x20a   : > { %1153 = vst.msk [vmem:[#allocation2 + $0xc8] sm:$0xff] %vm1127_vm4, %v1070_v50  ;;  %1733 = vrot.lane.b32.xlu1 %v6173_v48, %s5211_s19 }
 0x20b   : > { %1517 = vrot.lane.b32.xlu0 %v6120_v12, %s5210_s18  ;;  %v1198_v12 = vld [vmem:[%s5306_s30 + $0x11b] sm:$0xff] }
 0x20c   : > { %v2154_v52 = vpop.permute.xlu1 %2153 }
 0x20d   : > { %v1938_v53 = vpop.permute.xlu0 %1937  ;;  %2240 = vst.msk [vmem:[#allocation2 + $0xb0] sm:$0xff] %vm2217_vm9, %v2154_v52 }
 0x20e   : > { %2023 = vst.msk [vmem:[#allocation2 + $0xb8] sm:$0xff] %vm1999_vm8, %v1938_v53  ;;  %1083 = vrot.lane.b32.xlu1 %v6182_v51, %s5208_s16 }
 0x20f   : > { %867 = vrot.lane.b32.xlu0 %v6133_v21, %s5206_s14 }
 0x210   : > { %v1288_v56 = vpop.permute.xlu1 %1287  ;;  %v4856_v58 = vpop.f32.mrb[8].mxu0 }
 0x211   : > { %v636_v57 = vpop.permute.xlu0 %635  ;;  %1371 = vst.msk [vmem:[#allocation2 + $0xc8] sm:$0xff] %vm1345_vm5, %v1288_v56  ;;  %v2528_v60 = vadd.f32 %v4856_v58, %v5902_v8  ;;  %v2522_v61 = vpop.f32.mrb[9].mxu0  ;;  %v3384_v58 = vld [vmem:[%s7235_s3 + $0x8] sm:$0xff] }
 0x212   : > { %718 = vst.msk [vmem:[#allocation2 + $0xd0] sm:$0xff] %vm691_vm2, %v636_v57  ;;  %1951 = vrot.lane.b32.xlu1 %v1849_v54, %s5212_s24  ;;  %v2523_v62 = vadd.f32 %v5902_v8, %v2522_v61  ;;  %v1852_v54 = vld [vmem:[%s5306_s30 + $0x12d] sm:$0xff]  ;;  %v3383_v57 = vld [vmem:[%s7235_s3] sm:$0xff] }
 0x213   : > { %1735 = vrot.lane.b32.xlu0 %v6192_v55, %s5211_s19  ;;  %v2670_v1 = vmax.f32 %v2528_v60, 0.0  ;;  %v4995_v60 = vpack.c.bf16 %v3384_v58, %v3383_v57  ;;  %v1200_v61 = vld [vmem:[%s5306_s30 + $0x12b] sm:$0x3f]  ;;  %v3398_v58 = vld [vmem:[%s7235_s3 + $0x78] sm:$0xff] }
 0x214   : > { %v2156_v2 = vpop.permute.xlu1 %2155  ;;  %v2277_v4 = vld [vmem:[#allocation2 + $0xb0] sm:$0xff]  ;;  %v2669_v5 = vmax.f32 %v2523_v62, 0.0  ;;  %v5215_v62 = vmov 0.0|0.0  }
 0x215   : > { %v1504_v3 = vpop.permute.xlu0 %1503  ;;  %2241 = vst.msk [vmem:[#allocation2 + $0xb8] sm:$0xff] %vm2217_vm9, %v2156_v2  ;;  %4875 = vmatprep.mubr.msk.f32.mxu0 %vm2303_vm10, %v2277_v4  ;;  %4994 = vmatprep.subr.bf16.mxu1 %v5215_v62  ;;  %v3385_v2 = vld [vmem:[%s7235_s3 + $0x10] sm:$0xff] }
 0x216   : > { %1588 = vst.msk [vmem:[#allocation2 + $0xc0] sm:$0xff] %vm1563_vm6, %v1504_v3  ;;  %1301 = vrot.lane.b32.xlu1 %v1197_v63, %s5209_s17  ;;  %4996 = vmatpush1.bf16.msra.mxu1 %v4995_v60  ;;  %v3386_v3 = vld [vmem:[%s7235_s3 + $0x18] sm:$0xff]  ;;  %v3397_v57 = vld [vmem:[%s7235_s3 + $0x70] sm:$0xff] }
 0x217   : > { %2707 = vst.msk [vmem:[#allocation3 + $0x48] sm:$0xff] %vm2697_vm11, %v2670_v1  ;;  %1085 = vrot.lane.b32.xlu0 %v980_v0, %s5208_s16  ;;  %2706 = vst.msk [vmem:[#allocation3 + $0x40] sm:$0xff] %vm2697_vm11, %v2669_v5  ;;  %5053 = vmatprep.subr.bf16.mxu0 %v5215_v62 }
 0x218   : > { %v854_v9 = vpop.permute.xlu1 %853  ;;  %4997 = vmatprep.subr.bf16.mxu1 %v5215_v62 }
 0x219   : > { %v638_v10 = vpop.permute.xlu0 %637  ;;  %936 = vst.msk [vmem:[#allocation2 + $0xd0] sm:$0xff] %vm909_vm3, %v854_v9  ;;  %v1418_v9 = vld [vmem:[%s5306_s30 + $0x12c] sm:$0x3f] }
 0x21a   : > { %719 = vst.msk [vmem:[#allocation2 + $0xd8] sm:$0xff] %vm691_vm2, %v638_v10  ;;  %2169 = vrot.lane.b32.xlu1 %v2067_v6, %s5213_s21  ;;  %v4998_v6 = vpack.c.bf16 %v3386_v3, %v3385_v2  ;;  %v2070_v10 = vld [vmem:[%s5306_s30 + $0x12e] sm:$0xff] }
 0x21b   : > { %1953 = vrot.lane.b32.xlu0 %v1850_v7, %s5212_s24  ;;  %v3400_v2 = vld [vmem:[%s7235_s3 + $0x88] sm:$0xff] }
 0x21c   : > { %v1722_v14 = vpop.permute.xlu1 %1721  ;;  %v2278_v16 = vld [vmem:[#allocation2 + $0xb8] sm:$0xff]  ;;  %4999 = vmatpush1.bf16.msra.mxu1 %v4998_v6 }
 0x21d   : > { %v1506_v15 = vpop.permute.xlu0 %1505  ;;  %1806 = vst.msk [vmem:[#allocation2 + $0xc0] sm:$0xff] %vm1781_vm7, %v1722_v14  ;;  %4876 = vmatmul.mubr.msk.f32.gmra.mrb[22].mxu0 %vm2303_vm10, %v2278_v16  ;;  %5000 = vmatprep.subr.bf16.mxu1 %v5215_v62  ;;  %v3388_v14 = vld [vmem:[%s7235_s3 + $0x28] sm:$0xff]  ;;  %v1636_v16 = vld [vmem:[%s5306_s30 + $0x13c] sm:$0x3f] }
 0x21e   : > { %1589 = vst.msk [vmem:[#allocation2 + $0xc8] sm:$0xff] %vm1563_vm6, %v1506_v15  ;;  %v2757_v17 = vld [vmem:[#allocation3 + $0x40] ss:$2 sm:$0xff]  ;;  %v2793_v18 = vld [vmem:[#allocation3 + $0x41] ss:$2 sm:$0xff]  ;;  %1303 = vrot.lane.b32.xlu1 %v1198_v12, %s5209_s17 }
 0x21f   : > { %651 = vrot.lane.b32.xlu0 %v545_v13, %s5207_s15  ;;  %v2824_v19 = vmax.f32 %v2757_v17, %v2793_v18  ;;  %v3387_v13 = vld [vmem:[%s7235_s3 + $0x20] sm:$0xff]  ;;  %v1635_v17 = vld [vmem:[%s5306_s30 + $0x134] sm:$0xff] }
 0x220   : > { %v1072_v21 = vpop.permute.xlu1 %1071  ;;  %v5001_v15 = vpack.c.bf16 %v3388_v14, %v3387_v13 }
 0x221   : > { %v856_v22 = vpop.permute.xlu0 %855  ;;  %2842 = vst.msk [vmem:[#allocation4 + $0x20] sm:$0xff] %vm2697_vm11, %v2824_v19 }
 0x222   : > { %1154 = vst.msk [vmem:[#allocation2 + $0xd0] sm:$0xff] %vm1127_vm4, %v1072_v21  ;;  %2171 = vrot.lane.b32.xlu1 %v2068_v20, %s5213_s21  ;;  %5002 = vmatpush1.bf16.msra.mxu1 %v5001_v15  ;;  %v2889_v20 = vld [vmem:[#allocation5] sm:$0xff] }
 0x223   : > { %937 = vst.msk [vmem:[#allocation2 + $0xd8] sm:$0xff] %vm909_vm3, %v856_v22  ;;  %1519 = vrot.lane.b32.xlu0 %v6173_v48, %s5210_s18  ;;  %5003 = vmatprep.subr.bf16.mxu1 %v5215_v62  ;;  %v3389_v21 = vld [vmem:[%s7235_s3 + $0x30] sm:$0xff]  ;;  %v3390_v22 = vld [vmem:[%s7235_s3 + $0x38] sm:$0xff] }
 0x224   : > { %v1940_v24 = vpop.permute.xlu1 %1939  ;;  %2899 = vst.msk [vmem:[#allocation6] sm:$0xff] %vm2697_vm11, %v2889_v20 }
 0x225   : > { %v1724_v25 = vpop.permute.xlu0 %1723  ;;  %2024 = vst.msk [vmem:[#allocation2 + $0xc0] sm:$0xff] %vm1999_vm8, %v1940_v24  ;;  %v1854_v24 = vld [vmem:[%s5306_s30 + $0x13d] sm:$0x3f] }
 0x226   : > { %1807 = vst.msk [vmem:[#allocation2 + $0xc8] sm:$0xff] %vm1781_vm7, %v1724_v25  ;;  %869 = vrot.lane.b32.xlu1 %v6182_v51, %s5206_s14  ;;  %v1853_v25 = vld [vmem:[%s5306_s30 + $0x135] sm:$0xff] }
 0x227   : > { %653 = vrot.lane.b32.xlu0 %v546_v23, %s5207_s15  ;;  %v5004_v23 = vpack.c.bf16 %v3390_v22, %v3389_v21  ;;  %s5216_s15 = smov 64  }
 0x228   : > { %v2862_v28 = vld [vmem:[#allocation4 + $0x1b] sm:$0xff]  ;;  %v1290_v29 = vpop.permute.xlu1 %1289 }
 0x229   : > { %v1074_v30 = vpop.permute.xlu0 %1073  ;;  %v2863_v31 = vmax.f32 %v2861_v27, %v2862_v28  ;;  %1372 = vst.msk [vmem:[#allocation2 + $0xd0] sm:$0xff] %vm1345_vm5, %v1290_v29  ;;  %5005 = vmatpush1.bf16.msra.mxu1 %v5004_v23  ;;  %v3391_v28 = vld [vmem:[%s7235_s3 + $0x40] sm:$0xff]  ;;  %v3392_v29 = vld [vmem:[%s7235_s3 + $0x48] sm:$0xff] }
 0x22a   : > { %1155 = vst.msk [vmem:[#allocation2 + $0xd8] sm:$0xff] %vm1127_vm4, %v1074_v30  ;;  %1737 = vrot.lane.b32.xlu1 %v6240_v26, %s5211_s19  ;;  %5006 = vmatprep.subr.bf16.mxu1 %v5215_v62  ;;  %v5007_v30 = vpack.c.bf16 %v3392_v29, %v3391_v28 }
 0x22b   : > { %1521 = vrot.lane.b32.xlu0 %v6192_v55, %s5210_s18  ;;  %2864 = vst.msk [vmem:[#allocation5 + $0x15] sm:$0xff] %vm2697_vm11, %v2863_v31  ;;  %v2072_v31 = vld [vmem:[%s5306_s30 + $0x13e] sm:$0x3f] }
 0x22c   : > { %v2158_v34 = vpop.permute.xlu1 %2157 }
 0x22d   : > { %v1942_v35 = vpop.permute.xlu0 %1941  ;;  %2242 = vst.msk [vmem:[#allocation2 + $0xc0] sm:$0xff] %vm2217_vm9, %v2158_v34  ;;  %5008 = vmatpush1.bf16.msra.mxu1 %v5007_v30 }
 0x22e   : > { %2025 = vst.msk [vmem:[#allocation2 + $0xc8] sm:$0xff] %vm1999_vm8, %v1942_v35  ;;  %1087 = vrot.lane.b32.xlu1 %v981_v32, %s5208_s16  ;;  %v2071_v32 = vld [vmem:[%s5306_s30 + $0x136] sm:$0xff]  ;;  %5009 = vmatprep.subr.bf16.mxu1 %v5215_v62 }
 0x22f   : > { %871 = vrot.lane.b32.xlu0 %v764_v33, %s5206_s14  ;;  %v3393_v35 = vld [vmem:[%s7235_s3 + $0x50] sm:$0xff] }
 0x230   : > { %v1292_v39 = vpop.permute.xlu1 %1291  ;;  %v4859_v41 = vpop.f32.mrb[10].mxu0 }
 0x231   : > { %v640_v40 = vpop.permute.xlu0 %639  ;;  %1373 = vst.msk [vmem:[#allocation2 + $0xd8] sm:$0xff] %vm1345_vm5, %v1292_v39  ;;  %v2538_v42 = vadd.f32 %v4859_v41, %v5902_v8  ;;  %v2532_v43 = vpop.f32.mrb[11].mxu0  ;;  %v2971_v39 = vld [vmem:[#allocation5 + $0x2] sm:$0xff] }
 0x232   : > { %720 = vst.msk [vmem:[#allocation2 + $0xe0] sm:$0xff] %vm691_vm2, %v640_v40  ;;  %1955 = vrot.lane.b32.xlu1 %v1851_v37, %s5212_s24  ;;  %v3343_v44 = vld [vmem:[#allocation5 + $0x16] sm:$0xff]  ;;  %v2533_v45 = vadd.f32 %v5902_v8, %v2532_v43  ;;  %v3394_v37 = vld [vmem:[%s7235_s3 + $0x58] sm:$0xff] }
 0x233   : > { %1739 = vrot.lane.b32.xlu0 %v1634_v38, %s5211_s19  ;;  %3353 = vst.msk [vmem:[#allocation6 + $0x8] sm:$0xff] %vm2697_vm11, %v3343_v44  ;;  %v2672_v48 = vmax.f32 %v2538_v42, 0.0  ;;  %v2891_v52 = vld [vmem:[#allocation5 + $0x10] sm:$0xff]  ;;  %v5010_v38 = vpack.c.bf16 %v3394_v37, %v3393_v35  ;;  %v2909_v40 = vld [vmem:[#allocation5 + $0x1] sm:$0xff] }
 0x234   : > { %v2160_v49 = vpop.permute.xlu1 %2159  ;;  %v2279_v51 = vld [vmem:[#allocation2 + $0xc0] sm:$0xff]  ;;  %v2671_v53 = vmax.f32 %v2533_v45, 0.0  ;;  %2901 = vst.msk [vmem:[#allocation6 + $0x20] sm:$0xff] %vm2697_vm11, %v2891_v52  ;;  %v3396_v45 = vld [vmem:[%s7235_s3 + $0x68] sm:$0xff] }
 0x235   : > { %v1508_v50 = vpop.permute.xlu0 %1507  ;;  %2243 = vst.msk [vmem:[#allocation2 + $0xc8] sm:$0xff] %vm2217_vm9, %v2160_v49  ;;  %4878 = vmatprep.mubr.msk.f32.mxu0 %vm2303_vm10, %v2279_v51  ;;  %v2069_v8 = vld [vmem:[%s5306_s30 + $0x126] sm:$0xff]  ;;  %5011 = vmatpush1.bf16.msra.mxu1 %v5010_v38 }
 0x236   : > { %1590 = vst.msk [vmem:[#allocation2 + $0xd0] sm:$0xff] %vm1563_vm6, %v1508_v50  ;;  %1305 = vrot.lane.b32.xlu1 %v1199_v46, %s5209_s17  ;;  %5012 = vmatprep.subr.bf16.mxu1 %v5215_v62  ;;  %v3395_v44 = vld [vmem:[%s7235_s3 + $0x60] sm:$0xff] }
 0x237   : > { %2709 = vst.msk [vmem:[#allocation3 + $0x58] sm:$0xff] %vm2697_vm11, %v2672_v48  ;;  %1089 = vrot.lane.b32.xlu0 %v982_v47, %s5208_s16  ;;  %2708 = vst.msk [vmem:[#allocation3 + $0x50] sm:$0xff] %vm2697_vm11, %v2671_v53  ;;  %v6369_v46 = vld [vmem:[%s7234_s2] ss:$0 sm:$0xff]  ;;  %v5013_v49 = vpack.c.bf16 %v3396_v45, %v3395_v44  ;;  %v3281_v14 = vld [vmem:[#allocation5 + $0x15] sm:$0xff] }
 0x238   : > { %v858_v55 = vpop.permute.xlu1 %857  ;;  %v3034_v15 = vld [vmem:[#allocation5 + $0x12] sm:$0xff] }
 0x239   : > { %v642_v56 = vpop.permute.xlu0 %641  ;;  %938 = vst.msk [vmem:[#allocation2 + $0xe0] sm:$0xff] %vm909_vm3, %v858_v55  ;;  %5014 = vmatpush1.bf16.msra.mxu1 %v5013_v49 }
 0x23a   : > { %721 = vst.msk [vmem:[#allocation2 + $0xe8] sm:$0xff] %vm691_vm2, %v642_v56  ;;  %2173 = vrot.lane.b32.xlu1 %v2069_v8, %s5213_s21  ;;  %v3364_v59 = vld [vmem:[#allocation6 + $0x8] sm:$0xff]  ;;  %5015 = vmatprep.subr.bf16.mxu1 %v5215_v62 }
 0x23b   : > { %1957 = vrot.lane.b32.xlu0 %v1852_v54, %s5212_s24  ;;  %4619 = vmatprep.mubr.msk.f32.mxu1 %vm2697_vm11, %v3364_v59  ;;  %v3095_v54 = vld [vmem:[#allocation5 + $0xb] sm:$0xff]  ;;  %v5016_v59 = vpack.c.bf16 %v3398_v58, %v3397_v57 }
 0x23c   : > { %v1726_v63 = vpop.permute.xlu1 %1725  ;;  %v2280_v1 = vld [vmem:[#allocation2 + $0xc8] sm:$0xff]  ;;  %v3033_v56 = vld [vmem:[#allocation5 + $0xa] sm:$0xff] }
 0x23d   : > { %v1510_v0 = vpop.permute.xlu0 %1509  ;;  %1808 = vst.msk [vmem:[#allocation2 + $0xd0] sm:$0xff] %vm1781_vm7, %v1726_v63  ;;  %4879 = vmatmul.mubr.msk.f32.gmra.mrb[24].mxu0 %vm2303_vm10, %v2280_v1  ;;  %5017 = vmatpush1.bf16.msra.mxu1 %v5016_v59  ;;  %v3157_v63 = vld [vmem:[#allocation5 + $0xc] sm:$0xff] }
 0x23e   : > { %1591 = vst.msk [vmem:[#allocation2 + $0xd8] sm:$0xff] %vm1563_vm6, %v1510_v0  ;;  %v2759_v4 = vld [vmem:[#allocation3 + $0x50] ss:$2 sm:$0xff]  ;;  %v2795_v5 = vld [vmem:[#allocation3 + $0x51] ss:$2 sm:$0xff]  ;;  %1523 = vrot.lane.b32.xlu1 %v6240_v26, %s5210_s18  ;;  %5018 = vmatprep.subr.bf16.mxu1 %v5215_v62  ;;  %v3399_v1 = vld [vmem:[%s7235_s3 + $0x80] sm:$0xff] }
 0x23f   : > { %1307 = vrot.lane.b32.xlu0 %v1200_v61, %s5209_s17  ;;  %v2825_v7 = vmax.f32 %v2759_v4, %v2795_v5  ;;  %v2910_v0 = vld [vmem:[#allocation5 + $0x9] sm:$0xff]  ;;  %v5019_v3 = vpack.c.bf16 %v3400_v2, %v3399_v1 }
 0x240   : > { %v1076_v11 = vpop.permute.xlu1 %1075 }
 0x241   : > { %v860_v12 = vpop.permute.xlu0 %859  ;;  %2843 = vst.msk [vmem:[#allocation4 + $0x28] sm:$0xff] %vm2697_vm11, %v2825_v7  ;;  %v3219_v7 = vld [vmem:[#allocation5 + $0x14] sm:$0xff]  ;;  %5020 = vmatpush1.bf16.msra.mxu1 %v5019_v3 }
 0x242   : > { %1156 = vst.msk [vmem:[#allocation2 + $0xe0] sm:$0xff] %vm1127_vm4, %v1076_v11  ;;  %1525 = vrot.lane.b32.xlu1 %v1418_v9, %s5210_s18  ;;  %s5218_s18 = smov 80  }
 0x243   : > { %939 = vst.msk [vmem:[#allocation2 + $0xe8] sm:$0xff] %vm909_vm3, %v860_v12  ;;  %2175 = vrot.lane.b32.xlu0 %v2070_v10, %s5213_s21 }
 0x244   : > { %v1944_v18 = vpop.permute.xlu1 %1943 }
 0x245   : > { %v1728_v19 = vpop.permute.xlu0 %1727  ;;  %2026 = vst.msk [vmem:[#allocation2 + $0xd0] sm:$0xff] %vm1999_vm8, %v1944_v18  ;;  %v2911_v18 = vld [vmem:[#allocation5 + $0x11] sm:$0xff] }
 0x246   : > { %1809 = vst.msk [vmem:[#allocation2 + $0xd8] sm:$0xff] %vm1781_vm7, %v1728_v19  ;;  %1743 = vrot.lane.b32.xlu1 %v1636_v16, %s5211_s19  ;;  %v3096_v19 = vld [vmem:[#allocation5 + $0x13] sm:$0xff] }
 0x247   : > { %1741 = vrot.lane.b32.xlu0 %v1635_v17, %s5211_s19 }
 0x248   : > { %v1294_v26 = vpop.permute.xlu1 %1293  ;;  %v2865_v22 = vld [vmem:[#allocation4 + $0x24] sm:$0xff] }
 0x249   : > { %v1078_v27 = vpop.permute.xlu0 %1077  ;;  %1374 = vst.msk [vmem:[#allocation2 + $0xe0] sm:$0xff] %vm1345_vm5, %v1294_v26 }
 0x24a   : > { %1157 = vst.msk [vmem:[#allocation2 + $0xe8] sm:$0xff] %vm1127_vm4, %v1078_v27  ;;  %1961 = vrot.lane.b32.xlu1 %v1854_v24, %s5212_s24 }
 0x24b   : > { %1959 = vrot.lane.b32.xlu0 %v1853_v25, %s5212_s24 }
 0x24c   : > { %v2162_v33 = vpop.permute.xlu1 %2161 }
 0x24d   : > { %v1946_v34 = vpop.permute.xlu0 %1945  ;;  %2244 = vst.msk [vmem:[#allocation2 + $0xd0] sm:$0xff] %vm2217_vm9, %v2162_v33 }
 0x24e   : > { %2027 = vst.msk [vmem:[#allocation2 + $0xd8] sm:$0xff] %vm1999_vm8, %v1946_v34  ;;  %2179 = vrot.lane.b32.xlu1 %v2072_v31, %s5213_s21 }
 0x24f   : > { %2177 = vrot.lane.b32.xlu0 %v2071_v32, %s5213_s21 }
 0x250   : > { %v1296_v41 = vpop.permute.xlu1 %1295  ;;  %v4862_v43 = vpop.f32.mrb[12].mxu0 }
 0x251   : > { %v644_v42 = vpop.permute.xlu0 %643  ;;  %1375 = vst.msk [vmem:[#allocation2 + $0xe8] sm:$0xff] %vm1345_vm5, %v1296_v41  ;;  %v2548_v47 = vadd.f32 %v6369_v46, %v4862_v43  ;;  %v2542_v48 = vpop.f32.mrb[13].mxu0 }
 0x252   : > { %722 = vst.msk [vmem:[#allocation2 + $0xf0] sm:$0xff] %vm691_vm2, %v644_v42  ;;  %2991 = vrot.lane.b32.xlu1 %v2971_v39, %s5213_s21  ;;  %v2543_v50 = vadd.f32 %v6369_v46, %v2542_v48 }
 0x253   : > { %2929 = vrot.lane.b32.xlu0 %v2909_v40, %s5209_s17  ;;  %v2674_v51 = vmax.f32 %v2548_v47, 0.0 }
 0x254   : > { %v2164_v52 = vpop.permute.xlu1 %2163  ;;  %v2281_v8 = vld [vmem:[#allocation2 + $0xd0] sm:$0xff]  ;;  %v2673_v55 = vmax.f32 %v2543_v50, 0.0 }
 0x255   : > { %v1512_v53 = vpop.permute.xlu0 %1511  ;;  %2245 = vst.msk [vmem:[#allocation2 + $0xd8] sm:$0xff] %vm2217_vm9, %v2164_v52  ;;  %4881 = vmatprep.mubr.msk.f32.mxu0 %vm2303_vm10, %v2281_v8 }
 0x256   : > { %1592 = vst.msk [vmem:[#allocation2 + $0xe0] sm:$0xff] %vm1563_vm6, %v1512_v53  ;;  %3115 = vrot.lane.b32.xlu1 %v3095_v54, %s5216_s15 }
 0x257   : > { %2711 = vst.msk [vmem:[#allocation3 + $0x68] sm:$0xff] %vm2697_vm11, %v2674_v51  ;;  %3053 = vrot.lane.b32.xlu0 %v3033_v56, %s5217_s29  ;;  %2710 = vst.msk [vmem:[#allocation3 + $0x60] sm:$0xff] %vm2697_vm11, %v2673_v55 }
 0x258   : > { %v862_v60 = vpop.permute.xlu1 %861 }
 0x259   : > { %v646_v61 = vpop.permute.xlu0 %645  ;;  %940 = vst.msk [vmem:[#allocation2 + $0xf0] sm:$0xff] %vm909_vm3, %v862_v60 }
 0x25a   : > { %723 = vst.msk [vmem:[#allocation2 + $0xf8] sm:$0xff] %vm691_vm2, %v646_v61  ;;  %3177 = vrot.lane.b32.xlu1 %v3157_v63, %s5218_s18 }
 0x25b   : > { %2931 = vrot.lane.b32.xlu0 %v2910_v0, %s5209_s17 }
 0x25c   : > { %v1730_v4 = vpop.permute.xlu1 %1729  ;;  %v2282_v6 = vld [vmem:[#allocation2 + $0xd8] sm:$0xff] }
 0x25d   : > { %v1514_v5 = vpop.permute.xlu0 %1513  ;;  %1810 = vst.msk [vmem:[#allocation2 + $0xe0] sm:$0xff] %vm1781_vm7, %v1730_v4  ;;  %4882 = vmatmul.mubr.msk.f32.gmra.mrb[26].mxu0 %vm2303_vm10, %v2282_v6 }
 0x25e   : > { %1593 = vst.msk [vmem:[#allocation2 + $0xe8] sm:$0xff] %vm1563_vm6, %v1514_v5  ;;  %v2761_v9 = vld [vmem:[#allocation3 + $0x60] ss:$2 sm:$0xff]  ;;  %v2797_v10 = vld [vmem:[#allocation3 + $0x61] ss:$2 sm:$0xff]  ;;  %3239 = vrot.lane.b32.xlu1 %v3219_v7, %s5219_s22 }
 0x25f   : > { %2993 = vrot.lane.b32.xlu0 %v3033_v56, %s5213_s21  ;;  %v2826_v11 = vmax.f32 %v2761_v9, %v2797_v10 }
 0x260   : > { %v1080_v12 = vpop.permute.xlu1 %1079 }
 0x261   : > { %v864_v13 = vpop.permute.xlu0 %863  ;;  %2844 = vst.msk [vmem:[#allocation4 + $0x30] sm:$0xff] %vm2697_vm11, %v2826_v11 }
 0x262   : > { %1158 = vst.msk [vmem:[#allocation2 + $0xf0] sm:$0xff] %vm1127_vm4, %v1080_v12  ;;  %3301 = vrot.lane.b32.xlu1 %v3281_v14, %s5220_s23 }
 0x263   : > { %941 = vst.msk [vmem:[#allocation2 + $0xf8] sm:$0xff] %vm909_vm3, %v864_v13  ;;  %3055 = vrot.lane.b32.xlu0 %v3034_v15, %s5217_s29 }
 0x264   : > { %v1948_v16 = vpop.permute.xlu1 %1947 }
 0x265   : > { %v1732_v17 = vpop.permute.xlu0 %1731  ;;  %2028 = vst.msk [vmem:[#allocation2 + $0xe0] sm:$0xff] %vm1999_vm8, %v1948_v16 }
 0x266   : > { %1811 = vst.msk [vmem:[#allocation2 + $0xe8] sm:$0xff] %vm1781_vm7, %v1732_v17  ;;  %2933 = vrot.lane.b32.xlu1 %v2911_v18, %s5209_s17 }
 0x267   : > { %3117 = vrot.lane.b32.xlu0 %v3096_v19, %s5216_s15 }
 0x268   : > { %v1298_v20 = vpop.permute.xlu1 %1297  ;;  %v2866_v23 = vld [vmem:[#allocation4 + $0x2d] sm:$0xff] }
 0x269   : > { %v1082_v21 = vpop.permute.xlu0 %1081  ;;  %1376 = vst.msk [vmem:[#allocation2 + $0xf0] sm:$0xff] %vm1345_vm5, %v1298_v20  ;;  %v2867_v24 = vmax.f32 %v2865_v22, %v2866_v23 }
 0x26a   : > { %1159 = vst.msk [vmem:[#allocation2 + $0xf8] sm:$0xff] %vm1127_vm4, %v1082_v21  ;;  %2995 = vrot.lane.b32.xlu1 %v3034_v15, %s5213_s21 }
 0x26b   : > { %3179 = vrot.lane.b32.xlu0 %v3219_v7, %s5218_s18  ;;  %2868 = vst.msk [vmem:[#allocation5 + $0x1f] sm:$0xff] %vm2697_vm11, %v2867_v24 }
 0x26c   : > { %v2166_v25 = vpop.permute.xlu1 %2165 }
 0x26d   : > { %v1950_v26 = vpop.permute.xlu0 %1949  ;;  %2246 = vst.msk [vmem:[#allocation2 + $0xe0] sm:$0xff] %vm2217_vm9, %v2166_v25 }
 0x26e   : > { %2029 = vst.msk [vmem:[#allocation2 + $0xe8] sm:$0xff] %vm1999_vm8, %v1950_v26 }
 0x270   : > { %v1300_v27 = vpop.permute.xlu1 %1299  ;;  %v4865_v29 = vpop.f32.mrb[14].mxu0 }
 0x271   : > { %v648_v28 = vpop.permute.xlu0 %647  ;;  %1377 = vst.msk [vmem:[#allocation2 + $0xf8] sm:$0xff] %vm1345_vm5, %v1300_v27  ;;  %v2558_v30 = vadd.f32 %v6369_v46, %v4865_v29  ;;  %v2552_v31 = vpop.f32.mrb[15].mxu0 }
 0x272   : > { %724 = vst.msk [vmem:[#allocation2 + $0x100] sm:$0xff] %vm691_vm2, %v648_v28  ;;  %v3035_v32 = vld [vmem:[#allocation5 + $0x1a] sm:$0xff]  ;;  %v2553_v34 = vadd.f32 %v6369_v46, %v2552_v31 }
 0x273   : > { %v3220_v33 = vld [vmem:[#allocation5 + $0x1c] sm:$0xff]  ;;  %3057 = vrot.lane.b32.xlu1 %v3035_v32, %s5217_s29  ;;  %v2676_v35 = vmax.f32 %v2558_v30, 0.0 }
 0x274   : > { %3241 = vrot.lane.b32.xlu0 %v3220_v33, %s5219_s22  ;;  %v2168_v37 = vpop.permute.xlu1 %2167  ;;  %v2283_v39 = vld [vmem:[#allocation2 + $0xe0] sm:$0xff]  ;;  %v3344_v40 = vld [vmem:[#allocation5 + $0x1e] sm:$0xff]  ;;  %v2675_v42 = vmax.f32 %v2553_v34, 0.0 }
 0x275   : > { %v1516_v38 = vpop.permute.xlu0 %1515  ;;  %v2892_v41 = vld [vmem:[#allocation5 + $0x18] sm:$0xff]  ;;  %2247 = vst.msk [vmem:[#allocation2 + $0xe8] sm:$0xff] %vm2217_vm9, %v2168_v37  ;;  %4884 = vmatprep.mubr.msk.f32.mxu0 %vm2303_vm10, %v2283_v39  ;;  %v2893_v43 = vld [vmem:[#allocation5 + $0x20] sm:$0xff] }
 0x276   : > { %1594 = vst.msk [vmem:[#allocation2 + $0xf0] sm:$0xff] %vm1563_vm6, %v1516_v38  ;;  %v3097_v44 = vld [vmem:[#allocation5 + $0x1b] sm:$0xff] }
 0x277   : > { %3354 = vst.msk [vmem:[#allocation6 + $0x18] sm:$0xff] %vm2697_vm11, %v3344_v40  ;;  %2902 = vst.msk [vmem:[#allocation6 + $0x30] sm:$0xff] %vm2697_vm11, %v2892_v41  ;;  %v3282_v45 = vld [vmem:[#allocation5 + $0x1d] sm:$0xff]  ;;  %3119 = vrot.lane.b32.xlu1 %v3097_v44, %s5216_s15 }
 0x278   : > { %2713 = vst.msk [vmem:[#allocation3 + $0x78] sm:$0xff] %vm2697_vm11, %v2676_v35  ;;  %2903 = vst.msk [vmem:[#allocation6 + $0x40] sm:$0xff] %vm2697_vm11, %v2893_v43  ;;  %3303 = vrot.lane.b32.xlu0 %v3282_v45, %s5220_s23  ;;  %v866_v47 = vpop.permute.xlu1 %865  ;;  %v2912_v49 = vld [vmem:[#allocation5 + $0x19] sm:$0xff] }
 0x279   : > { %2712 = vst.msk [vmem:[#allocation3 + $0x70] sm:$0xff] %vm2697_vm11, %v2675_v42  ;;  %v650_v48 = vpop.permute.xlu0 %649 }
 0x27a   : > { %942 = vst.msk [vmem:[#allocation2 + $0x100] sm:$0xff] %vm909_vm3, %v866_v47 }
 0x27b   : > { %725 = vst.msk [vmem:[#allocation2 + $0x108] sm:$0xff] %vm691_vm2, %v650_v48  ;;  %3181 = vrot.lane.b32.xlu1 %v3220_v33, %s5218_s18 }
 0x27c   : > { %2935 = vrot.lane.b32.xlu0 %v2912_v49, %s5209_s17  ;;  %v1734_v50 = vpop.permute.xlu1 %1733  ;;  %v2284_v52 = vld [vmem:[#allocation2 + $0xe8] sm:$0xff] }
 0x27d   : > { %v1518_v51 = vpop.permute.xlu0 %1517  ;;  %1812 = vst.msk [vmem:[#allocation2 + $0xf0] sm:$0xff] %vm1781_vm7, %v1734_v50  ;;  %4885 = vmatmul.mubr.msk.f32.gmra.mrb[28].mxu0 %vm2303_vm10, %v2284_v52  ;;  %v2913_v52 = vld [vmem:[#allocation5 + $0x21] sm:$0xff] }
 0x27e   : > { %1595 = vst.msk [vmem:[#allocation2 + $0xf8] sm:$0xff] %vm1563_vm6, %v1518_v51 }
 0x280   : > { %v2763_v53 = vld [vmem:[#allocation3 + $0x70] ss:$2 sm:$0xff]  ;;  %v2799_v8 = vld [vmem:[#allocation3 + $0x71] ss:$2 sm:$0xff]  ;;  %2997 = vrot.lane.b32.xlu0 %v3035_v32, %s5213_s21  ;;  %v1084_v55 = vpop.permute.xlu1 %1083 }
 0x281   : > { %v2827_v54 = vmax.f32 %v2763_v53, %v2799_v8  ;;  %v868_v56 = vpop.permute.xlu0 %867  ;;  %1160 = vst.msk [vmem:[#allocation2 + $0x100] sm:$0xff] %vm1127_vm4, %v1084_v55 }
 0x282   : > { %943 = vst.msk [vmem:[#allocation2 + $0x108] sm:$0xff] %vm909_vm3, %v868_v56 }
 0x283   : > { %2845 = vst.msk [vmem:[#allocation4 + $0x38] sm:$0xff] %vm2697_vm11, %v2827_v54 }
 0x284   : > { %v1952_v57 = vpop.permute.xlu1 %1951 }
 0x285   : > { %v1736_v58 = vpop.permute.xlu0 %1735  ;;  %2030 = vst.msk [vmem:[#allocation2 + $0xf0] sm:$0xff] %vm1999_vm8, %v1952_v57 }
 0x286   : > { %1813 = vst.msk [vmem:[#allocation2 + $0xf8] sm:$0xff] %vm1781_vm7, %v1736_v58 }
 0x288   : > { %v1302_v59 = vpop.permute.xlu1 %1301 }
 0x289   : > { %v1086_v60 = vpop.permute.xlu0 %1085  ;;  %1378 = vst.msk [vmem:[#allocation2 + $0x100] sm:$0xff] %vm1345_vm5, %v1302_v59 }
 0x28a   : > { %1161 = vst.msk [vmem:[#allocation2 + $0x108] sm:$0xff] %vm1127_vm4, %v1086_v60  ;;  %v2869_v26 = vld [vmem:[#allocation4 + $0x36] sm:$0xff] }
 0x28c   : > { %v2170_v61 = vpop.permute.xlu1 %2169 }
 0x28d   : > { %v1954_v63 = vpop.permute.xlu0 %1953  ;;  %2248 = vst.msk [vmem:[#allocation2 + $0xf0] sm:$0xff] %vm2217_vm9, %v2170_v61 }
 0x28e   : > { %2031 = vst.msk [vmem:[#allocation2 + $0xf8] sm:$0xff] %vm1999_vm8, %v1954_v63 }
 0x290   : > { %v1304_v0 = vpop.permute.xlu1 %1303  ;;  %v4868_v2 = vpop.f32.mrb[16].mxu0 }
 0x291   : > { %v652_v1 = vpop.permute.xlu0 %651  ;;  %1379 = vst.msk [vmem:[#allocation2 + $0x108] sm:$0xff] %vm1345_vm5, %v1304_v0  ;;  %v2568_v3 = vadd.f32 %v6369_v46, %v4868_v2  ;;  %v2562_v4 = vpop.f32.mrb[17].mxu0 }
 0x292   : > { %726 = vst.msk [vmem:[#allocation2 + $0x110] sm:$0xff] %vm691_vm2, %v652_v1  ;;  %v2563_v5 = vadd.f32 %v6369_v46, %v2562_v4  ;;  %vm1817_vm2 = vcmask 226496  }
 0x293   : > { %v2678_v6 = vmax.f32 %v2568_v3, 0.0 }
 0x294   : > { %v2172_v7 = vpop.permute.xlu1 %2171  ;;  %v2285_v10 = vld [vmem:[#allocation2 + $0xf0] sm:$0xff]  ;;  %v2677_v11 = vmax.f32 %v2563_v5, 0.0 }
 0x295   : > { %v1520_v9 = vpop.permute.xlu0 %1519  ;;  %2249 = vst.msk [vmem:[#allocation2 + $0xf8] sm:$0xff] %vm2217_vm9, %v2172_v7  ;;  %4887 = vmatprep.mubr.msk.f32.mxu0 %vm2303_vm10, %v2285_v10 }
 0x296   : > { %1596 = vst.msk [vmem:[#allocation2 + $0x100] sm:$0xff] %vm1563_vm6, %v1520_v9 }
 0x297   : > { %2715 = vst.msk [vmem:[#allocation3 + $0x88] sm:$0xff] %vm2697_vm11, %v2678_v6  ;;  %2714 = vst.msk [vmem:[#allocation3 + $0x80] sm:$0xff] %vm2697_vm11, %v2677_v11 }
 0x298   : > { %v870_v12 = vpop.permute.xlu1 %869 }
 0x299   : > { %v654_v13 = vpop.permute.xlu0 %653  ;;  %944 = vst.msk [vmem:[#allocation2 + $0x110] sm:$0xff] %vm909_vm3, %v870_v12  ;;  %vm2035_vm3 = vcmask 259296  }
 0x29a   : > { %728 = vst.msk [vmem:[#allocation2 + $0x118] sm:$0x3f] %vm727_vm13, %v654_v13  ;;  %vm2747_vm13 = vcmask 125952  }
 0x29b   : > { %2748 = vst.msk [vmem:[#allocation5 + $0x60] sm:$0xf] %vm2747_vm13, %v5214_v36  ;;  %vm3609_vm13 = vcmask 260096  }
 0x29c   : > { %v1738_v14 = vpop.permute.xlu1 %1737  ;;  %v2286_v16 = vld [vmem:[#allocation2 + $0xf8] sm:$0xff] }
 0x29d   : > { %v1522_v15 = vpop.permute.xlu0 %1521  ;;  %1814 = vst.msk [vmem:[#allocation2 + $0x100] sm:$0xff] %vm1781_vm7, %v1738_v14  ;;  %4888 = vmatmul.mubr.msk.f32.gmra.mrb[30].mxu0 %vm2303_vm10, %v2286_v16 }
 0x29e   : > { %1597 = vst.msk [vmem:[#allocation2 + $0x108] sm:$0xff] %vm1563_vm6, %v1522_v15  ;;  %v2765_v17 = vld [vmem:[#allocation3 + $0x80] ss:$2 sm:$0xff]  ;;  %v2801_v18 = vld [vmem:[#allocation3 + $0x81] ss:$2 sm:$0xff] }
 0x29f   : > { %v2828_v19 = vmax.f32 %v2765_v17, %v2801_v18 }
 0x2a0   : > { %v1088_v20 = vpop.permute.xlu1 %1087 }
 0x2a1   : > { %v872_v21 = vpop.permute.xlu0 %871  ;;  %2846 = vst.msk [vmem:[#allocation4 + $0x40] sm:$0xff] %vm2697_vm11, %v2828_v19 }
 0x2a2   : > { %1162 = vst.msk [vmem:[#allocation2 + $0x110] sm:$0xff] %vm1127_vm4, %v1088_v20  ;;  %vm2253_vm4 = vcmask 292096  }
 0x2a3   : > { %946 = vst.msk [vmem:[#allocation2 + $0x118] sm:$0x3f] %vm945_vm14, %v872_v21  ;;  %vm2733_vm14 = vcmask 128000  }
 0x2a4   : > { %v1956_v22 = vpop.permute.xlu1 %1955 }
 0x2a5   : > { %v1740_v23 = vpop.permute.xlu0 %1739  ;;  %2032 = vst.msk [vmem:[#allocation2 + $0x100] sm:$0xff] %vm1999_vm8, %v1956_v22 }
 0x2a6   : > { %1815 = vst.msk [vmem:[#allocation2 + $0x108] sm:$0xff] %vm1781_vm7, %v1740_v23 }
 0x2a8   : > { %v1306_v24 = vpop.permute.xlu1 %1305  ;;  %v2870_v27 = vld [vmem:[#allocation4 + $0x3f] sm:$0xff] }
 0x2a9   : > { %v1090_v25 = vpop.permute.xlu0 %1089  ;;  %1380 = vst.msk [vmem:[#allocation2 + $0x110] sm:$0xff] %vm1345_vm5, %v1306_v24  ;;  %v2871_v28 = vmax.f32 %v2869_v26, %v2870_v27  ;;  %vm2959_vm5 = vcmask 261248  }
 0x2aa   : > { %1164 = vst.msk [vmem:[#allocation2 + $0x118] sm:$0x3f] %vm1163_vm15, %v1090_v25  ;;  %v3366_v25 = vld [vmem:[#allocation6 + $0x18] sm:$0xff]  ;;  %vm3563_vm15 = vcmask 261120  }
 0x2ab   : > { %2872 = vst.msk [vmem:[#allocation5 + $0x29] sm:$0xff] %vm2697_vm11, %v2871_v28 }
 0x2ac   : > { %v2174_v29 = vpop.permute.xlu1 %2173  ;;  %3575 = vst.msk [vmem:[#allocation9] sm:$0xff] %vm3563_vm15, %v5214_v36  ;;  %3576 = vst.msk [vmem:[#allocation9 + $0x8] sm:$0xff] %vm3563_vm15, %v5214_v36 }
 0x2ad   : > { %v1958_v30 = vpop.permute.xlu0 %1957  ;;  %2250 = vst.msk [vmem:[#allocation2 + $0x100] sm:$0xff] %vm2217_vm9, %v2174_v29 }
 0x2ae   : > { %2033 = vst.msk [vmem:[#allocation2 + $0x108] sm:$0xff] %vm1999_vm8, %v1958_v30 }
 0x2af   : > { %3577 = vst.msk [vmem:[#allocation9 + $0x10] sm:$0xff] %vm3563_vm15, %v5214_v36  ;;  %3578 = vst.msk [vmem:[#allocation9 + $0x18] sm:$0xff] %vm3563_vm15, %v5214_v36 }
 0x2b0   : > { %v1524_v31 = vpop.permute.xlu1 %1523  ;;  %v4871_v33 = vpop.f32.mrb[18].mxu0 }
 0x2b1   : > { %v1308_v32 = vpop.permute.xlu0 %1307  ;;  %1598 = vst.msk [vmem:[#allocation2 + $0x110] sm:$0xff] %vm1563_vm6, %v1524_v31  ;;  %v2578_v34 = vadd.f32 %v6369_v46, %v4871_v33  ;;  %v2572_v35 = vpop.f32.mrb[19].mxu0  ;;  %vm3021_vm6 = vcmask 392448  }
 0x2b2   : > { %1382 = vst.msk [vmem:[#allocation2 + $0x118] sm:$0x3f] %vm1381_vm0, %v1308_v32  ;;  %v3221_v37 = vld [vmem:[#allocation5 + $0x24] sm:$0xff]  ;;  %v2573_v39 = vadd.f32 %v6369_v46, %v2572_v35  ;;  %vm2855_vm0 = vcmask 129024  }
 0x2b3   : > { %v3036_v38 = vld [vmem:[#allocation5 + $0x22] sm:$0xff]  ;;  %3243 = vrot.lane.b32.xlu1 %v3221_v37, %s5219_s22  ;;  %v2680_v40 = vmax.f32 %v2578_v34, 0.0  ;;  %v6496_v60 = vld [vmem:[#allocation5 + $0x2a] sm:$0xff] }
 0x2b4   : > { %3059 = vrot.lane.b32.xlu0 %v3036_v38, %s5217_s29  ;;  %v1526_v41 = vpop.permute.xlu1 %1525  ;;  %v2287_v43 = vld [vmem:[#allocation2 + $0x100] sm:$0xff]  ;;  %v3345_v44 = vld [vmem:[#allocation5 + $0x26] sm:$0xff]  ;;  %v2679_v45 = vmax.f32 %v2573_v39, 0.0 }
 0x2b5   : > { %v2176_v42 = vpop.permute.xlu0 %2175  ;;  %1600 = vst.msk [vmem:[#allocation2 + $0x118] sm:$0x3f] %vm1599_vm1, %v1526_v41  ;;  %4890 = vmatprep.mubr.msk.f32.mxu0 %vm2303_vm10, %v2287_v43  ;;  %v2894_v47 = vld [vmem:[#allocation5 + $0x28] sm:$0xff]  ;;  %vm3579_vm1 = vcmask 257024  }
 0x2b6   : > { %2251 = vst.msk [vmem:[#allocation2 + $0x108] sm:$0xff] %vm2217_vm9, %v2176_v42  ;;  %v3283_v48 = vld [vmem:[#allocation5 + $0x25] sm:$0xff] }
 0x2b7   : > { %3355 = vst.msk [vmem:[#allocation6 + $0x28] sm:$0xff] %vm2697_vm11, %v3345_v44  ;;  %2717 = vst.msk [vmem:[#allocation3 + $0x98] sm:$0xff] %vm2697_vm11, %v2680_v40  ;;  %v3098_v49 = vld [vmem:[#allocation5 + $0x23] sm:$0xff]  ;;  %3305 = vrot.lane.b32.xlu1 %v3283_v48, %s5220_s23  ;;  %v3099_v0 = vld [vmem:[#allocation5 + $0x2b] sm:$0xff] }
 0x2b8   : > { %2904 = vst.msk [vmem:[#allocation6 + $0x50] sm:$0xff] %vm2697_vm11, %v2894_v47  ;;  %2716 = vst.msk [vmem:[#allocation3 + $0x90] sm:$0xff] %vm2697_vm11, %v2679_v45  ;;  %3121 = vrot.lane.b32.xlu0 %v3098_v49, %s5216_s15  ;;  %v1744_v50 = vpop.permute.xlu1 %1743 }
 0x2b9   : > { %v1742_v51 = vpop.permute.xlu0 %1741  ;;  %1818 = vst.msk [vmem:[#allocation2 + $0x118] sm:$0x3f] %vm1817_vm2, %v1744_v50  ;;  %vm2969_vm2 = vcmask 259200  }
 0x2ba   : > { %1816 = vst.msk [vmem:[#allocation2 + $0x110] sm:$0xff] %vm1781_vm7, %v1742_v51  ;;  %vm3083_vm7 = vcmask 523648  }
 0x2bb   : > { %2937 = vrot.lane.b32.xlu1 %v2913_v52, %s5209_s17  ;;  %3580 = vst.msk [vmem:[#allocation9 + $0x20] sm:$0xf] %vm3579_vm1, %v5214_v36 }
 0x2bc   : > { %3183 = vrot.lane.b32.xlu0 %v3221_v37, %s5218_s18  ;;  %v1962_v53 = vpop.permute.xlu1 %1961 }
 0x2bd   : > { %v1960_v8 = vpop.permute.xlu0 %1959  ;;  %v2288_v54 = vld [vmem:[#allocation2 + $0x108] sm:$0xff]  ;;  %2036 = vst.msk [vmem:[#allocation2 + $0x118] sm:$0x3f] %vm2035_vm3, %v1962_v53  ;;  %vm3031_vm3 = vcmask 390400  }
 0x2be   : > { %2034 = vst.msk [vmem:[#allocation2 + $0x110] sm:$0xff] %vm1999_vm8, %v1960_v8  ;;  %4891 = vmatmul.mubr.msk.f32.gmra.mrb[32].mxu0 %vm2303_vm10, %v2288_v54  ;;  %vm3145_vm8 = vcmask 654848   ;;  %v3368_v40 = vld [vmem:[#allocation6 + $0x28] sm:$0xff] }
 0x2bf   : > { %v2767_v55 = vld [vmem:[#allocation3 + $0x90] ss:$2 sm:$0xff]  ;;  %v2803_v56 = vld [vmem:[#allocation3 + $0x91] ss:$2 sm:$0xff]  ;;  %2999 = vrot.lane.b32.xlu1 %v3036_v38, %s5213_s21 }
 0x2c0   : > { %v2829_v57 = vmax.f32 %v2767_v55, %v2803_v56  ;;  %v2180_v58 = vpop.permute.xlu1 %2179 }
 0x2c1   : > { %v2178_v59 = vpop.permute.xlu0 %2177  ;;  %2254 = vst.msk [vmem:[#allocation2 + $0x118] sm:$0x3f] %vm2253_vm4, %v2180_v58  ;;  %vm3093_vm4 = vcmask 521600  }
 0x2c2   : > { %2847 = vst.msk [vmem:[#allocation4 + $0x48] sm:$0xff] %vm2697_vm11, %v2829_v57 }
 0x2c3   : > { %2252 = vst.msk [vmem:[#allocation2 + $0x110] sm:$0xff] %vm2217_vm9, %v2178_v59  ;;  %3061 = vrot.lane.b32.xlu1 %v6496_v60, %s5217_s29  ;;  %vm3207_vm9 = vcmask 786048  }
 0x2c4   : > { %v2992_v61 = vpop.permute.xlu1 %2991 }
 0x2c5   : > { %v2930_v63 = vpop.permute.xlu0 %2929 }
 0x2c6   : > { %2960 = vst.msk [vmem:[#allocation6] sm:$0xff] %vm2959_vm5, %v2930_v63  ;;  %v2914_v63 = vld [vmem:[#allocation5 + $0x29] sm:$0xff] }
 0x2c7   : > { %3022 = vst.msk [vmem:[#allocation6] sm:$0xff] %vm3021_vm6, %v2992_v61  ;;  %3123 = vrot.lane.b32.xlu1 %v3099_v0, %s5216_s15 }
 0x2c8   : > { %v3116_v1 = vpop.permute.xlu1 %3115  ;;  %v2290_v4 = vld [vmem:[#allocation2 + $0x118] sm:$0x3f] }
 0x2c9   : > { %v3054_v2 = vpop.permute.xlu0 %3053  ;;  %v2873_v47 = vld [vmem:[#allocation4 + $0x48] sm:$0xff] }
 0x2ca   : > { %v2289_v3 = vld [vmem:[#allocation2 + $0x110] sm:$0xff]  ;;  %3084 = vst.msk [vmem:[#allocation6] sm:$0xff] %vm3083_vm7, %v3054_v2 }
 0x2cb   : > { %4893 = vmatprep.mubr.msk.f32.mxu0 %vm2303_vm10, %v2289_v3  ;;  %3146 = vst.msk [vmem:[#allocation6] sm:$0xff] %vm3145_vm8, %v3116_v1 }
 0x2cc   : > { %4894 = vmatmul.mubr.msk.f32.gmra.mrb[34].mxu0 %vm2303_vm10, %v2290_v4  ;;  %v3178_v5 = vpop.permute.xlu1 %3177  ;;  %vm3331_vm10 = vcmask 1048448  }
 0x2cd   : > { %v2932_v6 = vpop.permute.xlu0 %2931  ;;  %3208 = vst.msk [vmem:[#allocation6] sm:$0xff] %vm3207_vm9, %v3178_v5 }
 0x2ce   : > { %2961 = vst.msk [vmem:[#allocation6 + $0x10] sm:$0xff] %vm2959_vm5, %v2932_v6 }
 0x2d0   : > { %v4874_v7 = vpop.f32.mrb[20].mxu0  ;;  %v3240_v9 = vpop.permute.xlu1 %3239 }
 0x2d1   : > { %v2588_v10 = vadd.f32 %v6369_v46, %v4874_v7  ;;  %3270 = vst.msk [vmem:[#allocation6] sm:$0xff] %vm3269_vm12, %v3240_v9  ;;  %v2994_v11 = vpop.permute.xlu0 %2993  ;;  %v2582_v12 = vpop.f32.mrb[21].mxu0 }
 0x2d2   : > { %3023 = vst.msk [vmem:[#allocation6 + $0x10] sm:$0xff] %vm3021_vm6, %v2994_v11  ;;  %v2583_v13 = vadd.f32 %v6369_v46, %v2582_v12 }
 0x2d3   : > { %v2682_v14 = vmax.f32 %v2588_v10, 0.0  ;;  %v3352_v10 = vld [vmem:[#allocation5 + $0x5e] sm:$0x3f] }
 0x2d4   : > { %v2681_v15 = vmax.f32 %v2583_v13, 0.0  ;;  %v3302_v16 = vpop.permute.xlu1 %3301  ;;  %3362 = vst.msk [vmem:[#allocation6 + $0x98] sm:$0x3f] %vm2733_vm14, %v3352_v10 }
 0x2d5   : > { %2719 = vst.msk [vmem:[#allocation3 + $0xa8] sm:$0xff] %vm2697_vm11, %v2682_v14  ;;  %v3056_v17 = vpop.permute.xlu0 %3055 }
 0x2d6   : > { %3332 = vst.msk [vmem:[#allocation6] sm:$0xff] %vm3331_vm10, %v3302_v16 }
 0x2d7   : > { %2718 = vst.msk [vmem:[#allocation3 + $0xa0] sm:$0xff] %vm2697_vm11, %v2681_v15 }
 0x2d8   : > { %3085 = vst.msk [vmem:[#allocation6 + $0x10] sm:$0xff] %vm3083_vm7, %v3056_v17  ;;  %v2934_v18 = vpop.permute.xlu1 %2933 }
 0x2d9   : > { %2962 = vst.msk [vmem:[#allocation6 + $0x20] sm:$0xff] %vm2959_vm5, %v2934_v18  ;;  %v3118_v19 = vpop.permute.xlu0 %3117 }
 0x2da   : > { %3147 = vst.msk [vmem:[#allocation6 + $0x10] sm:$0xff] %vm3145_vm8, %v3118_v19 }
 0x2dc   : > { %v2996_v20 = vpop.permute.xlu1 %2995 }
 0x2dd   : > { %v3363_v21 = vld [vmem:[#allocation6] sm:$0xff]  ;;  %3024 = vst.msk [vmem:[#allocation6 + $0x20] sm:$0xff] %vm3021_vm6, %v2996_v20  ;;  %v3180_v24 = vpop.permute.xlu0 %3179 }
 0x2de   : > { %v2769_v22 = vld [vmem:[#allocation3 + $0xa0] ss:$2 sm:$0xff]  ;;  %v2805_v23 = vld [vmem:[#allocation3 + $0xa1] ss:$2 sm:$0xff]  ;;  %3503 = vmatmul.mubr.f32.vlgmr.msra.gmra.mrb[0].mxu1 %v3363_v21  ;;  %3209 = vst.msk [vmem:[#allocation6 + $0x10] sm:$0xff] %vm3207_vm9, %v3180_v24 }
 0x2df   : > { %v2830_v26 = vmax.f32 %v2769_v22, %v2805_v23  ;;  %4620 = vmatprep.mubr.msk.f32.mxu1 %vm2697_vm11, %v3366_v25 }
 0x2e1   : > { %2848 = vst.msk [vmem:[#allocation4 + $0x50] sm:$0xff] %vm2697_vm11, %v2830_v26 }
 0x2e5   : > { %v3058_v27 = vpop.permute.xlu1 %3057 }
 0x2e6   : > { %v3242_v28 = vpop.permute.xlu0 %3241  ;;  %3086 = vst.msk [vmem:[#allocation6 + $0x20] sm:$0xff] %vm3083_vm7, %v3058_v27 }
 0x2e7   : > { %3271 = vst.msk [vmem:[#allocation6 + $0x10] sm:$0xff] %vm3269_vm12, %v3242_v28 }
 0x2e9   : > { %v3120_v29 = vpop.permute.xlu1 %3119 }
 0x2ea   : > { %v3304_v30 = vpop.permute.xlu0 %3303  ;;  %3148 = vst.msk [vmem:[#allocation6 + $0x20] sm:$0xff] %vm3145_vm8, %v3120_v29 }
 0x2eb   : > { %3333 = vst.msk [vmem:[#allocation6 + $0x10] sm:$0xff] %vm3331_vm10, %v3304_v30 }
 0x2ed   : > { %v3182_v31 = vpop.permute.xlu1 %3181 }
 0x2ee   : > { %v2936_v32 = vpop.permute.xlu0 %2935  ;;  %3210 = vst.msk [vmem:[#allocation6 + $0x20] sm:$0xff] %vm3207_vm9, %v3182_v31 }
 0x2ef   : > { %2963 = vst.msk [vmem:[#allocation6 + $0x30] sm:$0xff] %vm2959_vm5, %v2936_v32 }
 0x2f0   : > { %v4877_v33 = vpop.f32.mrb[22].mxu0 }
 0x2f1   : > { %v2598_v34 = vadd.f32 %v6369_v46, %v4877_v33  ;;  %v2592_v37 = vpop.f32.mrb[23].mxu0 }
 0x2f2   : > { %v2998_v35 = vpop.permute.xlu0 %2997  ;;  %v3365_v38 = vld [vmem:[#allocation6 + $0x10] sm:$0xff]  ;;  %v2593_v39 = vadd.f32 %v6369_v46, %v2592_v37 }
 0x2f3   : > { %3025 = vst.msk [vmem:[#allocation6 + $0x30] sm:$0xff] %vm3021_vm6, %v2998_v35  ;;  %3508 = vmatmul.mubr.f32.gmra.mrb[2].mxu1 %v3365_v38  ;;  %v2684_v41 = vmax.f32 %v2598_v34, 0.0 }
 0x2f4   : > { %4621 = vmatprep.mubr.msk.f32.mxu1 %vm2697_vm11, %v3368_v40  ;;  %v2683_v42 = vmax.f32 %v2593_v39, 0.0 }
 0x2f5   : > { %2721 = vst.msk [vmem:[#allocation3 + $0xb8] sm:$0xff] %vm2697_vm11, %v2684_v41 }
 0x2f6   : > { %2720 = vst.msk [vmem:[#allocation3 + $0xb0] sm:$0xff] %vm2697_vm11, %v2683_v42 }
 0x2fd   : > { %v2771_v43 = vld [vmem:[#allocation3 + $0xb0] ss:$2 sm:$0xff]  ;;  %v2807_v44 = vld [vmem:[#allocation3 + $0xb1] ss:$2 sm:$0xff] }
 0x2fe   : > { %v2831_v45 = vmax.f32 %v2771_v43, %v2807_v44 }
 0x300   : > { %2849 = vst.msk [vmem:[#allocation4 + $0x58] sm:$0xff] %vm2697_vm11, %v2831_v45 }
 0x307   : > { %v2874_v48 = vld [vmem:[#allocation4 + $0x51] sm:$0xff] }
 0x308   : > { %v2875_v49 = vmax.f32 %v2873_v47, %v2874_v48 }
 0x30a   : > { %2876 = vst.msk [vmem:[#allocation5 + $0x33] sm:$0xff] %vm2697_vm11, %v2875_v49 }
 0x310   : > { %v4880_v50 = vpop.f32.mrb[24].mxu0 }
 0x311   : > { %v2608_v51 = vadd.f32 %v6369_v46, %v4880_v50  ;;  %v2602_v52 = vpop.f32.mrb[25].mxu0  ;;  %v3161_v53 = vld [vmem:[#allocation5 + $0x2c] sm:$0xff]  ;;  %v3223_v58 = vld [vmem:[#allocation5 + $0x34] sm:$0xff] }
 0x312   : > { %v2603_v8 = vadd.f32 %v6369_v46, %v2602_v52  ;;  %3185 = vrot.lane.b32.xlu1 %v3161_v53, %s5218_s18  ;;  %3245 = vrot.lane.b32.xlu0 %v3161_v53, %s5219_s22  ;;  %v3346_v55 = vld [vmem:[#allocation5 + $0x2e] sm:$0xff] }
 0x313   : > { %v2686_v54 = vmax.f32 %v2608_v51, 0.0  ;;  %v2895_v56 = vld [vmem:[#allocation5 + $0x30] sm:$0xff]  ;;  %3356 = vst.msk [vmem:[#allocation6 + $0x38] sm:$0xff] %vm2697_vm11, %v3346_v55 }
 0x314   : > { %v2685_v57 = vmax.f32 %v2603_v8, 0.0  ;;  %2905 = vst.msk [vmem:[#allocation6 + $0x60] sm:$0xff] %vm2697_vm11, %v2895_v56  ;;  %v3284_v59 = vld [vmem:[#allocation5 + $0x2d] sm:$0xff]  ;;  %v3285_v61 = vld [vmem:[#allocation5 + $0x35] sm:$0xff] }
 0x315   : > { %2723 = vst.msk [vmem:[#allocation3 + $0xc8] sm:$0xff] %vm2697_vm11, %v2686_v54  ;;  %v2915_v2 = vld [vmem:[#allocation5 + $0x31] sm:$0xff] }
 0x316   : > { %2722 = vst.msk [vmem:[#allocation3 + $0xc0] sm:$0xff] %vm2697_vm11, %v2685_v57  ;;  %3247 = vrot.lane.b32.xlu1 %v3223_v58, %s5219_s22  ;;  %3307 = vrot.lane.b32.xlu0 %v3284_v59, %s5220_s23  ;;  %v2977_v4 = vld [vmem:[#allocation5 + $0x32] sm:$0xff] }
 0x317   : > { %v3100_v7 = vld [vmem:[#allocation5 + $0x33] sm:$0xff] }
 0x31a   : > { %3309 = vrot.lane.b32.xlu1 %v3285_v61, %s5220_s23  ;;  %2939 = vrot.lane.b32.xlu0 %v2914_v63, %s5209_s17  ;;  %v3370_v19 = vld [vmem:[#allocation6 + $0x38] sm:$0xff] }
 0x31d   : > { %v2773_v0 = vld [vmem:[#allocation3 + $0xc0] ss:$2 sm:$0xff]  ;;  %v2809_v1 = vld [vmem:[#allocation3 + $0xc1] ss:$2 sm:$0xff] }
 0x31e   : > { %v2832_v3 = vmax.f32 %v2773_v0, %v2809_v1  ;;  %2941 = vrot.lane.b32.xlu1 %v2915_v2, %s5209_s17  ;;  %3001 = vrot.lane.b32.xlu0 %v6496_v60, %s5213_s21 }
 0x320   : > { %2850 = vst.msk [vmem:[#allocation4 + $0x60] sm:$0xff] %vm2697_vm11, %v2832_v3 }
 0x322   : > { %3003 = vrot.lane.b32.xlu1 %v2977_v4, %s5213_s21  ;;  %3063 = vrot.lane.b32.xlu0 %v2977_v4, %s5217_s29 }
 0x325   : > { %v3244_v5 = vpop.permute.xlu1 %3243 }
 0x326   : > { %v3060_v6 = vpop.permute.xlu0 %3059  ;;  %3272 = vst.msk [vmem:[#allocation6 + $0x20] sm:$0xff] %vm3269_vm12, %v3244_v5  ;;  %3125 = vrot.lane.b32.xlu0 %v3100_v7, %s5216_s15 }
 0x327   : > { %3087 = vst.msk [vmem:[#allocation6 + $0x30] sm:$0xff] %vm3083_vm7, %v3060_v6  ;;  %v2877_v27 = vld [vmem:[#allocation4 + $0x5a] sm:$0xff] }
 0x329   : > { %v3306_v60 = vpop.permute.xlu1 %3305 }
 0x32a   : > { %v3122_v9 = vpop.permute.xlu0 %3121  ;;  %3334 = vst.msk [vmem:[#allocation6 + $0x20] sm:$0xff] %vm3331_vm10, %v3306_v60  ;;  %3187 = vrot.lane.b32.xlu0 %v3223_v58, %s5218_s18 }
 0x32b   : > { %3149 = vst.msk [vmem:[#allocation6 + $0x30] sm:$0xff] %vm3145_vm8, %v3122_v9 }
 0x32d   : > { %v2938_v11 = vpop.permute.xlu1 %2937 }
 0x32e   : > { %v3184_v12 = vpop.permute.xlu0 %3183  ;;  %2964 = vst.msk [vmem:[#allocation6 + $0x40] sm:$0xff] %vm2959_vm5, %v2938_v11 }
 0x32f   : > { %3211 = vst.msk [vmem:[#allocation6 + $0x30] sm:$0xff] %vm3207_vm9, %v3184_v12 }
 0x330   : > { %v4883_v13 = vpop.f32.mrb[26].mxu0 }
 0x331   : > { %v2618_v14 = vadd.f32 %v6369_v46, %v4883_v13  ;;  %v3000_v15 = vpop.permute.xlu1 %2999  ;;  %v2612_v16 = vpop.f32.mrb[27].mxu0  ;;  %v3367_v17 = vld [vmem:[#allocation6 + $0x20] sm:$0xff] }
 0x332   : > { %3026 = vst.msk [vmem:[#allocation6 + $0x40] sm:$0xff] %vm3021_vm6, %v3000_v15  ;;  %v2613_v18 = vadd.f32 %v6369_v46, %v2612_v16  ;;  %3513 = vmatmul.mubr.f32.gmra.mrb[4].mxu1 %v3367_v17 }
 0x333   : > { %v2688_v20 = vmax.f32 %v2618_v14, 0.0  ;;  %4622 = vmatprep.mubr.msk.f32.mxu1 %vm2697_vm11, %v3370_v19 }
 0x334   : > { %v2687_v21 = vmax.f32 %v2613_v18, 0.0 }
 0x335   : > { %2725 = vst.msk [vmem:[#allocation3 + $0xd8] sm:$0xff] %vm2697_vm11, %v2688_v20  ;;  %v3062_v22 = vpop.permute.xlu1 %3061 }
 0x336   : > { %2724 = vst.msk [vmem:[#allocation3 + $0xd0] sm:$0xff] %vm2697_vm11, %v2687_v21 }
 0x337   : > { %3088 = vst.msk [vmem:[#allocation6 + $0x40] sm:$0xff] %vm3083_vm7, %v3062_v22 }
 0x339   : > { %v3124_v23 = vpop.permute.xlu1 %3123 }
 0x33a   : > { %3150 = vst.msk [vmem:[#allocation6 + $0x40] sm:$0xff] %vm3145_vm8, %v3124_v23 }
 0x33d   : > { %v2775_v24 = vld [vmem:[#allocation3 + $0xd0] ss:$2 sm:$0xff]  ;;  %v2811_v25 = vld [vmem:[#allocation3 + $0xd1] ss:$2 sm:$0xff] }
 0x33e   : > { %v2833_v26 = vmax.f32 %v2775_v24, %v2811_v25 }
 0x340   : > { %2851 = vst.msk [vmem:[#allocation4 + $0x68] sm:$0xff] %vm2697_vm11, %v2833_v26 }
 0x347   : > { %v2878_v28 = vld [vmem:[#allocation4 + $0x63] sm:$0xff] }
 0x348   : > { %v2879_v29 = vmax.f32 %v2877_v27, %v2878_v28 }
 0x34a   : > { %2880 = vst.msk [vmem:[#allocation5 + $0x3d] sm:$0xff] %vm2697_vm11, %v2879_v29 }
 0x350   : > { %v4886_v30 = vpop.f32.mrb[28].mxu0 }
 0x351   : > { %v2628_v31 = vadd.f32 %v6369_v46, %v4886_v30  ;;  %v2622_v32 = vpop.f32.mrb[29].mxu0  ;;  %v3039_v33 = vld [vmem:[#allocation5 + $0x3a] sm:$0xff] }
 0x352   : > { %v3224_v34 = vld [vmem:[#allocation5 + $0x3c] sm:$0xff]  ;;  %v2623_v35 = vadd.f32 %v6369_v46, %v2622_v32  ;;  %3065 = vrot.lane.b32.xlu1 %v3039_v33, %s5217_s29 }
 0x353   : > { %3249 = vrot.lane.b32.xlu0 %v3224_v34, %s5219_s22  ;;  %v3347_v37 = vld [vmem:[#allocation5 + $0x36] sm:$0xff]  ;;  %v2690_v38 = vmax.f32 %v2628_v31, 0.0  ;;  %v3348_v39 = vld [vmem:[#allocation5 + $0x3e] sm:$0xff]  ;;  %v5197_v31 = vld [vmem:[%s7234_s2] ss:$0 sm:$0xff] }
 0x354   : > { %3357 = vst.msk [vmem:[#allocation6 + $0x48] sm:$0xff] %vm2697_vm11, %v3347_v37  ;;  %v2896_v40 = vld [vmem:[#allocation5 + $0x38] sm:$0xff]  ;;  %v2689_v41 = vmax.f32 %v2623_v35, 0.0  ;;  %3358 = vst.msk [vmem:[#allocation6 + $0x58] sm:$0xff] %vm2697_vm11, %v3348_v39 }
 0x355   : > { %2906 = vst.msk [vmem:[#allocation6 + $0x70] sm:$0xff] %vm2697_vm11, %v2896_v40  ;;  %2727 = vst.msk [vmem:[#allocation3 + $0xe8] sm:$0xff] %vm2697_vm11, %v2690_v38  ;;  %v3101_v42 = vld [vmem:[#allocation5 + $0x3b] sm:$0xff] }
 0x356   : > { %v3286_v43 = vld [vmem:[#allocation5 + $0x3d] sm:$0xff]  ;;  %2726 = vst.msk [vmem:[#allocation3 + $0xe0] sm:$0xff] %vm2697_vm11, %v2689_v41  ;;  %3127 = vrot.lane.b32.xlu1 %v3101_v42, %s5216_s15  ;;  %v6641_v41 = vld [vmem:[%s7236_s4] ss:$0 sm:$0xff] }
 0x357   : > { %3311 = vrot.lane.b32.xlu0 %v3286_v43, %s5220_s23  ;;  %v2916_v44 = vld [vmem:[#allocation5 + $0x39] sm:$0xff] }
 0x35a   : > { %3189 = vrot.lane.b32.xlu1 %v3224_v34, %s5218_s18 }
 0x35b   : > { %2943 = vrot.lane.b32.xlu0 %v2916_v44, %s5209_s17  ;;  %v3372_v13 = vld [vmem:[#allocation6 + $0x48] sm:$0xff]  ;;  %v3374_v23 = vld [vmem:[#allocation6 + $0x58] sm:$0xff] }
 0x35d   : > { %v2777_v45 = vld [vmem:[#allocation3 + $0xe0] ss:$2 sm:$0xff]  ;;  %v2813_v47 = vld [vmem:[#allocation3 + $0xe1] ss:$2 sm:$0xff] }
 0x35e   : > { %v2834_v48 = vmax.f32 %v2777_v45, %v2813_v47 }
 0x35f   : > { %3005 = vrot.lane.b32.xlu0 %v3039_v33, %s5213_s21 }
 0x360   : > { %2852 = vst.msk [vmem:[#allocation4 + $0x70] sm:$0xff] %vm2697_vm11, %v2834_v48 }
 0x367   : > { %v2881_v59 = vld [vmem:[#allocation4 + $0x6c] sm:$0xff] }
 0x370   : > { %v4889_v49 = vpop.f32.mrb[30].mxu0 }
 0x371   : > { %v2638_v50 = vadd.f32 %v6369_v46, %v4889_v49  ;;  %v2632_v51 = vpop.f32.mrb[31].mxu0 }
 0x372   : > { %v2633_v52 = vadd.f32 %v6369_v46, %v2632_v51 }
 0x373   : > { %v2692_v53 = vmax.f32 %v2638_v50, 0.0 }
 0x374   : > { %v2691_v8 = vmax.f32 %v2633_v52, 0.0 }
 0x375   : > { %2729 = vst.msk [vmem:[#allocation3 + $0xf8] sm:$0xff] %vm2697_vm11, %v2692_v53 }
 0x376   : > { %2728 = vst.msk [vmem:[#allocation3 + $0xf0] sm:$0xff] %vm2697_vm11, %v2691_v8 }
 0x37d   : > { %v2779_v54 = vld [vmem:[#allocation3 + $0xf0] ss:$2 sm:$0xff]  ;;  %v2815_v55 = vld [vmem:[#allocation3 + $0xf1] ss:$2 sm:$0xff] }
 0x37e   : > { %v2835_v56 = vmax.f32 %v2779_v54, %v2815_v55 }
 0x380   : > { %2853 = vst.msk [vmem:[#allocation4 + $0x78] sm:$0xff] %vm2697_vm11, %v2835_v56 }
 0x384   : > { %v3186_v57 = vpop.permute.xlu1 %3185  ;;  %v3246_v58 = vpop.permute.xlu0 %3245 }
 0x385   : > { %3212 = vst.msk [vmem:[#allocation6 + $0x40] sm:$0xff] %vm3207_vm9, %v3186_v57 }
 0x386   : > { %3273 = vst.msk [vmem:[#allocation6 + $0x30] sm:$0xff] %vm3269_vm12, %v3246_v58 }
 0x387   : > { %v2882_v61 = vld [vmem:[#allocation4 + $0x75] sm:$0xff] }
 0x388   : > { %v3248_v63 = vpop.permute.xlu1 %3247  ;;  %v3308_v0 = vpop.permute.xlu0 %3307  ;;  %v2883_v1 = vmax.f32 %v2881_v59, %v2882_v61 }
 0x389   : > { %3274 = vst.msk [vmem:[#allocation6 + $0x40] sm:$0xff] %vm3269_vm12, %v3248_v63 }
 0x38a   : > { %3335 = vst.msk [vmem:[#allocation6 + $0x30] sm:$0xff] %vm3331_vm10, %v3308_v0 }
 0x38b   : > { %2884 = vst.msk [vmem:[#allocation5 + $0x47] sm:$0xff] %vm2697_vm11, %v2883_v1 }
 0x38c   : > { %v3310_v2 = vpop.permute.xlu1 %3309  ;;  %v2940_v3 = vpop.permute.xlu0 %2939 }
 0x38d   : > { %3336 = vst.msk [vmem:[#allocation6 + $0x40] sm:$0xff] %vm3331_vm10, %v3310_v2 }
 0x38e   : > { %2965 = vst.msk [vmem:[#allocation6 + $0x50] sm:$0xff] %vm2959_vm5, %v2940_v3 }
 0x390   : > { %v2942_v5 = vpop.permute.xlu1 %2941  ;;  %v3002_v60 = vpop.permute.xlu0 %3001 }
 0x391   : > { %v4892_v4 = vpop.f32.mrb[32].mxu0  ;;  %v3369_v6 = vld [vmem:[#allocation6 + $0x30] sm:$0xff]  ;;  %2966 = vst.msk [vmem:[#allocation6 + $0x60] sm:$0xff] %vm2959_vm5, %v2942_v5 }
 0x392   : > { %v2648_v7 = vadd.f32 %v6369_v46, %v4892_v4  ;;  %v2642_v9 = vpop.f32.mrb[33].mxu0  ;;  %3518 = vmatmul.mubr.f32.gmra.mrb[6].mxu1 %v3369_v6  ;;  %v3225_v10 = vld [vmem:[#allocation5 + $0x44] sm:$0xff]  ;;  %3027 = vst.msk [vmem:[#allocation6 + $0x50] sm:$0xff] %vm3021_vm6, %v3002_v60 }
 0x393   : > { %v3040_v11 = vld [vmem:[#allocation5 + $0x42] sm:$0xff]  ;;  %v2643_v12 = vadd.f32 %v6369_v46, %v2642_v9  ;;  %3251 = vrot.lane.b32.xlu1 %v3225_v10, %s5219_s22  ;;  %4623 = vmatprep.mubr.msk.f32.mxu1 %vm2697_vm11, %v3372_v13  ;;  %v2980_v3 = vld [vmem:[#allocation5 + $0x4a] sm:$0x3f] }
 0x394   : > { %3067 = vrot.lane.b32.xlu0 %v3040_v11, %s5217_s29  ;;  %v2694_v14 = vmax.f32 %v2648_v7, 0.0  ;;  %v3349_v15 = vld [vmem:[#allocation5 + $0x46] sm:$0xff]  ;;  %v3004_v18 = vpop.permute.xlu1 %3003  ;;  %v3064_v46 = vpop.permute.xlu0 %3063 }
 0x395   : > { %v2897_v16 = vld [vmem:[#allocation5 + $0x40] sm:$0xff]  ;;  %v2693_v17 = vmax.f32 %v2643_v12, 0.0  ;;  %v3371_v19 = vld [vmem:[#allocation6 + $0x40] sm:$0xff]  ;;  %3359 = vst.msk [vmem:[#allocation6 + $0x68] sm:$0xff] %vm2697_vm11, %v3349_v15 }
 0x396   : > { %2907 = vst.msk [vmem:[#allocation6 + $0x80] sm:$0xff] %vm2697_vm11, %v2897_v16  ;;  %v2898_v20 = vld [vmem:[#allocation5 + $0x48] sm:$0x3f]  ;;  %2731 = vst.msk [vmem:[#allocation3 + $0x108] sm:$0xff] %vm2697_vm11, %v2694_v14  ;;  %3523 = vmatmul.mubr.f32.gmra.mrb[8].mxu1 %v3371_v19  ;;  %v3228_v16 = vld [vmem:[#allocation5 + $0x5c] sm:$0x3f] }
 0x397   : > { %3028 = vst.msk [vmem:[#allocation6 + $0x60] sm:$0xff] %vm3021_vm6, %v3004_v18  ;;  %v3287_v21 = vld [vmem:[#allocation5 + $0x45] sm:$0xff]  ;;  %4624 = vmatprep.mubr.msk.f32.mxu1 %vm2697_vm11, %v3374_v23 }
 0x398   : > { %v3102_v22 = vld [vmem:[#allocation5 + $0x43] sm:$0xff]  ;;  %2908 = vst.msk [vmem:[#allocation6 + $0x90] sm:$0x3f] %vm2733_vm14, %v2898_v20  ;;  %3313 = vrot.lane.b32.xlu1 %v3287_v21, %s5220_s23  ;;  %v3126_v24 = vpop.permute.xlu0 %3125 }
 0x399   : > { %2730 = vst.msk [vmem:[#allocation3 + $0x100] sm:$0xff] %vm2697_vm11, %v2693_v17  ;;  %3129 = vrot.lane.b32.xlu0 %v3102_v22, %s5216_s15  ;;  %v2917_v25 = vld [vmem:[#allocation5 + $0x41] sm:$0xff]  ;;  %v2918_v61 = vld [vmem:[#allocation5 + $0x49] sm:$0x3f] }
 0x39a   : > { %3089 = vst.msk [vmem:[#allocation6 + $0x50] sm:$0xff] %vm3083_vm7, %v3064_v46  ;;  %v3290_v17 = vld [vmem:[#allocation5 + $0x5d] sm:$0x3f] }
 0x39b   : > { %3151 = vst.msk [vmem:[#allocation6 + $0x50] sm:$0xff] %vm3145_vm8, %v3126_v24 }
 0x39c   : > { %2945 = vrot.lane.b32.xlu1 %v2917_v25, %s5209_s17  ;;  %v3188_v28 = vpop.permute.xlu0 %3187  ;;  %v3376_v12 = vld [vmem:[#allocation6 + $0x68] sm:$0xff] }
 0x39d   : > { %3191 = vrot.lane.b32.xlu0 %v3225_v10, %s5218_s18  ;;  %3213 = vst.msk [vmem:[#allocation6 + $0x50] sm:$0xff] %vm3207_vm9, %v3188_v28 }
 0x39f   : > { %v4895_v29 = vpop.f32.mrb[34].mxu0 }
 0x3a0   : > { %v2781_v26 = vld [vmem:[#allocation3 + $0x100] ss:$2 sm:$0xff]  ;;  %v2817_v27 = vld [vmem:[#allocation3 + $0x101] ss:$2 sm:$0xff]  ;;  %v2658_v32 = vadd.f32 %v5197_v31, %v4895_v29  ;;  %v2652_v33 = vpop.f32.mrb[35].mxu0  ;;  %3007 = vrot.lane.b32.xlu1 %v3040_v11, %s5213_s21 }
 0x3a1   : > { %v2836_v30 = vmax.f32 %v2781_v26, %v2817_v27  ;;  %v2653_v34 = vadd.f32 %v5197_v31, %v2652_v33 }
 0x3a2   : > { %v2696_v35 = vmax.f32 %v2658_v32, 0.0 }
 0x3a3   : > { %2854 = vst.msk [vmem:[#allocation4 + $0x80] sm:$0xff] %vm2697_vm11, %v2836_v30  ;;  %v2695_v37 = vmax.f32 %v2653_v34, 0.0 }
 0x3a4   : > { %2734 = vst.msk [vmem:[#allocation3 + $0x118] sm:$0x3f] %vm2733_vm14, %v2696_v35  ;;  %vm3688_vm14 = vcmask 1048320  }
 0x3a5   : > { %2732 = vst.msk [vmem:[#allocation3 + $0x110] sm:$0xff] %vm2697_vm11, %v2695_v37 }
 0x3aa   : > { %v2885_v47 = vld [vmem:[#allocation4 + $0x7e] sm:$0xff] }
 0x3ac   : > { %v2783_v38 = vld [vmem:[#allocation3 + $0x110] ss:$2 sm:$0x7f]  ;;  %v2819_v39 = vld [vmem:[#allocation3 + $0x111] ss:$2 sm:$0x7f] }
 0x3ad   : > { %v2837_v40 = vmax.f32 %v2783_v38, %v2819_v39 }
 0x3af   : > { %2856 = vst.msk [vmem:[#allocation4 + $0x88] sm:$0x7f] %vm2855_vm0, %v2837_v40  ;;  %vm3651_vm0 = vcmask 521472  }
 0x3b1   : > { %v3504_v42 = vpop.f32.mrb[0].mxu1 }
 0x3b2   : > { %v3505_v43 = vadd.f32 %v6641_v41, %v3504_v42  ;;  %v3506_v44 = vpop.f32.mrb[1].mxu1 }
 0x3b4   : > { %v3553_v45 = vmax.f32 %v3505_v43, 0.0 }
 0x3b6   : > { %v2886_v48 = vld [vmem:[#allocation4 + $0x87] sm:$0xff]  ;;  %3564 = vst.msk [vmem:[#allocation7] sm:$0xff] %vm3563_vm15, %v3553_v45 }
 0x3b7   : > { %v2887_v49 = vmax.f32 %v2885_v47, %v2886_v48  ;;  %v3382_v47 = vld [vmem:[#allocation6 + $0x98] sm:$0x3f] }
 0x3b9   : > { %2888 = vst.msk [vmem:[#allocation5 + $0x51] sm:$0xff] %vm2697_vm11, %v2887_v49 }
 0x3c0   : > { %v3041_v50 = vld [vmem:[#allocation5 + $0x4a] sm:$0xff]  ;;  %v3351_v53 = vld [vmem:[#allocation5 + $0x56] sm:$0xff] }
 0x3c1   : > { %v3226_v51 = vld [vmem:[#allocation5 + $0x4c] sm:$0xff]  ;;  %3069 = vrot.lane.b32.xlu1 %v3041_v50, %s5217_s29  ;;  %3361 = vst.msk [vmem:[#allocation6 + $0x88] sm:$0xff] %vm2697_vm11, %v3351_v53  ;;  %v3227_v2 = vld [vmem:[#allocation5 + $0x54] sm:$0xff] }
 0x3c2   : > { %3253 = vrot.lane.b32.xlu0 %v3226_v51, %s5219_s22  ;;  %v3350_v52 = vld [vmem:[#allocation5 + $0x4e] sm:$0xff] }
 0x3c3   : > { %v3103_v8 = vld [vmem:[#allocation5 + $0x4b] sm:$0xff]  ;;  %3360 = vst.msk [vmem:[#allocation6 + $0x78] sm:$0xff] %vm2697_vm11, %v3350_v52  ;;  %v3289_v6 = vld [vmem:[#allocation5 + $0x55] sm:$0xff] }
 0x3c4   : > { %v3288_v54 = vld [vmem:[#allocation5 + $0x4d] sm:$0xff]  ;;  %v3066_v55 = vpop.permute.xlu1 %3065 }
 0x3c5   : > { %3131 = vrot.lane.b32.xlu1 %v3103_v8, %s5216_s15  ;;  %v3250_v56 = vpop.permute.xlu0 %3249  ;;  %3090 = vst.msk [vmem:[#allocation6 + $0x60] sm:$0xff] %vm3083_vm7, %v3066_v55  ;;  %v3042_v7 = vld [vmem:[#allocation5 + $0x52] sm:$0x3f] }
 0x3c6   : > { %3315 = vrot.lane.b32.xlu0 %v3288_v54, %s5220_s23  ;;  %3275 = vst.msk [vmem:[#allocation6 + $0x50] sm:$0xff] %vm3269_vm12, %v3250_v56  ;;  %v3509_v57 = vpop.f32.mrb[2].mxu1  ;;  %v3166_v14 = vld [vmem:[#allocation5 + $0x54] sm:$0x3f] }
 0x3c7   : > { %v3510_v58 = vadd.f32 %v6641_v41, %v3509_v57  ;;  %v3511_v59 = vpop.f32.mrb[3].mxu1  ;;  %v3104_v15 = vld [vmem:[#allocation5 + $0x53] sm:$0x3f] }
 0x3c8   : > { %v3128_v0 = vpop.permute.xlu1 %3127  ;;  %v3380_v40 = vld [vmem:[#allocation6 + $0x88] sm:$0xff] }
 0x3c9   : > { %3193 = vrot.lane.b32.xlu1 %v3226_v51, %s5218_s18  ;;  %v3554_v63 = vmax.f32 %v3510_v58, 0.0  ;;  %v3312_v1 = vpop.permute.xlu0 %3311  ;;  %3152 = vst.msk [vmem:[#allocation6 + $0x60] sm:$0xff] %vm3145_vm8, %v3128_v0 }
 0x3ca   : > { %2947 = vrot.lane.b32.xlu0 %v2918_v61, %s5209_s17  ;;  %3337 = vst.msk [vmem:[#allocation6 + $0x50] sm:$0xff] %vm3331_vm10, %v3312_v1  ;;  %v3378_v29 = vld [vmem:[#allocation6 + $0x78] sm:$0xff] }
 0x3cb   : > { %3565 = vst.msk [vmem:[#allocation7 + $0x8] sm:$0xff] %vm3563_vm15, %v3554_v63 }
 0x3cc   : > { %v3190_v4 = vpop.permute.xlu1 %3189 }
 0x3cd   : > { %3255 = vrot.lane.b32.xlu1 %v3227_v2, %s5219_s22  ;;  %v2944_v5 = vpop.permute.xlu0 %2943  ;;  %3214 = vst.msk [vmem:[#allocation6 + $0x60] sm:$0xff] %vm3207_vm9, %v3190_v4 }
 0x3ce   : > { %3009 = vrot.lane.b32.xlu0 %v2980_v3, %s5213_s21  ;;  %2967 = vst.msk [vmem:[#allocation6 + $0x70] sm:$0xff] %vm2959_vm5, %v2944_v5 }
 0x3d1   : > { %3317 = vrot.lane.b32.xlu1 %v3289_v6, %s5220_s23  ;;  %v3006_v60 = vpop.permute.xlu0 %3005  ;;  %v3373_v9 = vld [vmem:[#allocation6 + $0x50] sm:$0xff] }
 0x3d2   : > { %3071 = vrot.lane.b32.xlu0 %v3042_v7, %s5217_s29  ;;  %v3581_v10 = vld [vmem:[#allocation7] ss:$2 sm:$0xff]  ;;  %v3591_v11 = vld [vmem:[#allocation7 + $0x1] ss:$2 sm:$0xff]  ;;  %3029 = vst.msk [vmem:[#allocation6 + $0x70] sm:$0xff] %vm3021_vm6, %v3006_v60  ;;  %3528 = vmatmul.mubr.f32.gmra.mrb[10].mxu1 %v3373_v9 }
 0x3d3   : > { %v3600_v13 = vmax.f32 %v3581_v10, %v3591_v11  ;;  %4625 = vmatprep.mubr.msk.f32.mxu1 %vm2697_vm11, %v3376_v12 }
 0x3d5   : > { %3195 = vrot.lane.b32.xlu1 %v3166_v14, %s5218_s18  ;;  %3605 = vst.msk [vmem:[#allocation8] sm:$0xff] %vm3563_vm15, %v3600_v13  ;;  %v3800_v13 = vld [vmem:[%s7237_s5 + $0x100] sm:$0xff]  ;;  %v3801_v14 = vld [vmem:[%s7237_s5 + $0x108] sm:$0xff] }
 0x3d6   : > { %3133 = vrot.lane.b32.xlu0 %v3104_v15, %s5216_s15  ;;  %v3755_v15 = vld [vmem:[#allocation9 + $0x1e] sm:$0x3f] }
 0x3d9   : > { %3319 = vrot.lane.b32.xlu1 %v3290_v17, %s5220_s23  ;;  %v3802_v17 = vld [vmem:[%s7237_s5 + $0x110] sm:$0xff] }
 0x3da   : > { %3257 = vrot.lane.b32.xlu0 %v3228_v16, %s5219_s22  ;;  %v5054_v16 = vpack.c.bf16 %v3801_v14, %v3800_v13  ;;  %v3794_v14 = vld [vmem:[%s7237_s5 + $0xd0] sm:$0xff] }
 0x3dc   : > { %v3611_v0 = vld [vmem:[#allocation8] sm:$0xf]  ;;  %5055 = vmatpush3.bf16.msra.mxu0 %v5054_v16  ;;  %v3778_v16 = vld [vmem:[%s7237_s5 + $0x50] sm:$0xff] }
 0x3dd   : > { %5056 = vmatprep.subr.bf16.mxu0 %v5215_v62 }
 0x405   : > { %v3252_v18 = vpop.permute.xlu1 %3251  ;;  %v3514_v20 = vpop.f32.mrb[4].mxu1 }
 0x406   : > { %v3068_v19 = vpop.permute.xlu0 %3067  ;;  %3276 = vst.msk [vmem:[#allocation6 + $0x60] sm:$0xff] %vm3269_vm12, %v3252_v18  ;;  %v3515_v46 = vadd.f32 %v6641_v41, %v3514_v20  ;;  %v3516_v21 = vpop.f32.mrb[5].mxu1  ;;  %v3803_v18 = vld [vmem:[%s7237_s5 + $0x118] sm:$0xff] }
 0x407   : > { %3091 = vst.msk [vmem:[#allocation6 + $0x70] sm:$0xff] %vm3083_vm7, %v3068_v19  ;;  %v5057_v19 = vpack.c.bf16 %v3803_v18, %v3802_v17 }
 0x408   : > { %v3555_v22 = vmax.f32 %v3515_v46, 0.0 }
 0x409   : > { %5058 = vmatpush3.bf16.msra.mxu0 %v5057_v19  ;;  %v3779_v19 = vld [vmem:[%s7237_s5 + $0x58] sm:$0xff] }
 0x40a   : > { %v3314_v23 = vpop.permute.xlu1 %3313  ;;  %3566 = vst.msk [vmem:[#allocation7 + $0x10] sm:$0xff] %vm3563_vm15, %v3555_v22 }
 0x40b   : > { %v3130_v24 = vpop.permute.xlu0 %3129  ;;  %3338 = vst.msk [vmem:[#allocation6 + $0x60] sm:$0xff] %vm3331_vm10, %v3314_v23 }
 0x40c   : > { %3153 = vst.msk [vmem:[#allocation6 + $0x70] sm:$0xff] %vm3145_vm8, %v3130_v24 }
 0x40e   : > { %v2946_v25 = vpop.permute.xlu1 %2945 }
 0x40f   : > { %v3192_v26 = vpop.permute.xlu0 %3191  ;;  %2968 = vst.msk [vmem:[#allocation6 + $0x80] sm:$0xff] %vm2959_vm5, %v2946_v25  ;;  %vm3155_vm5 = vcmask 652800  }
 0x410   : > { %3215 = vst.msk [vmem:[#allocation6 + $0x70] sm:$0xff] %vm3207_vm9, %v3192_v26 }
 0x412   : > { %v3008_v27 = vpop.permute.xlu1 %3007  ;;  %v3375_v28 = vld [vmem:[#allocation6 + $0x60] sm:$0xff] }
 0x413   : > { %3030 = vst.msk [vmem:[#allocation6 + $0x80] sm:$0xff] %vm3021_vm6, %v3008_v27  ;;  %3533 = vmatmul.mubr.f32.gmra.mrb[12].mxu1 %v3375_v28  ;;  %vm3217_vm6 = vcmask 784000   ;;  %v3784_v27 = vld [vmem:[%s7237_s5 + $0x80] sm:$0xff]  ;;  %v3785_v28 = vld [vmem:[%s7237_s5 + $0x88] sm:$0xff] }
 0x414   : > { %4626 = vmatprep.mubr.msk.f32.mxu1 %vm2697_vm11, %v3378_v29  ;;  %v3768_v29 = vld [vmem:[%s7237_s5] sm:$0xff] }
 0x433   : > { %v3070_v30 = vpop.permute.xlu1 %3069 }
 0x434   : > { %v3254_v31 = vpop.permute.xlu0 %3253  ;;  %3092 = vst.msk [vmem:[#allocation6 + $0x80] sm:$0xff] %vm3083_vm7, %v3070_v30  ;;  %vm3279_vm7 = vcmask 915200   ;;  %v5021_v30 = vpack.c.bf16 %v3785_v28, %v3784_v27  ;;  %v3797_v27 = vld [vmem:[%s7237_s5 + $0xe8] sm:$0xff] }
 0x435   : > { %3277 = vst.msk [vmem:[#allocation6 + $0x70] sm:$0xff] %vm3269_vm12, %v3254_v31  ;;  %v3769_v31 = vld [vmem:[%s7237_s5 + $0x8] sm:$0xff] }
 0x436   : > { %5022 = vmatprep.subr.bf16.mxu1 %v5021_v30 }
 0x437   : > { %v3132_v32 = vpop.permute.xlu1 %3131 }
 0x438   : > { %v3316_v33 = vpop.permute.xlu0 %3315  ;;  %3154 = vst.msk [vmem:[#allocation6 + $0x80] sm:$0xff] %vm3145_vm8, %v3132_v32  ;;  %vm3341_vm8 = vcmask 1046400   ;;  %v3786_v32 = vld [vmem:[%s7237_s5 + $0x90] sm:$0xff] }
 0x439   : > { %3339 = vst.msk [vmem:[#allocation6 + $0x70] sm:$0xff] %vm3331_vm10, %v3316_v33  ;;  %v3787_v33 = vld [vmem:[%s7237_s5 + $0x98] sm:$0xff] }
 0x43b   : > { %v3194_v34 = vpop.permute.xlu1 %3193 }
 0x43c   : > { %v2948_v35 = vpop.permute.xlu0 %2947  ;;  %3216 = vst.msk [vmem:[#allocation6 + $0x80] sm:$0xff] %vm3207_vm9, %v3194_v34  ;;  %vm5221_vm9 = vmmov 0   ;;  %v5023_v34 = vpack.c.bf16 %v3769_v31, %v3768_v29  ;;  %v3781_v29 = vld [vmem:[%s7237_s5 + $0x68] sm:$0xff]  ;;  %v3798_v31 = vld [vmem:[%s7237_s5 + $0xf0] sm:$0xff] }
 0x43d   : > { %2970 = vst.msk [vmem:[#allocation6 + $0x90] sm:$0x3f] %vm2969_vm2, %v2948_v35  ;;  %4904 = vmatprep.mubr.msk.f32.mxu0 %vm5221_vm9, %v5214_v36  ;;  %v5025_v35 = vpack.c.bf16 %v3787_v33, %v3786_v32  ;;  %v3799_v32 = vld [vmem:[%s7237_s5 + $0xf8] sm:$0xff]  ;;  %v3782_v33 = vld [vmem:[%s7237_s5 + $0x70] sm:$0xff]  ;;  %vm3983_vm2 = vcmask 523264  }
 0x43e   : > { %5024 = vmatpush3.bf16.msra.mxu1 %v5023_v34  ;;  %v5049_v34 = vpack.c.bf16 %v3799_v32, %v3798_v31  ;;  %3988 = vst.msk [vmem:[#allocation13] sm:$0xff] %vm3983_vm2, %v5214_v36  ;;  %3989 = vst.msk [vmem:[#allocation13 + $0x8] sm:$0xff] %vm3983_vm2, %v5214_v36  ;;  %v4052_v32 = vld [vmem:[%s7239_s7 + $0x8] sm:$0xff] }
 0x43f   : > { %v3256_v37 = vpop.permute.xlu1 %3255  ;;  %5026 = vmatprep.subr.bf16.mxu1 %v5025_v35  ;;  %v3783_v35 = vld [vmem:[%s7237_s5 + $0x78] sm:$0xff] }
 0x440   : > { %v3010_v38 = vpop.permute.xlu0 %3009  ;;  %v3377_v39 = vld [vmem:[#allocation6 + $0x70] sm:$0xff]  ;;  %3278 = vst.msk [vmem:[#allocation6 + $0x80] sm:$0xff] %vm3269_vm12, %v3256_v37  ;;  %v3770_v37 = vld [vmem:[%s7237_s5 + $0x10] sm:$0xff]  ;;  %vm3648_vm12 = vcmask 523520  }
 0x441   : > { %3032 = vst.msk [vmem:[#allocation6 + $0x90] sm:$0x3f] %vm3031_vm3, %v3010_v38  ;;  %3538 = vmatmul.mubr.f32.gmra.mrb[14].mxu1 %v3377_v39  ;;  %v3771_v38 = vld [vmem:[%s7237_s5 + $0x18] sm:$0xff]  ;;  %v3788_v39 = vld [vmem:[%s7237_s5 + $0xa0] sm:$0xff]  ;;  %vm3986_vm3 = vcmask 521216  }
 0x442   : > { %4627 = vmatprep.mubr.msk.f32.mxu1 %vm2697_vm11, %v3380_v40  ;;  %v3789_v40 = vld [vmem:[%s7237_s5 + $0xa8] sm:$0xff] }
 0x443   : > { %v3318_v42 = vpop.permute.xlu1 %3317 }
 0x444   : > { %v3072_v43 = vpop.permute.xlu0 %3071  ;;  %3340 = vst.msk [vmem:[#allocation6 + $0x80] sm:$0xff] %vm3331_vm10, %v3318_v42  ;;  %v5027_v42 = vpack.c.bf16 %v3771_v38, %v3770_v37  ;;  %vm3668_vm10 = vcmask 785920   ;;  %v5051_v37 = vpack.c.bf16 %v3783_v35, %v3782_v33  ;;  %v4069_v33 = vld [vmem:[%s7239_s7 + $0x90] sm:$0xff] }
 0x445   : > { %3094 = vst.msk [vmem:[#allocation6 + $0x90] sm:$0x3f] %vm3093_vm4, %v3072_v43  ;;  %v5029_v43 = vpack.c.bf16 %v3789_v40, %v3788_v39  ;;  %vm4005_vm4 = vcmask 517120  }
 0x446   : > { %5028 = vmatpush3.bf16.msra.mxu1 %v5027_v42 }
 0x447   : > { %v3196_v44 = vpop.permute.xlu1 %3195  ;;  %5030 = vmatprep.subr.bf16.mxu1 %v5029_v43 }
 0x448   : > { %v3134_v45 = vpop.permute.xlu0 %3133 }
 0x449   : > { %3156 = vst.msk [vmem:[#allocation6 + $0x90] sm:$0x3f] %vm3155_vm5, %v3134_v45  ;;  %v3773_v45 = vld [vmem:[%s7237_s5 + $0x28] sm:$0xff]  ;;  %vm4000_vm5 = vcmask 518144  }
 0x44a   : > { %3218 = vst.msk [vmem:[#allocation6 + $0x90] sm:$0x3f] %vm3217_vm6, %v3196_v44  ;;  %v3772_v44 = vld [vmem:[%s7237_s5 + $0x20] sm:$0xff]  ;;  %vm4018_vm6 = vcmask 1046016  }
 0x44b   : > { %v3320_v49 = vpop.permute.xlu1 %3319  ;;  %v3379_v50 = vld [vmem:[#allocation6 + $0x80] sm:$0xff] }
 0x44c   : > { %v3258_v48 = vpop.permute.xlu0 %3257  ;;  %3543 = vmatmul.mubr.f32.gmra.mrb[16].mxu1 %v3379_v50 }
 0x44d   : > { %3280 = vst.msk [vmem:[#allocation6 + $0x90] sm:$0x3f] %vm3279_vm7, %v3258_v48  ;;  %4628 = vmatprep.mubr.msk.f32.mxu1 %vm2697_vm11, %v3382_v47  ;;  %vm3573_vm11 = vcmask 259072   ;;  %v3790_v47 = vld [vmem:[%s7237_s5 + $0xb0] sm:$0xff]  ;;  %v3791_v48 = vld [vmem:[%s7237_s5 + $0xb8] sm:$0xff]  ;;  %vm4525_vm7 = vcmask 122880  }
 0x44e   : > { %3342 = vst.msk [vmem:[#allocation6 + $0x90] sm:$0x3f] %vm3341_vm8, %v3320_v49  ;;  %v5031_v49 = vpack.c.bf16 %v3773_v45, %v3772_v44  ;;  %v5033_v50 = vpack.c.bf16 %v3791_v48, %v3790_v47 }
 0x44f   : > { %3758 = vst.msk [vmem:[#allocation10 + $0x40] sm:$0x3f] %vm3573_vm11, %v3755_v15  ;;  %v3795_v15 = vld [vmem:[%s7237_s5 + $0xd8] sm:$0xff] }
 0x450   : > { %5032 = vmatpush3.bf16.msra.mxu1 %v5031_v49  ;;  %v5041_v18 = vpack.c.bf16 %v3795_v15, %v3794_v14 }
 0x451   : > { %5034 = vmatprep.subr.bf16.mxu1 %v5033_v50 }
 0x455   : > { %v3381_v51 = vld [vmem:[#allocation6 + $0x90] sm:$0x3f] }
 0x456   : > { %3548 = vmatmul.mubr.f32.gmra.mrb[18].mxu1 %v3381_v51  ;;  %v3774_v51 = vld [vmem:[%s7237_s5 + $0x30] sm:$0xff] }
 0x465   : > { %v3519_v52 = vpop.f32.mrb[6].mxu1 }
 0x466   : > { %v3520_v53 = vadd.f32 %v6641_v41, %v3519_v52  ;;  %v3521_v8 = vpop.f32.mrb[7].mxu1  ;;  %v3775_v52 = vld [vmem:[%s7237_s5 + $0x38] sm:$0xff] }
 0x467   : > { %v3793_v8 = vld [vmem:[%s7237_s5 + $0xc8] sm:$0xff] }
 0x468   : > { %v3556_v54 = vmax.f32 %v3520_v53, 0.0  ;;  %v3792_v53 = vld [vmem:[%s7237_s5 + $0xc0] sm:$0xff] }
 0x469   : > { %v3524_v55 = vpop.f32.mrb[8].mxu1 }
 0x46a   : > { %3567 = vst.msk [vmem:[#allocation7 + $0x18] sm:$0xff] %vm3563_vm15, %v3556_v54  ;;  %v3525_v56 = vadd.f32 %v6641_v41, %v3524_v55  ;;  %v3526_v57 = vpop.f32.mrb[9].mxu1  ;;  %v5035_v54 = vpack.c.bf16 %v3775_v52, %v3774_v51 }
 0x46b   : > { %v3776_v57 = vld [vmem:[%s7237_s5 + $0x40] sm:$0xff] }
 0x46c   : > { %v3557_v58 = vmax.f32 %v3525_v56, 0.0  ;;  %v5037_v56 = vpack.c.bf16 %v3793_v8, %v3792_v53  ;;  %5036 = vmatpush3.bf16.msra.mxu1 %v5035_v54 }
 0x46e   : > { %3568 = vst.msk [vmem:[#allocation7 + $0x20] sm:$0xff] %vm3563_vm15, %v3557_v58  ;;  %v3777_v58 = vld [vmem:[%s7237_s5 + $0x48] sm:$0xff]  ;;  %5038 = vmatprep.subr.bf16.mxu1 %v5037_v56 }
 0x471   : > { %v3583_v59 = vld [vmem:[#allocation7 + $0x10] ss:$2 sm:$0xff]  ;;  %v3593_v61 = vld [vmem:[#allocation7 + $0x11] ss:$2 sm:$0xff] }
 0x472   : > { %v3601_v63 = vmax.f32 %v3583_v59, %v3593_v61 }
 0x474   : > { %3606 = vst.msk [vmem:[#allocation8 + $0x8] sm:$0xff] %vm3563_vm15, %v3601_v63 }
 0x47b   : > { %v3612_v1 = vld [vmem:[#allocation8 + $0x5] sm:$0xf]  ;;  %v3615_v20 = vld [vmem:[#allocation8 + $0xa] sm:$0xf] }
 0x47c   : > { %v3613_v2 = vmax.f32 %v3611_v0, %v3612_v1  ;;  %v5039_v0 = vpack.c.bf16 %v3777_v58, %v3776_v57 }
 0x47e   : > { %3614 = vst.msk [vmem:[#allocation9 + $0x7] sm:$0xf] %vm3579_vm1, %v3613_v2  ;;  %5040 = vmatpush3.bf16.msra.mxu1 %v5039_v0 }
 0x47f   : > { %5042 = vmatprep.subr.bf16.mxu1 %v5041_v18 }
 0x485   : > { %v3633_v3 = vld [vmem:[#allocation9 + $0x1] sm:$0xff] }
 0x486   : > { %v3627_v4 = vld [vmem:[#allocation9] sm:$0xff]  ;;  %3639 = vrot.lane.b32.xlu1 %v3633_v3, %s5213_s21 }
 0x487   : > { %3630 = vst.msk [vmem:[#allocation10] sm:$0xff] %vm3563_vm15, %v3627_v4  ;;  %v3653_v5 = vld [vmem:[#allocation9 + $0x2] sm:$0xff] }
 0x48a   : > { %3659 = vrot.lane.b32.xlu1 %v3653_v5, %s5216_s15 }
 0x4a5   : > { %v3529_v6 = vpop.f32.mrb[10].mxu1 }
 0x4a6   : > { %v3530_v7 = vadd.f32 %v6641_v41, %v3529_v6  ;;  %v3531_v60 = vpop.f32.mrb[11].mxu1 }
 0x4a8   : > { %v3558_v9 = vmax.f32 %v3530_v7, 0.0 }
 0x4aa   : > { %3569 = vst.msk [vmem:[#allocation7 + $0x28] sm:$0xff] %vm3563_vm15, %v3558_v9 }
 0x4b1   : > { %v3585_v10 = vld [vmem:[#allocation7 + $0x20] ss:$2 sm:$0xff]  ;;  %v3595_v11 = vld [vmem:[#allocation7 + $0x21] ss:$2 sm:$0xff] }
 0x4b2   : > { %v3602_v12 = vmax.f32 %v3585_v10, %v3595_v11 }
 0x4b4   : > { %3607 = vst.msk [vmem:[#allocation8 + $0x10] sm:$0xff] %vm3563_vm15, %v3602_v12 }
 0x4bb   : > { %v3616_v46 = vld [vmem:[#allocation8 + $0xf] sm:$0xf] }
 0x4bc   : > { %v3617_v21 = vmax.f32 %v3615_v20, %v3616_v46 }
 0x4be   : > { %3618 = vst.msk [vmem:[#allocation9 + $0xd] sm:$0xf] %vm3579_vm1, %v3617_v21  ;;  %v3619_v21 = vld [vmem:[#allocation8 + $0x14] sm:$0xf] }
 0x4c5   : > { %v3699_v22 = vld [vmem:[#allocation9 + $0x8] sm:$0xff] }
 0x4c6   : > { %v3673_v23 = vld [vmem:[#allocation9 + $0x6] sm:$0xff]  ;;  %3705 = vrot.lane.b32.xlu0 %v3699_v22, %s5213_s21  ;;  %3631 = vst.msk [vmem:[#allocation10 + $0x18] sm:$0xff] %vm3563_vm15, %v3699_v22 }
 0x4c7   : > { %3679 = vrot.lane.b32.xlu1 %v3673_v23, %s5219_s22  ;;  %v3693_v24 = vld [vmem:[#allocation9 + $0x7] sm:$0xff]  ;;  %v5043_v23 = vpack.c.bf16 %v3779_v19, %v3778_v16 }
 0x4c8   : > { %3696 = vst.msk [vmem:[#allocation10 + $0x8] sm:$0xff] %vm3563_vm15, %v3693_v24  ;;  %v3634_v25 = vld [vmem:[#allocation9 + $0x9] sm:$0xff] }
 0x4c9   : > { %v3654_v26 = vld [vmem:[#allocation9 + $0xa] sm:$0xff]  ;;  %5044 = vmatpush3.bf16.msra.mxu1 %v5043_v23 }
 0x4cb   : > { %3641 = vrot.lane.b32.xlu1 %v3634_v25, %s5213_s21 }
 0x4cf   : > { %3661 = vrot.lane.b32.xlu1 %v3654_v26, %s5216_s15  ;;  %v3796_v26 = vld [vmem:[%s7237_s5 + $0xe0] sm:$0xff] }
 0x4d0   : > { %v5045_v28 = vpack.c.bf16 %v3797_v27, %v3796_v26 }
 0x4d2   : > { %5046 = vmatprep.subr.bf16.mxu1 %v5045_v28  ;;  %v4067_v28 = vld [vmem:[%s7239_s7 + $0x80] sm:$0xff] }
 0x4e6   : > { %v3534_v55 = vpop.f32.mrb[12].mxu1 }
 0x4e7   : > { %v3535_v59 = vadd.f32 %v6641_v41, %v3534_v55  ;;  %v3536_v61 = vpop.f32.mrb[13].mxu1 }
 0x4e9   : > { %v3559_v63 = vmax.f32 %v3535_v59, 0.0 }
 0x4eb   : > { %3570 = vst.msk [vmem:[#allocation7 + $0x30] sm:$0xff] %vm3563_vm15, %v3559_v63 }
 0x4f8   : > { %v3640_v1 = vpop.permute.xlu1 %3639 }
 0x4f9   : > { %3649 = vst.msk [vmem:[#allocation10] sm:$0xff] %vm3648_vm12, %v3640_v1 }
 0x4fc   : > { %v3660_v2 = vpop.permute.xlu1 %3659 }
 0x4fd   : > { %3669 = vst.msk [vmem:[#allocation10] sm:$0xff] %vm3668_vm10, %v3660_v2 }
 0x514   : > { %v3539_v3 = vpop.f32.mrb[14].mxu1 }
 0x515   : > { %v3540_v4 = vadd.f32 %v6641_v41, %v3539_v3  ;;  %v3541_v5 = vpop.f32.mrb[15].mxu1 }
 0x516   : > { %v3737_v5 = vld [vmem:[#allocation9 + $0x1d] sm:$0x3f] }
 0x517   : > { %v3560_v6 = vmax.f32 %v3540_v4, 0.0  ;;  %v3767_v4 = vld [vmem:[#allocation10 + $0x40] sm:$0x3f] }
 0x519   : > { %3571 = vst.msk [vmem:[#allocation7 + $0x38] sm:$0xff] %vm3563_vm15, %v3560_v6 }
 0x51f   : > { %v3544_v9 = vpop.f32.mrb[16].mxu1 }
 0x520   : > { %v3587_v7 = vld [vmem:[#allocation7 + $0x30] ss:$2 sm:$0xff]  ;;  %v3597_v60 = vld [vmem:[#allocation7 + $0x31] ss:$2 sm:$0xff]  ;;  %v3545_v11 = vadd.f32 %v6641_v41, %v3544_v9  ;;  %v3546_v12 = vpop.f32.mrb[17].mxu1 }
 0x521   : > { %v3603_v10 = vmax.f32 %v3587_v7, %v3597_v60 }
 0x522   : > { %v3561_v13 = vmax.f32 %v3545_v11, 0.0 }
 0x523   : > { %3608 = vst.msk [vmem:[#allocation8 + $0x18] sm:$0xff] %vm3563_vm15, %v3603_v10 }
 0x524   : > { %3572 = vst.msk [vmem:[#allocation7 + $0x40] sm:$0xff] %vm3563_vm15, %v3561_v13 }
 0x529   : > { %v3549_v17 = vpop.f32.mrb[18].mxu1 }
 0x52a   : > { %v3550_v20 = vadd.f32 %v6641_v41, %v3549_v17  ;;  %v3551_v46 = vpop.f32.mrb[19].mxu1  ;;  %v3620_v22 = vld [vmem:[#allocation8 + $0x19] sm:$0xf] }
 0x52b   : > { %v3621_v24 = vmax.f32 %v3619_v21, %v3620_v22  ;;  %v3780_v41 = vld [vmem:[%s7237_s5 + $0x60] sm:$0xff] }
 0x52c   : > { %v3562_v25 = vmax.f32 %v3550_v20, 0.0  ;;  %v5047_v30 = vpack.c.bf16 %v3781_v29, %v3780_v41  ;;  %v4068_v29 = vld [vmem:[%s7239_s7 + $0x88] sm:$0xff] }
 0x52d   : > { %3622 = vst.msk [vmem:[#allocation9 + $0x13] sm:$0xf] %vm3579_vm1, %v3621_v24  ;;  %v5059_v31 = vpack.c.bf16 %v4068_v29, %v4067_v28 }
 0x52e   : > { %3574 = vst.msk [vmem:[#allocation7 + $0x48] sm:$0x3f] %vm3573_vm11, %v3562_v25  ;;  %5048 = vmatpush3.bf16.msra.mxu1 %v5047_v30  ;;  %v4051_v30 = vld [vmem:[%s7239_s7] sm:$0xff] }
 0x52f   : > { %5050 = vmatprep.subr.bf16.mxu1 %v5049_v34  ;;  %v4070_v34 = vld [vmem:[%s7239_s7 + $0x98] sm:$0xff]  ;;  %v5061_v35 = vpack.c.bf16 %v4052_v32, %v4051_v30  ;;  %v4087_v30 = vld [vmem:[%s7239_s7 + $0x120] sm:$0xff] }
 0x530   : > { %v4075_v32 = vld [vmem:[%s7239_s7 + $0xc0] sm:$0xff] }
 0x532   : > { %5052 = vmatpush3.bf16.msra.mxu1 %v5051_v37  ;;  %v5063_v37 = vpack.c.bf16 %v4070_v34, %v4069_v33 }
 0x533   : > { %5060 = vmatprep.subr.bf16.mxu1 %v5059_v31  ;;  %v4088_v31 = vld [vmem:[%s7239_s7 + $0x128] sm:$0xff] }
 0x534   : > { %v3717_v38 = vld [vmem:[#allocation9 + $0xc] sm:$0xff] }
 0x535   : > { %v3674_v39 = vld [vmem:[#allocation9 + $0xe] sm:$0xff]  ;;  %3723 = vrot.lane.b32.xlu0 %v3717_v38, %s5216_s15  ;;  %v4053_v38 = vld [vmem:[%s7239_s7 + $0x10] sm:$0xff] }
 0x536   : > { %v3589_v40 = vld [vmem:[#allocation7 + $0x40] ss:$2 sm:$0x7f]  ;;  %v3599_v42 = vld [vmem:[#allocation7 + $0x41] ss:$2 sm:$0x7f]  ;;  %3681 = vrot.lane.b32.xlu1 %v3674_v39, %s5219_s22 }
 0x537   : > { %3756 = vst.msk [vmem:[#allocation10 + $0x10] sm:$0xff] %vm3563_vm15, %v3674_v39  ;;  %v3604_v43 = vmax.f32 %v3589_v40, %v3599_v42  ;;  %v3629_v44 = vld [vmem:[#allocation9 + $0x10] sm:$0x3f]  ;;  %v4054_v39 = vld [vmem:[%s7239_s7 + $0x18] sm:$0xff]  ;;  %v4100_v42 = vld [vmem:[%s7239_s7 + $0x188] sm:$0xff] }
 0x538   : > { %v3694_v45 = vld [vmem:[#allocation9 + $0xf] sm:$0xff]  ;;  %3632 = vst.msk [vmem:[#allocation10 + $0x30] sm:$0x3f] %vm3573_vm11, %v3629_v44  ;;  %v3706_v49 = vpop.permute.xlu0 %3705  ;;  %v4084_v44 = vld [vmem:[%s7239_s7 + $0x108] sm:$0xff] }
 0x539   : > { %3610 = vst.msk [vmem:[#allocation8 + $0x20] sm:$0x7f] %vm3609_vm13, %v3604_v43  ;;  %v3735_v47 = vld [vmem:[#allocation9 + $0xd] sm:$0xff]  ;;  %v3680_v50 = vpop.permute.xlu1 %3679 }
 0x53a   : > { %v3635_v48 = vld [vmem:[#allocation9 + $0x11] sm:$0x3f]  ;;  %3697 = vst.msk [vmem:[#allocation10 + $0x20] sm:$0xff] %vm3563_vm15, %v3694_v45  ;;  %3741 = vrot.lane.b32.xlu0 %v3735_v47, %s5219_s22  ;;  %v5065_v45 = vpack.c.bf16 %v4054_v39, %v4053_v38  ;;  %v4076_v38 = vld [vmem:[%s7239_s7 + $0xc8] sm:$0xff] }
 0x53b   : > { %3643 = vrot.lane.b32.xlu1 %v3635_v48, %s5213_s21  ;;  %3714 = vst.msk [vmem:[#allocation10 + $0x8] sm:$0xff] %vm3648_vm12, %v3706_v49  ;;  %v3700_v52 = vld [vmem:[#allocation9 + $0x10] sm:$0xff] }
 0x53c   : > { %3689 = vst.msk [vmem:[#allocation10] sm:$0xff] %vm3688_vm14, %v3680_v50  ;;  %v3655_v53 = vld [vmem:[#allocation9 + $0x12] sm:$0x3f]  ;;  %v4072_v50 = vld [vmem:[%s7239_s7 + $0xa8] sm:$0xff] }
 0x53d   : > { %v3642_v8 = vpop.permute.xlu1 %3641  ;;  %v4099_v40 = vld [vmem:[%s7239_s7 + $0x180] sm:$0xff] }
 0x53e   : > { %v3761_v51 = vld [vmem:[#allocation10 + $0x10] sm:$0xff]  ;;  %3707 = vrot.lane.b32.xlu0 %v3700_v52, %s5213_s21  ;;  %3650 = vst.msk [vmem:[#allocation10 + $0x18] sm:$0xff] %vm3648_vm12, %v3642_v8  ;;  %v4083_v43 = vld [vmem:[%s7239_s7 + $0x100] sm:$0xff]  ;;  %v5091_v47 = vpack.c.bf16 %v4100_v42, %v4099_v40  ;;  %v4101_v8 = vld [vmem:[%s7239_s7 + $0x190] sm:$0xff]  ;;  %v5075_v42 = vpack.c.bf16 %v4076_v38, %v4075_v32 }
 0x53f   : > { %4905 = vmatmul.mubr.msk.f32.vlgmr.msra.gmra.mrb[36].mxu0 %vm3563_vm15, %v3761_v51  ;;  %3663 = vrot.lane.b32.xlu1 %v3655_v53, %s5216_s15  ;;  %v5093_v48 = vpack.c.bf16 %v4084_v44, %v4083_v43  ;;  %v4071_v49 = vld [vmem:[%s7239_s7 + $0xa0] sm:$0xff]  ;;  %v4056_v53 = vld [vmem:[%s7239_s7 + $0x28] sm:$0xff]  ;;  %v4105_v44 = vld [vmem:[%s7239_s7 + $0x1b0] sm:$0xff] }
 0x540   : > { %4907 = vmatprep.mubr.msk.f32.mxu0 %vm5221_vm9, %v5214_v36  ;;  %v3623_v54 = vld [vmem:[#allocation8 + $0x1e] sm:$0xf]  ;;  %v3624_v55 = vld [vmem:[#allocation8 + $0x23] sm:$0xf]  ;;  %v5067_v52 = vpack.c.bf16 %v4072_v50, %v4071_v49  ;;  %5092 = vmatprep.subr.bf16.mxu0 %v5091_v47  ;;  %v4089_v47 = vld [vmem:[%s7239_s7 + $0x130] sm:$0xff] }
 0x541   : > { %v3625_v56 = vmax.f32 %v3623_v54, %v3624_v55  ;;  %v3662_v57 = vpop.permute.xlu1 %3661  ;;  %v4055_v51 = vld [vmem:[%s7239_s7 + $0x20] sm:$0xff]  ;;  %v4102_v54 = vld [vmem:[%s7239_s7 + $0x198] sm:$0xff]  ;;  %5094 = vmatpush3.bf16.msra.mxu0 %v5093_v48  ;;  %v4060_v40 = vld [vmem:[%s7239_s7 + $0x48] sm:$0xff] }
 0x542   : > { %3670 = vst.msk [vmem:[#allocation10 + $0x18] sm:$0xff] %vm3668_vm10, %v3662_v57  ;;  %v5095_v55 = vpack.c.bf16 %v4102_v54, %v4101_v8  ;;  %v4086_v57 = vld [vmem:[%s7239_s7 + $0x118] sm:$0xff]  ;;  %v4059_v39 = vld [vmem:[%s7239_s7 + $0x40] sm:$0xff]  ;;  %v4077_v50 = vld [vmem:[%s7239_s7 + $0xd0] sm:$0xff] }
 0x543   : > { %3626 = vst.msk [vmem:[#allocation9 + $0x19] sm:$0xf] %vm3579_vm1, %v3625_v56  ;;  %vm3671_vm1 = vcmask 783872   ;;  %v3759_v13 = vld [vmem:[#allocation10] sm:$0xff]  ;;  %v4085_v56 = vld [vmem:[%s7239_s7 + $0x110] sm:$0xff]  ;;  %v5077_v43 = vpack.c.bf16 %v4060_v40, %v4059_v39 }
 0x544   : > { %5096 = vmatprep.subr.bf16.mxu0 %v5095_v55  ;;  %v4090_v49 = vld [vmem:[%s7239_s7 + $0x138] sm:$0xff]  ;;  %v4061_v8 = vld [vmem:[%s7239_s7 + $0x50] sm:$0xff]  ;;  %v4107_v55 = vld [vmem:[%s7239_s7 + $0x1c0] sm:$0xff] }
 0x545   : > { %v4062_v54 = vld [vmem:[%s7239_s7 + $0x58] sm:$0xff] }
 0x546   : > { %v4098_v32 = vld [vmem:[%s7239_s7 + $0x178] sm:$0xff] }
 0x54a   : > { %v3718_v58 = vld [vmem:[#allocation9 + $0x14] sm:$0xff]  ;;  %v3719_v3 = vld [vmem:[#allocation9 + $0x1c] sm:$0x3f] }
 0x54b   : > { %v3675_v59 = vld [vmem:[#allocation9 + $0x16] sm:$0x3f]  ;;  %3725 = vrot.lane.b32.xlu0 %v3718_v58, %s5216_s15  ;;  %v5097_v58 = vpack.c.bf16 %v4086_v57, %v4085_v56  ;;  %v5081_v56 = vpack.c.bf16 %v4062_v54, %v4061_v8 }
 0x54c   : > { %3683 = vrot.lane.b32.xlu1 %v3675_v59, %s5219_s22  ;;  %v3754_v61 = vld [vmem:[#allocation9 + $0x16] sm:$0xff]  ;;  %v5069_v59 = vpack.c.bf16 %v4056_v53, %v4055_v51  ;;  %v4078_v51 = vld [vmem:[%s7239_s7 + $0xd8] sm:$0xff] }
 0x54d   : > { %3757 = vst.msk [vmem:[#allocation10 + $0x28] sm:$0xff] %vm3563_vm15, %v3754_v61  ;;  %v3695_v63 = vld [vmem:[#allocation9 + $0x17] sm:$0x3f]  ;;  %5098 = vmatpush3.bf16.msra.mxu0 %v5097_v58  ;;  %v5079_v53 = vpack.c.bf16 %v4078_v51, %v4077_v50  ;;  %v4117_v50 = vld [vmem:[%s7239_s7 + $0x210] sm:$0xff]  ;;  %v4118_v51 = vld [vmem:[%s7239_s7 + $0x218] sm:$0xff] }
 0x54e   : > { %3698 = vst.msk [vmem:[#allocation10 + $0x38] sm:$0x3f] %vm3573_vm11, %v3695_v63  ;;  %v3736_v0 = vld [vmem:[#allocation9 + $0x15] sm:$0xff]  ;;  %v4629_v63 = vld [vmem:[%s7238_s6] ss:$0 sm:$0xff] }
 0x54f   : > { %3743 = vrot.lane.b32.xlu0 %v3736_v0, %s5219_s22  ;;  %v3701_v1 = vld [vmem:[#allocation9 + $0x18] sm:$0x3f]  ;;  %v4091_v58 = vld [vmem:[%s7239_s7 + $0x140] sm:$0xff] }
 0x550   : > { %v4108_v57 = vld [vmem:[%s7239_s7 + $0x1c8] sm:$0xff] }
 0x551   : > { %v4356_v8 = vld [vmem:[%s7241_s9 + $0x8] sm:$0xff] }
 0x553   : > { %3709 = vrot.lane.b32.xlu0 %v3701_v1, %s5213_s21 }
 0x554   : > { %v3764_v2 = vld [vmem:[#allocation10 + $0x28] sm:$0xff] }
 0x555   : > { %4908 = vmatmul.mubr.msk.f32.gmra.mrb[38].mxu0 %vm3563_vm15, %v3764_v2 }
 0x556   : > { %4910 = vmatprep.mubr.msk.f32.mxu0 %vm5221_vm9, %v5214_v36 }
 0x557   : > { %3727 = vrot.lane.b32.xlu0 %v3719_v3, %s5216_s15 }
 0x559   : > { %4911 = vmatmul.mubr.msk.f32.gmra.mrb[40].mxu0 %vm3563_vm15, %v3767_v4  ;;  %vm3691_vm15 = vcmask 1046272  }
 0x55b   : > { %3745 = vrot.lane.b32.xlu0 %v3737_v5, %s5219_s22  ;;  %s436_s22 = scalar_lea.vmem %s7245_s13, %s7247_s26 }
 0x5a7   : > { %v3724_v6 = vpop.permute.xlu0 %3723 }
 0x5a8   : > { %v3682_v7 = vpop.permute.xlu1 %3681  ;;  %3732 = vst.msk [vmem:[#allocation10 + $0x8] sm:$0xff] %vm3668_vm10, %v3724_v6 }
 0x5a9   : > { %3690 = vst.msk [vmem:[#allocation10 + $0x18] sm:$0xff] %vm3688_vm14, %v3682_v7 }
 0x5ac   : > { %v3742_v60 = vpop.permute.xlu0 %3741 }
 0x5ad   : > { %v3644_v9 = vpop.permute.xlu1 %3643  ;;  %3750 = vst.msk [vmem:[#allocation10 + $0x8] sm:$0xff] %vm3688_vm14, %v3742_v60 }
 0x5ae   : > { %3652 = vst.msk [vmem:[#allocation10 + $0x30] sm:$0x3f] %vm3651_vm0, %v3644_v9 }
 0x5b0   : > { %v3708_v10 = vpop.permute.xlu0 %3707  ;;  %v3762_v20 = vld [vmem:[#allocation10 + $0x18] sm:$0xff] }
 0x5b1   : > { %3715 = vst.msk [vmem:[#allocation10 + $0x20] sm:$0xff] %vm3648_vm12, %v3708_v10  ;;  %v3664_v11 = vpop.permute.xlu1 %3663 }
 0x5b2   : > { %3672 = vst.msk [vmem:[#allocation10 + $0x30] sm:$0x3f] %vm3671_vm1, %v3664_v11 }
 0x5b4   : > { %v3760_v12 = vld [vmem:[#allocation10 + $0x8] sm:$0xff] }
 0x5b5   : > { %3884 = vmatprep.mubr.f32.mxu1 %v3760_v12 }
 0x5b6   : > { %3885 = vmatmul.mubr.f32.vlgmr.msra.gmra.mrb[20].mxu1 %v3759_v13 }
 0x5b7   : > { %5062 = vmatpush3.bf16.msra.mxu1 %v5061_v35  ;;  %v5101_v35 = vpack.c.bf16 %v4088_v31, %v4087_v30  ;;  %v4097_v31 = vld [vmem:[%s7239_s7 + $0x170] sm:$0xff] }
 0x5b8   : > { %5064 = vmatprep.subr.bf16.mxu1 %v5063_v37 }
 0x5bb   : > { %5066 = vmatpush3.bf16.msra.mxu1 %v5065_v45  ;;  %v4106_v45 = vld [vmem:[%s7239_s7 + $0x1b8] sm:$0xff] }
 0x5bc   : > { %5068 = vmatprep.subr.bf16.mxu1 %v5067_v52  ;;  %v5103_v48 = vpack.c.bf16 %v4106_v45, %v4105_v44  ;;  %v5105_v52 = vpack.c.bf16 %v4090_v49, %v4089_v47  ;;  %v4115_v47 = vld [vmem:[%s7239_s7 + $0x200] sm:$0xff] }
 0x5bd   : > { %v3726_v14 = vpop.permute.xlu0 %3725 }
 0x5be   : > { %v3684_v15 = vpop.permute.xlu1 %3683  ;;  %3733 = vst.msk [vmem:[#allocation10 + $0x20] sm:$0xff] %vm3668_vm10, %v3726_v14 }
 0x5bf   : > { %3692 = vst.msk [vmem:[#allocation10 + $0x30] sm:$0x3f] %vm3691_vm15, %v3684_v15  ;;  %5070 = vmatpush3.bf16.msra.mxu1 %v5069_v59  ;;  %v4092_v59 = vld [vmem:[%s7239_s7 + $0x148] sm:$0xff] }
 0x5c1   : > { %v3744_v16 = vpop.permute.xlu0 %3743 }
 0x5c2   : > { %3751 = vst.msk [vmem:[#allocation10 + $0x20] sm:$0xff] %vm3688_vm14, %v3744_v16 }
 0x5c5   : > { %v3710_v17 = vpop.permute.xlu0 %3709 }
 0x5c6   : > { %3716 = vst.msk [vmem:[#allocation10 + $0x38] sm:$0x3f] %vm3651_vm0, %v3710_v17  ;;  %v3765_v22 = vld [vmem:[#allocation10 + $0x30] sm:$0x3f] }
 0x5c9   : > { %v3728_v18 = vpop.permute.xlu0 %3727  ;;  %v3763_v19 = vld [vmem:[#allocation10 + $0x20] sm:$0xff] }
 0x5ca   : > { %3734 = vst.msk [vmem:[#allocation10 + $0x38] sm:$0x3f] %vm3671_vm1, %v3728_v18  ;;  %3889 = vmatprep.mubr.f32.mxu1 %v3763_v19 }
 0x5cb   : > { %3890 = vmatmul.mubr.f32.gmra.mrb[22].mxu1 %v3762_v20  ;;  %v4073_v20 = vld [vmem:[%s7239_s7 + $0xb0] sm:$0xff] }
 0x5cd   : > { %v3746_v46 = vpop.permute.xlu0 %3745 }
 0x5ce   : > { %3752 = vst.msk [vmem:[#allocation10 + $0x38] sm:$0x3f] %vm3691_vm15, %v3746_v46  ;;  %v4074_v46 = vld [vmem:[%s7239_s7 + $0xb8] sm:$0xff] }
 0x5d5   : > { %v3766_v21 = vld [vmem:[#allocation10 + $0x38] sm:$0x3f] }
 0x5d6   : > { %3894 = vmatprep.mubr.f32.mxu1 %v3766_v21  ;;  %v4057_v21 = vld [vmem:[%s7239_s7 + $0x30] sm:$0xff] }
 0x5d7   : > { %3895 = vmatmul.mubr.f32.gmra.mrb[24].mxu1 %v3765_v22  ;;  %v5071_v22 = vpack.c.bf16 %v4074_v46, %v4073_v20  ;;  %v4065_v20 = vld [vmem:[%s7239_s7 + $0x70] sm:$0xff] }
 0x5d9   : > { %5072 = vmatprep.subr.bf16.mxu1 %v5071_v22  ;;  %v4111_v22 = vld [vmem:[%s7239_s7 + $0x1e0] sm:$0xff] }
 0x612   : > { %v3966_v23 = vpop.f32.mrb[36].mxu0 }
 0x613   : > { %v4906_v24 = vpop.f32.mrb[37].mxu0 }
 0x614   : > { %v4103_v24 = vld [vmem:[%s7239_s7 + $0x1a0] sm:$0xff] }
 0x628   : > { %v3971_v25 = vpop.f32.mrb[38].mxu0 }
 0x629   : > { %v4909_v26 = vpop.f32.mrb[39].mxu0 }
 0x62c   : > { %v6882_v27 = vpop.f32.mrb[40].mxu0 }
 0x62d   : > { %v4912_v41 = vpop.f32.mrb[41].mxu0 }
 0x689   : > { %v4711_v61 = vpop.f32.mrb[20].mxu1 }
 0x68a   : > { %v4712_v0 = vpop.f32.mrb[21].mxu1 }
 0x68b   : > { %v4713_v1 = vadd.f32 %v4712_v0, %v4711_v61  ;;  %v5107_v61 = vpack.c.bf16 %v4108_v57, %v4107_v55  ;;  %v5127_v55 = vpack.c.bf16 %v4118_v51, %v4117_v50 }
 0x68d   : > { %v3887_v2 = vadd.f32 %v4713_v1, %v4629_v63 }
 0x68f   : > { %v3967_v3 = vadd.f32 %v3966_v23, %v3887_v2  ;;  %v4058_v23 = vld [vmem:[%s7239_s7 + $0x38] sm:$0xff] }
 0x690   : > { %v5073_v41 = vpack.c.bf16 %v4058_v23, %v4057_v21  ;;  %v4066_v21 = vld [vmem:[%s7239_s7 + $0x78] sm:$0xff]  ;;  %v4112_v23 = vld [vmem:[%s7239_s7 + $0x1e8] sm:$0xff] }
 0x691   : > { %v3980_v4 = vmax.f32 %v3967_v3, 0.0 }
 0x692   : > { %5074 = vmatpush3.bf16.msra.mxu1 %v5073_v41 }
 0x693   : > { %3984 = vst.msk [vmem:[#allocation11] sm:$0xff] %vm3983_vm2, %v3980_v4  ;;  %5076 = vmatprep.subr.bf16.mxu1 %v5075_v42  ;;  %v4079_v4 = vld [vmem:[%s7239_s7 + $0xe0] sm:$0xff] }
 0x696   : > { %5078 = vmatpush3.bf16.msra.mxu1 %v5077_v43 }
 0x697   : > { %5080 = vmatprep.subr.bf16.mxu1 %v5079_v53  ;;  %v4355_v53 = vld [vmem:[%s7241_s9] sm:$0xff] }
 0x69a   : > { %5082 = vmatpush3.bf16.msra.mxu1 %v5081_v56  ;;  %v5136_v56 = vpack.c.bf16 %v4356_v8, %v4355_v53  ;;  %v4449_v53 = vld [vmem:[%s7243_s11 + $0x30] sm:$0xff]  ;;  %v4450_v8 = vld [vmem:[%s7243_s11 + $0x38] sm:$0xff] }
 0x69e   : > { %v4714_v5 = vpop.f32.mrb[22].mxu1 }
 0x69f   : > { %v4715_v6 = vpop.f32.mrb[23].mxu1 }
 0x6a0   : > { %v4716_v7 = vadd.f32 %v4715_v6, %v4714_v5  ;;  %v4080_v5 = vld [vmem:[%s7239_s7 + $0xe8] sm:$0xff]  ;;  %v4063_v6 = vld [vmem:[%s7239_s7 + $0x60] sm:$0xff] }
 0x6a2   : > { %v3892_v60 = vadd.f32 %v4716_v7, %v4629_v63 }
 0x6a4   : > { %v3972_v9 = vadd.f32 %v3971_v25, %v3892_v60  ;;  %v4104_v25 = vld [vmem:[%s7239_s7 + $0x1a8] sm:$0xff]  ;;  %v5083_v60 = vpack.c.bf16 %v4080_v5, %v4079_v4  ;;  %v4357_v4 = vld [vmem:[%s7241_s9 + $0x10] sm:$0xff]  ;;  %v4358_v5 = vld [vmem:[%s7241_s9 + $0x18] sm:$0xff] }
 0x6a5   : > { %v5099_v28 = vpack.c.bf16 %v4104_v25, %v4103_v24  ;;  %v5089_v24 = vpack.c.bf16 %v4066_v21, %v4065_v20  ;;  %v5115_v25 = vpack.c.bf16 %v4112_v23, %v4111_v22  ;;  %v4370_v21 = vld [vmem:[%s7241_s9 + $0x78] sm:$0xff]  ;;  %v4443_v23 = vld [vmem:[%s7243_s11] sm:$0xff] }
 0x6a6   : > { %v3981_v10 = vmax.f32 %v3972_v9, 0.0  ;;  %v4064_v9 = vld [vmem:[%s7239_s7 + $0x68] sm:$0xff]  ;;  %5084 = vmatprep.subr.bf16.mxu1 %v5083_v60 }
 0x6a7   : > { %5100 = vmatprep.subr.bf16.mxu0 %v5099_v28  ;;  %v4113_v28 = vld [vmem:[%s7239_s7 + $0x1f0] sm:$0xff]  ;;  %v4360_v60 = vld [vmem:[%s7241_s9 + $0x28] sm:$0xff] }
 0x6a8   : > { %3985 = vst.msk [vmem:[#allocation11 + $0x8] sm:$0xff] %vm3983_vm2, %v3981_v10  ;;  %5102 = vmatpush3.bf16.msra.mxu0 %v5101_v35  ;;  %v4109_v10 = vld [vmem:[%s7239_s7 + $0x1d0] sm:$0xff] }
 0x6a9   : > { %5104 = vmatprep.subr.bf16.mxu0 %v5103_v48  ;;  %v4116_v48 = vld [vmem:[%s7239_s7 + $0x208] sm:$0xff] }
 0x6aa   : > { %v4717_v11 = vpop.f32.mrb[24].mxu1  ;;  %v5124_v49 = vpack.c.bf16 %v4116_v48, %v4115_v47 }
 0x6ab   : > { %v4718_v12 = vpop.f32.mrb[25].mxu1 }
 0x6ac   : > { %v4719_v13 = vadd.f32 %v4718_v12, %v4717_v11  ;;  %5106 = vmatpush3.bf16.msra.mxu0 %v5105_v52  ;;  %v5085_v12 = vpack.c.bf16 %v4064_v9, %v4063_v6  ;;  %v5139_v6 = vpack.c.bf16 %v4358_v5, %v4357_v4 }
 0x6ad   : > { %5108 = vmatprep.subr.bf16.mxu0 %v5107_v61 }
 0x6ae   : > { %v3897_v14 = vadd.f32 %v4719_v13, %v4629_v63  ;;  %v5109_v63 = vpack.c.bf16 %v4092_v59, %v4091_v58  ;;  %v4110_v13 = vld [vmem:[%s7239_s7 + $0x1d8] sm:$0xff]  ;;  %5086 = vmatpush3.bf16.msra.mxu1 %v5085_v12  ;;  %v4119_v58 = vld [vmem:[%s7239_s7 + $0x220] sm:$0xff]  ;;  %v4120_v59 = vld [vmem:[%s7239_s7 + $0x228] sm:$0xff] }
 0x6af   : > { %v3990_v15 = vld [vmem:[#allocation11] ss:$2 sm:$0xff]  ;;  %v3994_v16 = vld [vmem:[#allocation11 + $0x1] ss:$2 sm:$0xff] }
 0x6b0   : > { %v3997_v17 = vmax.f32 %v3990_v15, %v3994_v16  ;;  %v3977_v18 = vadd.f32 %v6882_v27, %v3897_v14  ;;  %5110 = vmatpush3.bf16.msra.mxu0 %v5109_v63  ;;  %v4093_v14 = vld [vmem:[%s7239_s7 + $0x150] sm:$0xff]  ;;  %v4094_v15 = vld [vmem:[%s7239_s7 + $0x158] sm:$0xff]  ;;  %v5111_v16 = vpack.c.bf16 %v4110_v13, %v4109_v10  ;;  %v5130_v63 = vpack.c.bf16 %v4120_v59, %v4119_v58  ;;  %v4363_v12 = vld [vmem:[%s7241_s9 + $0x40] sm:$0xff] }
 0x6b1   : > { %v4362_v10 = vld [vmem:[%s7241_s9 + $0x38] sm:$0xff]  ;;  %v4364_v13 = vld [vmem:[%s7241_s9 + $0x48] sm:$0xff] }
 0x6b2   : > { %3999 = vst.msk [vmem:[#allocation12] sm:$0xff] %vm3983_vm2, %v3997_v17  ;;  %v3982_v19 = vmax.f32 %v3977_v18, 0.0  ;;  %v5113_v17 = vpack.c.bf16 %v4094_v15, %v4093_v14  ;;  %v4081_v18 = vld [vmem:[%s7239_s7 + $0xf0] sm:$0xff]  ;;  %5112 = vmatprep.subr.bf16.mxu0 %v5111_v16  ;;  %v5148_v14 = vpack.c.bf16 %v4364_v13, %v4363_v12  ;;  %v4366_v16 = vld [vmem:[%s7241_s9 + $0x58] sm:$0xff] }
 0x6b3   : > { %v4365_v15 = vld [vmem:[%s7241_s9 + $0x50] sm:$0xff] }
 0x6b4   : > { %3987 = vst.msk [vmem:[#allocation11 + $0x10] sm:$0x3f] %vm3986_vm3, %v3982_v19  ;;  %v4082_v19 = vld [vmem:[%s7239_s7 + $0xf8] sm:$0xff]  ;;  %5114 = vmatpush3.bf16.msra.mxu0 %v5113_v17  ;;  %v5151_v17 = vpack.c.bf16 %v4366_v16, %v4365_v15 }
 0x6b5   : > { %v5087_v46 = vpack.c.bf16 %v4082_v19, %v4081_v18  ;;  %5116 = vmatprep.subr.bf16.mxu0 %v5115_v25  ;;  %v4367_v18 = vld [vmem:[%s7241_s9 + $0x60] sm:$0xff]  ;;  %v4368_v19 = vld [vmem:[%s7241_s9 + $0x68] sm:$0xff]  ;;  %v4445_v25 = vld [vmem:[%s7243_s11 + $0x10] sm:$0xff] }
 0x6b6   : > { %v5154_v20 = vpack.c.bf16 %v4368_v19, %v4367_v18 }
 0x6b7   : > { %5088 = vmatprep.subr.bf16.mxu1 %v5087_v46  ;;  %v4369_v46 = vld [vmem:[%s7241_s9 + $0x70] sm:$0xff] }
 0x6b8   : > { %5090 = vmatpush3.bf16.msra.mxu1 %v5089_v24  ;;  %v5157_v22 = vpack.c.bf16 %v4370_v21, %v4369_v46  ;;  %v4444_v24 = vld [vmem:[%s7243_s11 + $0x8] sm:$0xff] }
 0x6b9   : > { %v4002_v26 = vld [vmem:[#allocation12] sm:$0x3]  ;;  %v4003_v27 = vld [vmem:[#allocation12 + $0x3] sm:$0x3]  ;;  %v4007_v0 = vld [vmem:[#allocation12 + $0x6] sm:$0x3]  ;;  %5123 = vmatprep.subr.bf16.mxu1 %v5215_v62 }
 0x6ba   : > { %v4004_v29 = vmax.f32 %v4002_v26, %v4003_v27  ;;  %v4095_v26 = vld [vmem:[%s7239_s7 + $0x160] sm:$0xff]  ;;  %v4096_v27 = vld [vmem:[%s7239_s7 + $0x168] sm:$0xff] }
 0x6bb   : > { %v3992_v33 = vld [vmem:[#allocation11 + $0x10] ss:$2 sm:$0x7]  ;;  %v3996_v34 = vld [vmem:[#allocation11 + $0x11] ss:$2 sm:$0x7]  ;;  %v5117_v41 = vpack.c.bf16 %v4096_v27, %v4095_v26  ;;  %v5160_v26 = vpack.c.bf16 %v4444_v24, %v4443_v23 }
 0x6bc   : > { %v3998_v37 = vmax.f32 %v3992_v33, %v3996_v34  ;;  %4006 = vst.msk [vmem:[#allocation13 + $0x5] sm:$0x3] %vm4005_vm4, %v4004_v29  ;;  %v4114_v29 = vld [vmem:[%s7239_s7 + $0x1f8] sm:$0xff]  ;;  %v5121_v33 = vpack.c.bf16 %v4098_v32, %v4097_v31 }
 0x6bd   : > { %v5119_v30 = vpack.c.bf16 %v4114_v29, %v4113_v28  ;;  %5118 = vmatpush3.bf16.msra.mxu0 %v5117_v41  ;;  %v4446_v27 = vld [vmem:[%s7243_s11 + $0x18] sm:$0xff]  ;;  %v4447_v28 = vld [vmem:[%s7243_s11 + $0x20] sm:$0xff]  ;;  %v4448_v29 = vld [vmem:[%s7243_s11 + $0x28] sm:$0xff] }
 0x6be   : > { %4001 = vst.msk [vmem:[#allocation12 + $0x8] sm:$0x7] %vm4000_vm5, %v3998_v37  ;;  %v5163_v41 = vpack.c.bf16 %v4446_v27, %v4445_v25 }
 0x6bf   : > { %5120 = vmatprep.subr.bf16.mxu0 %v5119_v30  ;;  %v5166_v30 = vpack.c.bf16 %v4448_v29, %v4447_v28 }
 0x6c1   : > { %5122 = vmatpush3.bf16.msra.mxu0 %v5121_v33 }
 0x6c2   : > { %5135 = vmatprep.subr.bf16.mxu0 %v5215_v62 }
 0x6c3   : > { %v4013_v1 = vld [vmem:[#allocation13 + $0x1] sm:$0x3f] }
 0x6c4   : > { %v4011_v2 = vld [vmem:[#allocation13] sm:$0x3f]  ;;  %4015 = vrot.lane.b32.xlu1 %v4013_v1, %s5216_s15  ;;  %v4122_v1 = vld [vmem:[%s7239_s7 + $0x238] sm:$0xff] }
 0x6c5   : > { %v4020_v3 = vld [vmem:[#allocation13 + $0x2] sm:$0x3f]  ;;  %4012 = vst.msk [vmem:[#allocation14] sm:$0x3f] %vm3986_vm3, %v4011_v2  ;;  %v4008_v7 = vld [vmem:[#allocation12 + $0x9] sm:$0x3] }
 0x6c6   : > { %4021 = vst.msk [vmem:[#allocation14 + $0x8] sm:$0x3f] %vm3986_vm3, %v4020_v3  ;;  %v4009_v11 = vmax.f32 %v4007_v0, %v4008_v7  ;;  %v4121_v0 = vld [vmem:[%s7239_s7 + $0x230] sm:$0xff]  ;;  %v4359_v7 = vld [vmem:[%s7241_s9 + $0x20] sm:$0xff] }
 0x6c7   : > { %v5133_v2 = vpack.c.bf16 %v4122_v1, %v4121_v0  ;;  %v5142_v9 = vpack.c.bf16 %v4360_v60, %v4359_v7 }
 0x6c8   : > { %4010 = vst.msk [vmem:[#allocation13 + $0x9] sm:$0x3] %vm4005_vm4, %v4009_v11 }
 0x6cf   : > { %v4044_v34 = vld [vmem:[#allocation13 + $0xa] sm:$0x3f]  ;;  %v4022_v35 = vld [vmem:[#allocation13 + $0x4] sm:$0x3f] }
 0x6d0   : > { %v4030_v37 = vld [vmem:[#allocation13 + $0x6] sm:$0x3f]  ;;  %4045 = vst.msk [vmem:[#allocation14 + $0x20] sm:$0x3f] %vm3986_vm3, %v4044_v34  ;;  %4024 = vrot.lane.b32.xlu0 %v4022_v35, %s5216_s15  ;;  %v4633_v34 = vld [vmem:[%s7240_s8] ss:$0 sm:$0xff] }
 0x6d1   : > { %4032 = vrot.lane.b32.xlu1 %v4030_v37, %s5216_s15  ;;  %v4028_v38 = vld [vmem:[#allocation13 + $0x5] sm:$0x3f] }
 0x6d2   : > { %v4036_v39 = vld [vmem:[#allocation13 + $0x8] sm:$0x3f]  ;;  %4029 = vst.msk [vmem:[#allocation14 + $0x10] sm:$0x3f] %vm3986_vm3, %v4028_v38 }
 0x6d3   : > { %4037 = vst.msk [vmem:[#allocation14 + $0x18] sm:$0x3f] %vm3986_vm3, %v4036_v39  ;;  %v4038_v40 = vld [vmem:[#allocation13 + $0x9] sm:$0x3f] }
 0x6d4   : > { %4040 = vrot.lane.b32.xlu0 %v4038_v40, %s5216_s15 }
 0x6d7   : > { %v4050_v3 = vld [vmem:[#allocation14 + $0x20] sm:$0x3f] }
 0x736   : > { %v4016_v42 = vpop.permute.xlu1 %4015 }
 0x737   : > { %4019 = vst.msk [vmem:[#allocation14] sm:$0x3f] %vm4018_vm6, %v4016_v42 }
 0x73e   : > { %v4046_v54 = vld [vmem:[#allocation14] sm:$0x3f] }
 0x742   : > { %v4025_v43 = vpop.permute.xlu0 %4024 }
 0x743   : > { %v4033_v44 = vpop.permute.xlu1 %4032  ;;  %4027 = vst.msk [vmem:[#allocation14 + $0x8] sm:$0x3f] %vm4018_vm6, %v4025_v43 }
 0x744   : > { %4035 = vst.msk [vmem:[#allocation14 + $0x10] sm:$0x3f] %vm4018_vm6, %v4033_v44 }
 0x746   : > { %v4041_v45 = vpop.permute.xlu0 %4040 }
 0x747   : > { %4043 = vst.msk [vmem:[#allocation14 + $0x18] sm:$0x3f] %vm4018_vm6, %v4041_v45 }
 0x74a   : > { %v4047_v52 = vld [vmem:[#allocation14 + $0x8] sm:$0x3f] }
 0x74b   : > { %4197 = vmatprep.mubr.f32.mxu1 %v4047_v52  ;;  %v4048_v61 = vld [vmem:[#allocation14 + $0x10] sm:$0x3f] }
 0x74c   : > { %4198 = vmatmul.mubr.f32.vlgmr.msra.gmra.mrb[26].mxu1 %v4046_v54  ;;  %v5169_v54 = vpack.c.bf16 %v4450_v8, %v4449_v53 }
 0x74d   : > { %5125 = vmatpush3.bf16.msra.mxu1 %v5124_v49  ;;  %4929 = vmatprep.mubr.msk.f32.mxu1 %vm5221_vm9, %v5214_v36 }
 0x74e   : > { %v4049_v57 = vld [vmem:[#allocation14 + $0x18] sm:$0x3f]  ;;  %5126 = vmatprep.subr.bf16.mxu1 %v5215_v62 }
 0x74f   : > { %4267 = vmatprep.mubr.f32.mxu0 %v4049_v57 }
 0x750   : > { %4268 = vmatmul.mubr.f32.vlgmr.msra.gmra.mrb[42].mxu0 %v4048_v61  ;;  %v4451_v61 = vld [vmem:[%s7244_s12] sm:$0x1] }
 0x751   : > { %5128 = vmatpush3.bf16.msra.mxu1 %v5127_v55  ;;  %5137 = vmatpush3.bf16.msra.mxu0 %v5136_v56  ;;  %v4371_v55 = vld [vmem:[%s7242_s10] sm:$0x1] }
 0x752   : > { %5129 = vmatprep.subr.bf16.mxu1 %v5215_v62  ;;  %5138 = vmatprep.subr.bf16.mxu0 %v5215_v62 }
 0x753   : > { %4964 = vmatprep.mubr.msk.f32.mxu0 %vm5221_vm9, %v5214_v36 }
 0x755   : > { %5131 = vmatpush3.bf16.msra.mxu1 %v5130_v63  ;;  %5140 = vmatpush3.bf16.msra.mxu0 %v5139_v6 }
 0x756   : > { %5132 = vmatprep.subr.bf16.mxu1 %v5215_v62  ;;  %5141 = vmatprep.subr.bf16.mxu0 %v5215_v62 }
 0x759   : > { %5134 = vmatpush3.bf16.msra.mxu1 %v5133_v2  ;;  %5143 = vmatpush3.bf16.msra.mxu0 %v5142_v9 }
 0x75a   : > { %5159 = vmatprep.subr.bf16.mxu1 %v5215_v62  ;;  %5144 = vmatprep.subr.bf16.mxu0 %v5215_v62 }
 0x75c   : > { %4930 = vmatmul.mubr.msk.f32.vlgmr.msra.gmra.mrb[28].mxu1 %vm3983_vm2, %v4050_v3 }
 0x75d   : > { %4983 = vmatprep.mubr.msk.f32.mxu1 %vm5221_vm9, %v5214_v36  ;;  %v4361_v36 = vld [vmem:[%s7241_s9 + $0x30] sm:$0xff]  ;;  %5161 = vmatpush3.bf16.msra.mxu1 %v5160_v26 }
 0x75e   : > { %v5145_v11 = vpack.c.bf16 %v4362_v10, %v4361_v36  ;;  %5162 = vmatprep.subr.bf16.mxu1 %v5215_v62 }
 0x760   : > { %5146 = vmatpush3.bf16.msra.mxu0 %v5145_v11 }
 0x761   : > { %5147 = vmatprep.subr.bf16.mxu0 %v5215_v62  ;;  %5164 = vmatpush3.bf16.msra.mxu1 %v5163_v41 }
 0x762   : > { %5165 = vmatprep.subr.bf16.mxu1 %v5215_v62 }
 0x764   : > { %5149 = vmatpush3.bf16.msra.mxu0 %v5148_v14 }
 0x765   : > { %5150 = vmatprep.subr.bf16.mxu0 %v5215_v62  ;;  %5167 = vmatpush3.bf16.msra.mxu1 %v5166_v30 }
 0x766   : > { %5168 = vmatprep.subr.bf16.mxu1 %v5215_v62 }
 0x768   : > { %5152 = vmatpush3.bf16.msra.mxu0 %v5151_v17 }
 0x769   : > { %5153 = vmatprep.subr.bf16.mxu0 %v5215_v62  ;;  %5170 = vmatpush3.bf16.msra.mxu1 %v5169_v54 }
 0x76c   : > { %5155 = vmatpush3.bf16.msra.mxu0 %v5154_v20 }
 0x76d   : > { %5156 = vmatprep.subr.bf16.mxu0 %v5215_v62 }
 0x770   : > { %5158 = vmatpush3.bf16.msra.mxu0 %v5157_v22 }
 0x81f   : > { %v4759_v31 = vpop.f32.mrb[26].mxu1 }
 0x820   : > { %v4760_v32 = vpop.f32.mrb[27].mxu1 }
 0x821   : > { %v4761_v33 = vadd.f32 %v4760_v32, %v4759_v31 }
 0x823   : > { %v4794_v35 = vpop.f32.mrb[42].mxu0  ;;  %v4200_v38 = vadd.f32 %v4761_v33, %v4633_v34 }
 0x824   : > { %v4795_v37 = vpop.f32.mrb[43].mxu0 }
 0x825   : > { %v4796_v39 = vadd.f32 %v4795_v37, %v4794_v35 }
 0x827   : > { %v4270_v40 = vadd.f32 %v4796_v39, %v4200_v38 }
 0x82f   : > { %v4339_v42 = vpop.f32.mrb[28].mxu1 }
 0x830   : > { %v4340_v43 = vadd.f32 %v4339_v42, %v4270_v40  ;;  %v4931_v44 = vpop.f32.mrb[29].mxu1 }
 0x832   : > { %v4343_v45 = vmax.f32 %v4340_v43, 0.0 }
 0x834   : > { %v4345_v47 = vrot.slane %v4343_v45, 1  ;;  %v4348_v49 = vrot.slane %v4343_v45, 4  ;;  %v4351_v62 = vrot.slane %v4343_v45, 5 }
 0x836   : > { %v4347_v48 = vadd.f32 %v4345_v47, %v4343_v45 }
 0x838   : > { %v4350_v50 = vadd.f32 %v4348_v49, %v4347_v48 }
 0x83a   : > { %v4353_v51 = vadd.f32 %v4351_v62, %v4350_v50 }
 0x83c   : > { %v4354_v52 = vmul.f32 0.25, %v4353_v51 }
 0x83e   : > { %4965 = vmatmul.mubr.f32.vlgmr.msra.gmra.mrb[44].mxu0 %v4354_v52 }
 0x911   : > { %v4438_v56 = vpop.f32.mrb[44].mxu0 }
 0x912   : > { %v4439_v57 = vadd.f32 %v4438_v56, %v4371_v55  ;;  %v4966_v58 = vpop.f32.mrb[45].mxu0 }
 0x914   : > { %v4442_v59 = vmax.f32 %v4439_v57, 0.0 }
 0x916   : > { %4984 = vmatmul.mubr.msk.f32.vlgmr.msra.gmra.mrb[30].mxu1 %vm3983_vm2, %v4442_v59 }
 0x9e9   : > { %v4521_v63 = vpop.f32.mrb[30].mxu1 }
 0x9ea   : > { %v4522_v0 = vadd.f32 %v4521_v63, %v4451_v61  ;;  %v4985_v1 = vpop.f32.mrb[31].mxu1 }
 0x9ec   : > { %4526 = vst.msk [vmem:[%s436_s22] sm:$0x1] %vm4525_vm7, %v4522_v0 }
 0x9ed PF: > { %s23_s25 = sadd.s32 1, %s5204_s25  }
 0x9ee   : > { %p20_p4 = scmp.ge.s32.totalorder %s23_s25, 4  }
 0x9f0   :  { %22 = sbr.rel (!%p20_p4) target bundleno = 1 (0x1), region = 149 }

</bundles_post_ra>
